<compile_context>
chip_gen: v6e
topology: v6e:2x2x1
jax: 0.10.0
libtpu: 0.0.40
codegen_flags: <defaults>
</compile_context>

<pallas_src>
import functools

import numpy as np
import jax
import jax.numpy as jnp
from jax.experimental import pallas as pl
from jax.experimental.pallas import tpu as pltpu


# ----------------------------- kernel helpers -----------------------------

def _layer_norm(x, gamma, beta, eps=1e-6):
    mu = jnp.mean(x, axis=-1, keepdims=True)
    xc = x - mu
    var = jnp.mean(xc * xc, axis=-1, keepdims=True)
    return xc * jax.lax.rsqrt(var + eps) * gamma + beta


def _mha(x_q, x_kv, mask, wq, wk, wv, wo, gamma, beta,
         n_head, d_k, d_v, attn_out_ref=None):
    """Multi-head attention sublayer on already-loaded VMEM values.

    x_q: (Lq, D), x_kv: (Lk, D), mask: (Lq, Lk) float (1 = keep, 0 = mask).
    wq/wk: (D, n_head*d_k), wv: (D, n_head*d_v), wo: (n_head*d_v, D).
    If attn_out_ref is given, per-head attention probs are written to
    attn_out_ref[0, h].
    """
    Lq, D = x_q.shape
    residual = x_q
    q = jnp.dot(x_q, wq, preferred_element_type=jnp.float32)    # (Lq, H*dk)
    k = jnp.dot(x_kv, wk, preferred_element_type=jnp.float32)   # (Lk, H*dk)
    v = jnp.dot(x_kv, wv, preferred_element_type=jnp.float32)   # (Lk, H*dv)
    scale = 1.0 / float(np.sqrt(d_k))

    out = jnp.zeros((Lq, D), jnp.float32)
    for h in range(n_head):                       # static unroll, n_head small
        qh = q[:, h * d_k:(h + 1) * d_k] * scale
        kh = k[:, h * d_k:(h + 1) * d_k]
        vh = v[:, h * d_v:(h + 1) * d_v]
        # scores = qh @ kh.T without materializing the transpose
        s = jax.lax.dot_general(qh, kh, (((1,), (1,)), ((), ())),
                                preferred_element_type=jnp.float32)  # (Lq, Lk)
        s = jnp.where(mask == 0.0, -1e9, s)
        s = s - jnp.max(s, axis=-1, keepdims=True)
        p = jnp.exp(s)
        p = p / jnp.sum(p, axis=-1, keepdims=True)
        if attn_out_ref is not None:
            attn_out_ref[0, h] = p.astype(attn_out_ref.dtype)
        oh = jnp.dot(p, vh, preferred_element_type=jnp.float32)      # (Lq, dv)
        # Concatenating heads then multiplying by wo == summing per-head
        # partial products against the matching block-row of wo.
        out = out + jnp.dot(oh, wo[h * d_v:(h + 1) * d_v, :],
                            preferred_element_type=jnp.float32)
    out = out + residual
    return _layer_norm(out, gamma, beta)


def _decoder_layer_kernel(
    dec_ref, enc_ref, smask_ref, emask_ref,
    wq1_ref, wk1_ref, wv1_ref, wo1_ref, ln1g_ref, ln1b_ref,
    wq2_ref, wk2_ref, wv2_ref, wo2_ref, ln2g_ref, ln2b_ref,
    fw1_ref, fb1_ref, fw2_ref, fb2_ref, ln3g_ref, ln3b_ref,
    out_ref, attn_ref,
    *, n_head, d_k, d_v):
    x = dec_ref[0].astype(jnp.float32)       # (Lq, D)
    enc = enc_ref[0].astype(jnp.float32)     # (Le, D)
    smask = smask_ref[0]                     # (Lq, Lq)
    emask = emask_ref[0]                     # (Lq, Le)

    # --- self-attention sublayer (attention probs not returned) ---
    x = _mha(x, x, smask,
             wq1_ref[...], wk1_ref[...], wv1_ref[...], wo1_ref[...],
             ln1g_ref[...], ln1b_ref[...], n_head, d_k, d_v)

    # --- decoder-encoder attention sublayer (probs returned) ---
    x = _mha(x, enc, emask,
             wq2_ref[...], wk2_ref[...], wv2_ref[...], wo2_ref[...],
             ln2g_ref[...], ln2b_ref[...], n_head, d_k, d_v,
             attn_out_ref=attn_ref)

    # --- position-wise feed-forward sublayer ---
    residual = x
    h = jnp.dot(x, fw1_ref[...], preferred_element_type=jnp.float32) + fb1_ref[...]
    h = jnp.maximum(h, 0.0)                  # ReLU
    y = jnp.dot(h, fw2_ref[...], preferred_element_type=jnp.float32) + fb2_ref[...]
    y = _layer_norm(y + residual, ln3g_ref[...], ln3b_ref[...])

    out_ref[0] = y.astype(out_ref.dtype)


# ------------------------------- wrapper -----------------------------------

def decoder_layer_forward(dec_input, enc_output, params, n_head, d_k, d_v,
                          slf_attn_mask=None, dec_enc_attn_mask=None):
    """Full DecoderLayer.forward.  Returns (dec_output, None, dec_enc_attn)."""
    B, Lq, D = dec_input.shape
    Le = enc_output.shape[1]
    Dff = params["ffn_w1"].shape[1]

    if slf_attn_mask is None:
        slf_attn_mask = jnp.ones((B, Lq, Lq), jnp.float32)
    if dec_enc_attn_mask is None:
        dec_enc_attn_mask = jnp.ones((B, Lq, Le), jnp.float32)
    slf_attn_mask = slf_attn_mask.astype(jnp.float32)
    dec_enc_attn_mask = dec_enc_attn_mask.astype(jnp.float32)

    def per_batch(shape):                       # one batch element per grid step
        nd = len(shape)
        return pl.BlockSpec((1,) + shape, lambda b: (b,) + (0,) * nd)

    def resident(shape):                        # weight: same block every step
        nd = len(shape)
        return pl.BlockSpec(shape, lambda b: (0,) * nd)

    in_specs = [
        per_batch((Lq, D)),                     # dec_input
        per_batch((Le, D)),                     # enc_output
        per_batch((Lq, Lq)),                    # slf_attn_mask
        per_batch((Lq, Le)),                    # dec_enc_attn_mask
        # self-attention
        resident((D, n_head * d_k)), resident((D, n_head * d_k)),
        resident((D, n_head * d_v)), resident((n_head * d_v, D)),
        resident((1, D)), resident((1, D)),
        # decoder-encoder attention
        resident((D, n_head * d_k)), resident((D, n_head * d_k)),
        resident((D, n_head * d_v)), resident((n_head * d_v, D)),
        resident((1, D)), resident((1, D)),
        # FFN
        resident((D, Dff)), resident((1, Dff)),
        resident((Dff, D)), resident((1, D)),
        resident((1, D)), resident((1, D)),
    ]
    out_specs = (
        per_batch((Lq, D)),                                   # dec_output
        pl.BlockSpec((1, n_head, Lq, Le), lambda b: (b, 0, 0, 0)),  # dec_enc_attn
    )

    kernel = functools.partial(_decoder_layer_kernel,
                               n_head=n_head, d_k=d_k, d_v=d_v)

    dec_out, dec_enc_attn = pl.pallas_call(
        kernel,
        out_shape=(
            jax.ShapeDtypeStruct((B, Lq, D), dec_input.dtype),
            jax.ShapeDtypeStruct((B, n_head, Lq, Le), jnp.float32),
        ),
        grid_spec=pltpu.PrefetchScalarGridSpec(
            num_scalar_prefetch=0,
            grid=(B,),
            in_specs=in_specs,
            out_specs=out_specs,
        ),
        compiler_params=pltpu.CompilerParams(
            dimension_semantics=("parallel",),
        ),
    )(dec_input, enc_output, slf_attn_mask, dec_enc_attn_mask,
      params["wq1"], params["wk1"], params["wv1"], params["wo1"],
      params["ln1_g"], params["ln1_b"],
      params["wq2"], params["wk2"], params["wv2"], params["wo2"],
      params["ln2_g"], params["ln2_b"],
      params["ffn_w1"], params["ffn_b1"], params["ffn_w2"], params["ffn_b2"],
      params["ln3_g"], params["ln3_b"])
    return dec_out, None, dec_enc_attn


# --------------------------- pure-JAX reference -----------------------------

def _ref_layer_norm(x, gamma, beta, eps=1e-6):
    mu = jnp.mean(x, axis=-1, keepdims=True)
    var = jnp.mean((x - mu) ** 2, axis=-1, keepdims=True)
    return (x - mu) / jnp.sqrt(var + eps) * gamma + beta


def _ref_mha(xq, xkv, mask, wq, wk, wv, wo, g, b, n_head, d_k, d_v):
    B, Lq, _ = xq.shape
    Lk = xkv.shape[1]
    residual = xq
    q = (xq @ wq).reshape(B, Lq, n_head, d_k).transpose(0, 2, 1, 3)
    k = (xkv @ wk).reshape(B, Lk, n_head, d_k).transpose(0, 2, 1, 3)
    v = (xkv @ wv).reshape(B, Lk, n_head, d_v).transpose(0, 2, 1, 3)
    s = jnp.einsum("bhqd,bhkd->bhqk", q / np.sqrt(d_k), k)
    s = jnp.where(mask[:, None, :, :] == 0, -1e9, s)
    p = jax.nn.softmax(s, axis=-1)
    o = jnp.einsum("bhqk,bhkd->bhqd", p, v)
    o = o.transpose(0, 2, 1, 3).reshape(B, Lq, n_head * d_v)
    o = o @ wo + residual
    return _ref_layer_norm(o, g, b), p


# ---------------------------------- main ------------------------------------

if __name__ == "__main__":
    # Small, TPU-friendly shapes (lanes = d_model = 128, sublanes = seq).
    d_model, d_inner = 128, 256
    n_head, d_k, d_v = 4, 32, 32
    B, Lq, Le = 2, 8, 16

    key = jax.random.PRNGKey(0)
    ks = jax.random.split(key, 24)

    def lin(k, fan_in, shape):
        bound = 1.0 / np.sqrt(fan_in)
        return jax.random.uniform(k, shape, jnp.float32, -bound, bound)

    params = {
        # self-attention (projections bias-free, as in the original SubLayers)
        "wq1": lin(ks[0], d_model, (d_model, n_head * d_k)),
        "wk1": lin(ks[1], d_model, (d_model, n_head * d_k)),
        "wv1": lin(ks[2], d_model, (d_model, n_head * d_v)),
        "wo1": lin(ks[3], n_head * d_v, (n_head * d_v, d_model)),
        "ln1_g": 1.0 + 0.1 * jax.random.normal(ks[4], (1, d_model), jnp.float32),
        "ln1_b": 0.1 * jax.random.normal(ks[5], (1, d_model), jnp.float32),
        # decoder-encoder attention
        "wq2": lin(ks[6], d_model, (d_model, n_head * d_k)),
        "wk2": lin(ks[7], d_model, (d_model, n_head * d_k)),
        "wv2": lin(ks[8], d_model, (d_model, n_head * d_v)),
        "wo2": lin(ks[9], n_head * d_v, (n_head * d_v, d_model)),
        "ln2_g": 1.0 + 0.1 * jax.random.normal(ks[10], (1, d_model), jnp.float32),
        "ln2_b": 0.1 * jax.random.normal(ks[11], (1, d_model), jnp.float32),
        # position-wise FFN
        "ffn_w1": lin(ks[12], d_model, (d_model, d_inner)),
        "ffn_b1": lin(ks[13], d_model, (1, d_inner)),
        "ffn_w2": lin(ks[14], d_inner, (d_inner, d_model)),
        "ffn_b2": lin(ks[15], d_inner, (1, d_model)),
        "ln3_g": 1.0 + 0.1 * jax.random.normal(ks[16], (1, d_model), jnp.float32),
        "ln3_b": 0.1 * jax.random.normal(ks[17], (1, d_model), jnp.float32),
    }

    dec_input = jax.random.normal(ks[18], (B, Lq, d_model), jnp.float32)
    enc_output = jax.random.normal(ks[19], (B, Le, d_model), jnp.float32)
    # Causal mask for self-attention; no masking for decoder-encoder attention.
    slf_mask = jnp.broadcast_to(jnp.tril(jnp.ones((Lq, Lq), jnp.float32)),
                                (B, Lq, Lq))
    enc_mask = jnp.ones((B, Lq, Le), jnp.float32)

    dec_out, none_attn, dec_enc_attn = decoder_layer_forward(
        dec_input, enc_output, params, n_head, d_k, d_v,
        slf_attn_mask=slf_mask, dec_enc_attn_mask=enc_mask)
    dec_out = jax.block_until_ready(dec_out)
    dec_enc_attn = jax.block_until_ready(dec_enc_attn)

    # Reference (dropout is identity in eval mode).
    x_ref, _ = _ref_mha(dec_input, dec_input, slf_mask,
                        params["wq1"], params["wk1"], params["wv1"], params["wo1"],
                        params["ln1_g"], params["ln1_b"], n_head, d_k, d_v)
    x_ref, attn_ref = _ref_mha(x_ref, enc_output, enc_mask,
                               params["wq2"], params["wk2"], params["wv2"], params["wo2"],
                               params["ln2_g"], params["ln2_b"], n_head, d_k, d_v)
    h_ref = jnp.maximum(x_ref @ params["ffn_w1"] + params["ffn_b1"], 0.0)
    y_ref = h_ref @ params["ffn_w2"] + params["ffn_b2"]
    y_ref = _ref_layer_norm(y_ref + x_ref, params["ln3_g"], params["ln3_b"])

    assert dec_out.shape == (B, Lq, d_model), dec_out.shape
    assert none_attn is None
    assert dec_enc_attn.shape == (B, n_head, Lq, Le), dec_enc_attn.shape
    # Tolerance accounts for default (bf16-pass) MXU precision on f32 operands
    # vs. XLA's own default for the reference matmuls.
    np.testing.assert_allclose(np.asarray(dec_out), np.asarray(y_ref),
                               rtol=2e-2, atol=2e-2)
    np.testing.assert_allclose(np.asarray(dec_enc_attn), np.asarray(attn_ref),
                               rtol=2e-2, atol=2e-2)

    print("KERNEL_OK")
</pallas_src>

<mosaic_0001>
module attributes {stable_mosaic.version = 11 : i64} {
  func.func @_decoder_layer_kernel(%arg0: i32, %arg1: memref<1x8x128xf32, #tpu.memory_space<vmem>>, %arg2: memref<1x16x128xf32, #tpu.memory_space<vmem>>, %arg3: memref<1x8x8xf32, #tpu.memory_space<vmem>>, %arg4: memref<1x8x16xf32, #tpu.memory_space<vmem>>, %arg5: memref<128x128xf32, #tpu.memory_space<vmem>>, %arg6: memref<128x128xf32, #tpu.memory_space<vmem>>, %arg7: memref<128x128xf32, #tpu.memory_space<vmem>>, %arg8: memref<128x128xf32, #tpu.memory_space<vmem>>, %arg9: memref<1x128xf32, #tpu.memory_space<vmem>>, %arg10: memref<1x128xf32, #tpu.memory_space<vmem>>, %arg11: memref<128x128xf32, #tpu.memory_space<vmem>>, %arg12: memref<128x128xf32, #tpu.memory_space<vmem>>, %arg13: memref<128x128xf32, #tpu.memory_space<vmem>>, %arg14: memref<128x128xf32, #tpu.memory_space<vmem>>, %arg15: memref<1x128xf32, #tpu.memory_space<vmem>>, %arg16: memref<1x128xf32, #tpu.memory_space<vmem>>, %arg17: memref<128x256xf32, #tpu.memory_space<vmem>>, %arg18: memref<1x256xf32, #tpu.memory_space<vmem>>, %arg19: memref<256x128xf32, #tpu.memory_space<vmem>>, %arg20: memref<1x128xf32, #tpu.memory_space<vmem>>, %arg21: memref<1x128xf32, #tpu.memory_space<vmem>>, %arg22: memref<1x128xf32, #tpu.memory_space<vmem>>, %arg23: memref<1x8x128xf32, #tpu.memory_space<vmem>>, %arg24: memref<1x4x8x16xf32, #tpu.memory_space<vmem>>) attributes {dimension_semantics = [#tpu.dimension_semantics<parallel>], iteration_bounds = array<i64: 2>, scalar_prefetch = 0 : i64, scratch_operands = 0 : i64, tpu.core_type = #tpu.core_type<tc>, window_params = [{transform_indices = @transform_0, window_bounds = array<i64: 1, 8, 128>}, {transform_indices = @transform_1, window_bounds = array<i64: 1, 16, 128>}, {transform_indices = @transform_2, window_bounds = array<i64: 1, 8, 8>}, {transform_indices = @transform_3, window_bounds = array<i64: 1, 8, 16>}, {pipeline_mode = #tpu.pipeline_mode<synchronous>, transform_indices = @transform_4, window_bounds = array<i64: 128, 128>}, {pipeline_mode = #tpu.pipeline_mode<synchronous>, transform_indices = @transform_5, window_bounds = array<i64: 128, 128>}, {pipeline_mode = #tpu.pipeline_mode<synchronous>, transform_indices = @transform_6, window_bounds = array<i64: 128, 128>}, {pipeline_mode = #tpu.pipeline_mode<synchronous>, transform_indices = @transform_7, window_bounds = array<i64: 128, 128>}, {pipeline_mode = #tpu.pipeline_mode<synchronous>, transform_indices = @transform_8, window_bounds = array<i64: 1, 128>}, {pipeline_mode = #tpu.pipeline_mode<synchronous>, transform_indices = @transform_9, window_bounds = array<i64: 1, 128>}, {pipeline_mode = #tpu.pipeline_mode<synchronous>, transform_indices = @transform_10, window_bounds = array<i64: 128, 128>}, {pipeline_mode = #tpu.pipeline_mode<synchronous>, transform_indices = @transform_11, window_bounds = array<i64: 128, 128>}, {pipeline_mode = #tpu.pipeline_mode<synchronous>, transform_indices = @transform_12, window_bounds = array<i64: 128, 128>}, {pipeline_mode = #tpu.pipeline_mode<synchronous>, transform_indices = @transform_13, window_bounds = array<i64: 128, 128>}, {pipeline_mode = #tpu.pipeline_mode<synchronous>, transform_indices = @transform_14, window_bounds = array<i64: 1, 128>}, {pipeline_mode = #tpu.pipeline_mode<synchronous>, transform_indices = @transform_15, window_bounds = array<i64: 1, 128>}, {pipeline_mode = #tpu.pipeline_mode<synchronous>, transform_indices = @transform_16, window_bounds = array<i64: 128, 256>}, {pipeline_mode = #tpu.pipeline_mode<synchronous>, transform_indices = @transform_17, window_bounds = array<i64: 1, 256>}, {pipeline_mode = #tpu.pipeline_mode<synchronous>, transform_indices = @transform_18, window_bounds = array<i64: 256, 128>}, {pipeline_mode = #tpu.pipeline_mode<synchronous>, transform_indices = @transform_19, window_bounds = array<i64: 1, 128>}, {pipeline_mode = #tpu.pipeline_mode<synchronous>, transform_indices = @transform_20, window_bounds = array<i64: 1, 128>}, {pipeline_mode = #tpu.pipeline_mode<synchronous>, transform_indices = @transform_21, window_bounds = array<i64: 1, 128>}, {transform_indices = @transform_22, window_bounds = array<i64: 1, 8, 128>}, {transform_indices = @transform_23, window_bounds = array<i64: 1, 4, 8, 16>}]} {
    %c0 = arith.constant 0 : index
    %c0_0 = arith.constant 0 : index
    %c0_1 = arith.constant 0 : index
    %0 = vector.load %arg1[%c0, %c0_0, %c0_1] : memref<1x8x128xf32, #tpu.memory_space<vmem>>, vector<1x8x128xf32>
    %1 = vector.shape_cast %0 : vector<1x8x128xf32> to vector<8x128xf32>
    %c0_2 = arith.constant 0 : index
    %c0_3 = arith.constant 0 : index
    %c0_4 = arith.constant 0 : index
    %2 = vector.load %arg2[%c0_2, %c0_3, %c0_4] : memref<1x16x128xf32, #tpu.memory_space<vmem>>, vector<1x16x128xf32>
    %3 = vector.shape_cast %2 : vector<1x16x128xf32> to vector<16x128xf32>
    %c0_5 = arith.constant 0 : index
    %c0_6 = arith.constant 0 : index
    %c0_7 = arith.constant 0 : index
    %4 = vector.load %arg3[%c0_5, %c0_6, %c0_7] : memref<1x8x8xf32, #tpu.memory_space<vmem>>, vector<1x8x8xf32>
    %5 = vector.shape_cast %4 : vector<1x8x8xf32> to vector<8x8xf32>
    %c0_8 = arith.constant 0 : index
    %c0_9 = arith.constant 0 : index
    %c0_10 = arith.constant 0 : index
    %6 = vector.load %arg4[%c0_8, %c0_9, %c0_10] : memref<1x8x16xf32, #tpu.memory_space<vmem>>, vector<1x8x16xf32>
    %7 = vector.shape_cast %6 : vector<1x8x16xf32> to vector<8x16xf32>
    %c0_11 = arith.constant 0 : index
    %c0_12 = arith.constant 0 : index
    %8 = vector.load %arg5[%c0_11, %c0_12] : memref<128x128xf32, #tpu.memory_space<vmem>>, vector<128x128xf32>
    %c0_13 = arith.constant 0 : index
    %c0_14 = arith.constant 0 : index
    %9 = vector.load %arg6[%c0_13, %c0_14] : memref<128x128xf32, #tpu.memory_space<vmem>>, vector<128x128xf32>
    %c0_15 = arith.constant 0 : index
    %c0_16 = arith.constant 0 : index
    %10 = vector.load %arg7[%c0_15, %c0_16] : memref<128x128xf32, #tpu.memory_space<vmem>>, vector<128x128xf32>
    %c0_17 = arith.constant 0 : index
    %c0_18 = arith.constant 0 : index
    %11 = vector.load %arg8[%c0_17, %c0_18] : memref<128x128xf32, #tpu.memory_space<vmem>>, vector<128x128xf32>
    %c0_19 = arith.constant 0 : index
    %c0_20 = arith.constant 0 : index
    %12 = vector.load %arg9[%c0_19, %c0_20] : memref<1x128xf32, #tpu.memory_space<vmem>>, vector<1x128xf32>
    %c0_21 = arith.constant 0 : index
    %c0_22 = arith.constant 0 : index
    %13 = vector.load %arg10[%c0_21, %c0_22] : memref<1x128xf32, #tpu.memory_space<vmem>>, vector<1x128xf32>
    %cst = arith.constant dense<0.000000e+00> : vector<8x128xf32>
    %14 = tpu.matmul %1, %8, %cst {dimension_numbers = #tpu.dot_dimension_numbers<[1], [0], [0], [1], [0, 0, 1, 1], [], []>} : vector<8x128xf32>, vector<128x128xf32>, vector<8x128xf32> -> vector<8x128xf32>
    %cst_23 = arith.constant dense<0.000000e+00> : vector<8x128xf32>
    %15 = tpu.matmul %1, %9, %cst_23 {dimension_numbers = #tpu.dot_dimension_numbers<[1], [0], [0], [1], [0, 0, 1, 1], [], []>} : vector<8x128xf32>, vector<128x128xf32>, vector<8x128xf32> -> vector<8x128xf32>
    %cst_24 = arith.constant dense<0.000000e+00> : vector<8x128xf32>
    %16 = tpu.matmul %1, %10, %cst_24 {dimension_numbers = #tpu.dot_dimension_numbers<[1], [0], [0], [1], [0, 0, 1, 1], [], []>} : vector<8x128xf32>, vector<128x128xf32>, vector<8x128xf32> -> vector<8x128xf32>
    %cst_25 = arith.constant 0.000000e+00 : f32
    %17 = vector.broadcast %cst_25 : f32 to vector<8x128xf32>
    %18 = vector.extract_strided_slice %14 {offsets = [0, 0], sizes = [8, 32], strides = [1, 1]} : vector<8x128xf32> to vector<8x32xf32>
    %cst_26 = arith.constant 0.176776692 : f32
    %19 = vector.broadcast %cst_26 : f32 to vector<8x32xf32>
    %20 = arith.mulf %18, %19 : vector<8x32xf32>
    %21 = vector.extract_strided_slice %15 {offsets = [0, 0], sizes = [8, 32], strides = [1, 1]} : vector<8x128xf32> to vector<8x32xf32>
    %22 = vector.extract_strided_slice %16 {offsets = [0, 0], sizes = [8, 32], strides = [1, 1]} : vector<8x128xf32> to vector<8x32xf32>
    %cst_27 = arith.constant dense<0.000000e+00> : vector<8x8xf32>
    %23 = tpu.matmul %20, %21, %cst_27 {dimension_numbers = #tpu.dot_dimension_numbers<[1], [1], [0], [0], [0, 0, 1, 0], [], []>} : vector<8x32xf32>, vector<8x32xf32>, vector<8x8xf32> -> vector<8x8xf32>
    %cst_28 = arith.constant 0.000000e+00 : f32
    %24 = vector.broadcast %cst_28 : f32 to vector<8x8xf32>
    %25 = arith.cmpf oeq, %5, %24 : vector<8x8xf32>
    %cst_29 = arith.constant -1.000000e+09 : f32
    %26 = vector.broadcast %cst_29 : f32 to vector<8x8xf32>
    %27 = arith.select %25, %26, %23 : vector<8x8xi1>, vector<8x8xf32>
    %cst_30 = arith.constant dense<0xFF800000> : vector<8xf32>
    %28 = vector.multi_reduction <maximumf>, %27, %cst_30 [1] : vector<8x8xf32> to vector<8xf32>
    %29 = vector.shape_cast %28 : vector<8xf32> to vector<8x1xf32>
    %30 = vector.broadcast %29 : vector<8x1xf32> to vector<8x8xf32>
    %31 = arith.subf %27, %30 : vector<8x8xf32>
    %32 = math.exp %31 : vector<8x8xf32>
    %cst_31 = arith.constant dense<0.000000e+00> : vector<8xf32>
    %33 = vector.multi_reduction <add>, %32, %cst_31 [1] : vector<8x8xf32> to vector<8xf32>
    %34 = vector.shape_cast %33 : vector<8xf32> to vector<8x1xf32>
    %35 = vector.broadcast %34 : vector<8x1xf32> to vector<8x8xf32>
    %36 = arith.divf %32, %35 : vector<8x8xf32>
    %cst_32 = arith.constant dense<0.000000e+00> : vector<8x32xf32>
    %37 = tpu.matmul %36, %22, %cst_32 {dimension_numbers = #tpu.dot_dimension_numbers<[1], [0], [0], [1], [0, 0, 1, 1], [], []>} : vector<8x8xf32>, vector<8x32xf32>, vector<8x32xf32> -> vector<8x32xf32>
    %38 = vector.extract_strided_slice %11 {offsets = [0, 0], sizes = [32, 128], strides = [1, 1]} : vector<128x128xf32> to vector<32x128xf32>
    %cst_33 = arith.constant dense<0.000000e+00> : vector<8x128xf32>
    %39 = tpu.matmul %37, %38, %cst_33 {dimension_numbers = #tpu.dot_dimension_numbers<[1], [0], [0], [1], [0, 0, 1, 1], [], []>} : vector<8x32xf32>, vector<32x128xf32>, vector<8x128xf32> -> vector<8x128xf32>
    %40 = arith.addf %17, %39 : vector<8x128xf32>
    %41 = vector.extract_strided_slice %14 {offsets = [0, 32], sizes = [8, 32], strides = [1, 1]} : vector<8x128xf32> to vector<8x32xf32>
    %cst_34 = arith.constant 0.176776692 : f32
    %42 = vector.broadcast %cst_34 : f32 to vector<8x32xf32>
    %43 = arith.mulf %41, %42 : vector<8x32xf32>
    %44 = vector.extract_strided_slice %15 {offsets = [0, 32], sizes = [8, 32], strides = [1, 1]} : vector<8x128xf32> to vector<8x32xf32>
    %45 = vector.extract_strided_slice %16 {offsets = [0, 32], sizes = [8, 32], strides = [1, 1]} : vector<8x128xf32> to vector<8x32xf32>
    %cst_35 = arith.constant dense<0.000000e+00> : vector<8x8xf32>
    %46 = tpu.matmul %43, %44, %cst_35 {dimension_numbers = #tpu.dot_dimension_numbers<[1], [1], [0], [0], [0, 0, 1, 0], [], []>} : vector<8x32xf32>, vector<8x32xf32>, vector<8x8xf32> -> vector<8x8xf32>
    %cst_36 = arith.constant 0.000000e+00 : f32
    %47 = vector.broadcast %cst_36 : f32 to vector<8x8xf32>
    %48 = arith.cmpf oeq, %5, %47 : vector<8x8xf32>
    %cst_37 = arith.constant -1.000000e+09 : f32
    %49 = vector.broadcast %cst_37 : f32 to vector<8x8xf32>
    %50 = arith.select %48, %49, %46 : vector<8x8xi1>, vector<8x8xf32>
    %cst_38 = arith.constant dense<0xFF800000> : vector<8xf32>
    %51 = vector.multi_reduction <maximumf>, %50, %cst_38 [1] : vector<8x8xf32> to vector<8xf32>
    %52 = vector.shape_cast %51 : vector<8xf32> to vector<8x1xf32>
    %53 = vector.broadcast %52 : vector<8x1xf32> to vector<8x8xf32>
    %54 = arith.subf %50, %53 : vector<8x8xf32>
    %55 = math.exp %54 : vector<8x8xf32>
    %cst_39 = arith.constant dense<0.000000e+00> : vector<8xf32>
    %56 = vector.multi_reduction <add>, %55, %cst_39 [1] : vector<8x8xf32> to vector<8xf32>
    %57 = vector.shape_cast %56 : vector<8xf32> to vector<8x1xf32>
    %58 = vector.broadcast %57 : vector<8x1xf32> to vector<8x8xf32>
    %59 = arith.divf %55, %58 : vector<8x8xf32>
    %cst_40 = arith.constant dense<0.000000e+00> : vector<8x32xf32>
    %60 = tpu.matmul %59, %45, %cst_40 {dimension_numbers = #tpu.dot_dimension_numbers<[1], [0], [0], [1], [0, 0, 1, 1], [], []>} : vector<8x8xf32>, vector<8x32xf32>, vector<8x32xf32> -> vector<8x32xf32>
    %61 = vector.extract_strided_slice %11 {offsets = [32, 0], sizes = [32, 128], strides = [1, 1]} : vector<128x128xf32> to vector<32x128xf32>
    %cst_41 = arith.constant dense<0.000000e+00> : vector<8x128xf32>
    %62 = tpu.matmul %60, %61, %cst_41 {dimension_numbers = #tpu.dot_dimension_numbers<[1], [0], [0], [1], [0, 0, 1, 1], [], []>} : vector<8x32xf32>, vector<32x128xf32>, vector<8x128xf32> -> vector<8x128xf32>
    %63 = arith.addf %40, %62 : vector<8x128xf32>
    %64 = vector.extract_strided_slice %14 {offsets = [0, 64], sizes = [8, 32], strides = [1, 1]} : vector<8x128xf32> to vector<8x32xf32>
    %cst_42 = arith.constant 0.176776692 : f32
    %65 = vector.broadcast %cst_42 : f32 to vector<8x32xf32>
    %66 = arith.mulf %64, %65 : vector<8x32xf32>
    %67 = vector.extract_strided_slice %15 {offsets = [0, 64], sizes = [8, 32], strides = [1, 1]} : vector<8x128xf32> to vector<8x32xf32>
    %68 = vector.extract_strided_slice %16 {offsets = [0, 64], sizes = [8, 32], strides = [1, 1]} : vector<8x128xf32> to vector<8x32xf32>
    %cst_43 = arith.constant dense<0.000000e+00> : vector<8x8xf32>
    %69 = tpu.matmul %66, %67, %cst_43 {dimension_numbers = #tpu.dot_dimension_numbers<[1], [1], [0], [0], [0, 0, 1, 0], [], []>} : vector<8x32xf32>, vector<8x32xf32>, vector<8x8xf32> -> vector<8x8xf32>
    %cst_44 = arith.constant 0.000000e+00 : f32
    %70 = vector.broadcast %cst_44 : f32 to vector<8x8xf32>
    %71 = arith.cmpf oeq, %5, %70 : vector<8x8xf32>
    %cst_45 = arith.constant -1.000000e+09 : f32
    %72 = vector.broadcast %cst_45 : f32 to vector<8x8xf32>
    %73 = arith.select %71, %72, %69 : vector<8x8xi1>, vector<8x8xf32>
    %cst_46 = arith.constant dense<0xFF800000> : vector<8xf32>
    %74 = vector.multi_reduction <maximumf>, %73, %cst_46 [1] : vector<8x8xf32> to vector<8xf32>
    %75 = vector.shape_cast %74 : vector<8xf32> to vector<8x1xf32>
    %76 = vector.broadcast %75 : vector<8x1xf32> to vector<8x8xf32>
    %77 = arith.subf %73, %76 : vector<8x8xf32>
    %78 = math.exp %77 : vector<8x8xf32>
    %cst_47 = arith.constant dense<0.000000e+00> : vector<8xf32>
    %79 = vector.multi_reduction <add>, %78, %cst_47 [1] : vector<8x8xf32> to vector<8xf32>
    %80 = vector.shape_cast %79 : vector<8xf32> to vector<8x1xf32>
    %81 = vector.broadcast %80 : vector<8x1xf32> to vector<8x8xf32>
    %82 = arith.divf %78, %81 : vector<8x8xf32>
    %cst_48 = arith.constant dense<0.000000e+00> : vector<8x32xf32>
    %83 = tpu.matmul %82, %68, %cst_48 {dimension_numbers = #tpu.dot_dimension_numbers<[1], [0], [0], [1], [0, 0, 1, 1], [], []>} : vector<8x8xf32>, vector<8x32xf32>, vector<8x32xf32> -> vector<8x32xf32>
    %84 = vector.extract_strided_slice %11 {offsets = [64, 0], sizes = [32, 128], strides = [1, 1]} : vector<128x128xf32> to vector<32x128xf32>
    %cst_49 = arith.constant dense<0.000000e+00> : vector<8x128xf32>
    %85 = tpu.matmul %83, %84, %cst_49 {dimension_numbers = #tpu.dot_dimension_numbers<[1], [0], [0], [1], [0, 0, 1, 1], [], []>} : vector<8x32xf32>, vector<32x128xf32>, vector<8x128xf32> -> vector<8x128xf32>
    %86 = arith.addf %63, %85 : vector<8x128xf32>
    %87 = vector.extract_strided_slice %14 {offsets = [0, 96], sizes = [8, 32], strides = [1, 1]} : vector<8x128xf32> to vector<8x32xf32>
    %cst_50 = arith.constant 0.176776692 : f32
    %88 = vector.broadcast %cst_50 : f32 to vector<8x32xf32>
    %89 = arith.mulf %87, %88 : vector<8x32xf32>
    %90 = vector.extract_strided_slice %15 {offsets = [0, 96], sizes = [8, 32], strides = [1, 1]} : vector<8x128xf32> to vector<8x32xf32>
    %91 = vector.extract_strided_slice %16 {offsets = [0, 96], sizes = [8, 32], strides = [1, 1]} : vector<8x128xf32> to vector<8x32xf32>
    %cst_51 = arith.constant dense<0.000000e+00> : vector<8x8xf32>
    %92 = tpu.matmul %89, %90, %cst_51 {dimension_numbers = #tpu.dot_dimension_numbers<[1], [1], [0], [0], [0, 0, 1, 0], [], []>} : vector<8x32xf32>, vector<8x32xf32>, vector<8x8xf32> -> vector<8x8xf32>
    %cst_52 = arith.constant 0.000000e+00 : f32
    %93 = vector.broadcast %cst_52 : f32 to vector<8x8xf32>
    %94 = arith.cmpf oeq, %5, %93 : vector<8x8xf32>
    %cst_53 = arith.constant -1.000000e+09 : f32
    %95 = vector.broadcast %cst_53 : f32 to vector<8x8xf32>
    %96 = arith.select %94, %95, %92 : vector<8x8xi1>, vector<8x8xf32>
    %cst_54 = arith.constant dense<0xFF800000> : vector<8xf32>
    %97 = vector.multi_reduction <maximumf>, %96, %cst_54 [1] : vector<8x8xf32> to vector<8xf32>
    %98 = vector.shape_cast %97 : vector<8xf32> to vector<8x1xf32>
    %99 = vector.broadcast %98 : vector<8x1xf32> to vector<8x8xf32>
    %100 = arith.subf %96, %99 : vector<8x8xf32>
    %101 = math.exp %100 : vector<8x8xf32>
    %cst_55 = arith.constant dense<0.000000e+00> : vector<8xf32>
    %102 = vector.multi_reduction <add>, %101, %cst_55 [1] : vector<8x8xf32> to vector<8xf32>
    %103 = vector.shape_cast %102 : vector<8xf32> to vector<8x1xf32>
    %104 = vector.broadcast %103 : vector<8x1xf32> to vector<8x8xf32>
    %105 = arith.divf %101, %104 : vector<8x8xf32>
    %cst_56 = arith.constant dense<0.000000e+00> : vector<8x32xf32>
    %106 = tpu.matmul %105, %91, %cst_56 {dimension_numbers = #tpu.dot_dimension_numbers<[1], [0], [0], [1], [0, 0, 1, 1], [], []>} : vector<8x8xf32>, vector<8x32xf32>, vector<8x32xf32> -> vector<8x32xf32>
    %107 = vector.extract_strided_slice %11 {offsets = [96, 0], sizes = [32, 128], strides = [1, 1]} : vector<128x128xf32> to vector<32x128xf32>
    %cst_57 = arith.constant dense<0.000000e+00> : vector<8x128xf32>
    %108 = tpu.matmul %106, %107, %cst_57 {dimension_numbers = #tpu.dot_dimension_numbers<[1], [0], [0], [1], [0, 0, 1, 1], [], []>} : vector<8x32xf32>, vector<32x128xf32>, vector<8x128xf32> -> vector<8x128xf32>
    %109 = arith.addf %86, %108 : vector<8x128xf32>
    %110 = arith.addf %109, %1 : vector<8x128xf32>
    %cst_58 = arith.constant dense<0.000000e+00> : vector<8xf32>
    %111 = vector.multi_reduction <add>, %110, %cst_58 [1] : vector<8x128xf32> to vector<8xf32>
    %112 = vector.shape_cast %111 : vector<8xf32> to vector<8x1xf32>
    %cst_59 = arith.constant 1.280000e+02 : f32
    %113 = vector.broadcast %cst_59 : f32 to vector<8x1xf32>
    %114 = arith.divf %112, %113 : vector<8x1xf32>
    %115 = vector.broadcast %114 : vector<8x1xf32> to vector<8x128xf32>
    %116 = arith.subf %110, %115 : vector<8x128xf32>
    %117 = arith.mulf %116, %116 : vector<8x128xf32>
    %cst_60 = arith.constant dense<0.000000e+00> : vector<8xf32>
    %118 = vector.multi_reduction <add>, %117, %cst_60 [1] : vector<8x128xf32> to vector<8xf32>
    %119 = vector.shape_cast %118 : vector<8xf32> to vector<8x1xf32>
    %cst_61 = arith.constant 1.280000e+02 : f32
    %120 = vector.broadcast %cst_61 : f32 to vector<8x1xf32>
    %121 = arith.divf %119, %120 : vector<8x1xf32>
    %cst_62 = arith.constant 9.99999997E-7 : f32
    %122 = vector.broadcast %cst_62 : f32 to vector<8x1xf32>
    %123 = arith.addf %121, %122 : vector<8x1xf32>
    %124 = math.rsqrt %123 : vector<8x1xf32>
    %125 = vector.broadcast %124 : vector<8x1xf32> to vector<8x128xf32>
    %126 = arith.mulf %116, %125 : vector<8x128xf32>
    %127 = vector.broadcast %12 : vector<1x128xf32> to vector<8x128xf32>
    %128 = arith.mulf %126, %127 : vector<8x128xf32>
    %129 = vector.broadcast %13 : vector<1x128xf32> to vector<8x128xf32>
    %130 = arith.addf %128, %129 : vector<8x128xf32>
    %c0_63 = arith.constant 0 : index
    %c0_64 = arith.constant 0 : index
    %131 = vector.load %arg11[%c0_63, %c0_64] : memref<128x128xf32, #tpu.memory_space<vmem>>, vector<128x128xf32>
    %c0_65 = arith.constant 0 : index
    %c0_66 = arith.constant 0 : index
    %132 = vector.load %arg12[%c0_65, %c0_66] : memref<128x128xf32, #tpu.memory_space<vmem>>, vector<128x128xf32>
    %c0_67 = arith.constant 0 : index
    %c0_68 = arith.constant 0 : index
    %133 = vector.load %arg13[%c0_67, %c0_68] : memref<128x128xf32, #tpu.memory_space<vmem>>, vector<128x128xf32>
    %c0_69 = arith.constant 0 : index
    %c0_70 = arith.constant 0 : index
    %134 = vector.load %arg14[%c0_69, %c0_70] : memref<128x128xf32, #tpu.memory_space<vmem>>, vector<128x128xf32>
    %c0_71 = arith.constant 0 : index
    %c0_72 = arith.constant 0 : index
    %135 = vector.load %arg15[%c0_71, %c0_72] : memref<1x128xf32, #tpu.memory_space<vmem>>, vector<1x128xf32>
    %c0_73 = arith.constant 0 : index
    %c0_74 = arith.constant 0 : index
    %136 = vector.load %arg16[%c0_73, %c0_74] : memref<1x128xf32, #tpu.memory_space<vmem>>, vector<1x128xf32>
    %cst_75 = arith.constant dense<0.000000e+00> : vector<8x128xf32>
    %137 = tpu.matmul %130, %131, %cst_75 {dimension_numbers = #tpu.dot_dimension_numbers<[1], [0], [0], [1], [0, 0, 1, 1], [], []>} : vector<8x128xf32>, vector<128x128xf32>, vector<8x128xf32> -> vector<8x128xf32>
    %cst_76 = arith.constant dense<0.000000e+00> : vector<16x128xf32>
    %138 = tpu.matmul %3, %132, %cst_76 {dimension_numbers = #tpu.dot_dimension_numbers<[1], [0], [0], [1], [0, 0, 1, 1], [], []>} : vector<16x128xf32>, vector<128x128xf32>, vector<16x128xf32> -> vector<16x128xf32>
    %cst_77 = arith.constant dense<0.000000e+00> : vector<16x128xf32>
    %139 = tpu.matmul %3, %133, %cst_77 {dimension_numbers = #tpu.dot_dimension_numbers<[1], [0], [0], [1], [0, 0, 1, 1], [], []>} : vector<16x128xf32>, vector<128x128xf32>, vector<16x128xf32> -> vector<16x128xf32>
    %cst_78 = arith.constant 0.000000e+00 : f32
    %140 = vector.broadcast %cst_78 : f32 to vector<8x128xf32>
    %141 = vector.extract_strided_slice %137 {offsets = [0, 0], sizes = [8, 32], strides = [1, 1]} : vector<8x128xf32> to vector<8x32xf32>
    %cst_79 = arith.constant 0.176776692 : f32
    %142 = vector.broadcast %cst_79 : f32 to vector<8x32xf32>
    %143 = arith.mulf %141, %142 : vector<8x32xf32>
    %144 = vector.extract_strided_slice %138 {offsets = [0, 0], sizes = [16, 32], strides = [1, 1]} : vector<16x128xf32> to vector<16x32xf32>
    %145 = vector.extract_strided_slice %139 {offsets = [0, 0], sizes = [16, 32], strides = [1, 1]} : vector<16x128xf32> to vector<16x32xf32>
    %cst_80 = arith.constant dense<0.000000e+00> : vector<8x16xf32>
    %146 = tpu.matmul %143, %144, %cst_80 {dimension_numbers = #tpu.dot_dimension_numbers<[1], [1], [0], [0], [0, 0, 1, 0], [], []>} : vector<8x32xf32>, vector<16x32xf32>, vector<8x16xf32> -> vector<8x16xf32>
    %cst_81 = arith.constant 0.000000e+00 : f32
    %147 = vector.broadcast %cst_81 : f32 to vector<8x16xf32>
    %148 = arith.cmpf oeq, %7, %147 : vector<8x16xf32>
    %cst_82 = arith.constant -1.000000e+09 : f32
    %149 = vector.broadcast %cst_82 : f32 to vector<8x16xf32>
    %150 = arith.select %148, %149, %146 : vector<8x16xi1>, vector<8x16xf32>
    %cst_83 = arith.constant dense<0xFF800000> : vector<8xf32>
    %151 = vector.multi_reduction <maximumf>, %150, %cst_83 [1] : vector<8x16xf32> to vector<8xf32>
    %152 = vector.shape_cast %151 : vector<8xf32> to vector<8x1xf32>
    %153 = vector.broadcast %152 : vector<8x1xf32> to vector<8x16xf32>
    %154 = arith.subf %150, %153 : vector<8x16xf32>
    %155 = math.exp %154 : vector<8x16xf32>
    %cst_84 = arith.constant dense<0.000000e+00> : vector<8xf32>
    %156 = vector.multi_reduction <add>, %155, %cst_84 [1] : vector<8x16xf32> to vector<8xf32>
    %157 = vector.shape_cast %156 : vector<8xf32> to vector<8x1xf32>
    %158 = vector.broadcast %157 : vector<8x1xf32> to vector<8x16xf32>
    %159 = arith.divf %155, %158 : vector<8x16xf32>
    %c0_85 = arith.constant 0 : index
    %c0_86 = arith.constant 0 : index
    %c0_87 = arith.constant 0 : index
    %c0_88 = arith.constant 0 : index
    %160 = vector.load %arg24[%c0_85, %c0_86, %c0_87, %c0_88] : memref<1x4x8x16xf32, #tpu.memory_space<vmem>>, vector<1x1x8x16xf32>
    %161 = vector.shape_cast %160 : vector<1x1x8x16xf32> to vector<8x16xf32>
    %162 = vector.shape_cast %159 : vector<8x16xf32> to vector<1x1x8x16xf32>
    tpu.vector_store %arg24[%c0_85, %c0_86, %c0_87, %c0_88], %162 {strides = array<i32>} : memref<1x4x8x16xf32, #tpu.memory_space<vmem>>, vector<1x1x8x16xf32>,
    %cst_89 = arith.constant dense<0.000000e+00> : vector<8x32xf32>
    %163 = tpu.matmul %159, %145, %cst_89 {dimension_numbers = #tpu.dot_dimension_numbers<[1], [0], [0], [1], [0, 0, 1, 1], [], []>} : vector<8x16xf32>, vector<16x32xf32>, vector<8x32xf32> -> vector<8x32xf32>
    %164 = vector.extract_strided_slice %134 {offsets = [0, 0], sizes = [32, 128], strides = [1, 1]} : vector<128x128xf32> to vector<32x128xf32>
    %cst_90 = arith.constant dense<0.000000e+00> : vector<8x128xf32>
    %165 = tpu.matmul %163, %164, %cst_90 {dimension_numbers = #tpu.dot_dimension_numbers<[1], [0], [0], [1], [0, 0, 1, 1], [], []>} : vector<8x32xf32>, vector<32x128xf32>, vector<8x128xf32> -> vector<8x128xf32>
    %166 = arith.addf %140, %165 : vector<8x128xf32>
    %167 = vector.extract_strided_slice %137 {offsets = [0, 32], sizes = [8, 32], strides = [1, 1]} : vector<8x128xf32> to vector<8x32xf32>
    %cst_91 = arith.constant 0.176776692 : f32
    %168 = vector.broadcast %cst_91 : f32 to vector<8x32xf32>
    %169 = arith.mulf %167, %168 : vector<8x32xf32>
    %170 = vector.extract_strided_slice %138 {offsets = [0, 32], sizes = [16, 32], strides = [1, 1]} : vector<16x128xf32> to vector<16x32xf32>
    %171 = vector.extract_strided_slice %139 {offsets = [0, 32], sizes = [16, 32], strides = [1, 1]} : vector<16x128xf32> to vector<16x32xf32>
    %cst_92 = arith.constant dense<0.000000e+00> : vector<8x16xf32>
    %172 = tpu.matmul %169, %170, %cst_92 {dimension_numbers = #tpu.dot_dimension_numbers<[1], [1], [0], [0], [0, 0, 1, 0], [], []>} : vector<8x32xf32>, vector<16x32xf32>, vector<8x16xf32> -> vector<8x16xf32>
    %cst_93 = arith.constant 0.000000e+00 : f32
    %173 = vector.broadcast %cst_93 : f32 to vector<8x16xf32>
    %174 = arith.cmpf oeq, %7, %173 : vector<8x16xf32>
    %cst_94 = arith.constant -1.000000e+09 : f32
    %175 = vector.broadcast %cst_94 : f32 to vector<8x16xf32>
    %176 = arith.select %174, %175, %172 : vector<8x16xi1>, vector<8x16xf32>
    %cst_95 = arith.constant dense<0xFF800000> : vector<8xf32>
    %177 = vector.multi_reduction <maximumf>, %176, %cst_95 [1] : vector<8x16xf32> to vector<8xf32>
    %178 = vector.shape_cast %177 : vector<8xf32> to vector<8x1xf32>
    %179 = vector.broadcast %178 : vector<8x1xf32> to vector<8x16xf32>
    %180 = arith.subf %176, %179 : vector<8x16xf32>
    %181 = math.exp %180 : vector<8x16xf32>
    %cst_96 = arith.constant dense<0.000000e+00> : vector<8xf32>
    %182 = vector.multi_reduction <add>, %181, %cst_96 [1] : vector<8x16xf32> to vector<8xf32>
    %183 = vector.shape_cast %182 : vector<8xf32> to vector<8x1xf32>
    %184 = vector.broadcast %183 : vector<8x1xf32> to vector<8x16xf32>
    %185 = arith.divf %181, %184 : vector<8x16xf32>
    %c0_97 = arith.constant 0 : index
    %c1 = arith.constant 1 : index
    %c0_98 = arith.constant 0 : index
    %c0_99 = arith.constant 0 : index
    %186 = vector.load %arg24[%c0_97, %c1, %c0_98, %c0_99] : memref<1x4x8x16xf32, #tpu.memory_space<vmem>>, vector<1x1x8x16xf32>
    %187 = vector.shape_cast %186 : vector<1x1x8x16xf32> to vector<8x16xf32>
    %188 = vector.shape_cast %185 : vector<8x16xf32> to vector<1x1x8x16xf32>
    tpu.vector_store %arg24[%c0_97, %c1, %c0_98, %c0_99], %188 {strides = array<i32>} : memref<1x4x8x16xf32, #tpu.memory_space<vmem>>, vector<1x1x8x16xf32>,
    %cst_100 = arith.constant dense<0.000000e+00> : vector<8x32xf32>
    %189 = tpu.matmul %185, %171, %cst_100 {dimension_numbers = #tpu.dot_dimension_numbers<[1], [0], [0], [1], [0, 0, 1, 1], [], []>} : vector<8x16xf32>, vector<16x32xf32>, vector<8x32xf32> -> vector<8x32xf32>
    %190 = vector.extract_strided_slice %134 {offsets = [32, 0], sizes = [32, 128], strides = [1, 1]} : vector<128x128xf32> to vector<32x128xf32>
    %cst_101 = arith.constant dense<0.000000e+00> : vector<8x128xf32>
    %191 = tpu.matmul %189, %190, %cst_101 {dimension_numbers = #tpu.dot_dimension_numbers<[1], [0], [0], [1], [0, 0, 1, 1], [], []>} : vector<8x32xf32>, vector<32x128xf32>, vector<8x128xf32> -> vector<8x128xf32>
    %192 = arith.addf %166, %191 : vector<8x128xf32>
    %193 = vector.extract_strided_slice %137 {offsets = [0, 64], sizes = [8, 32], strides = [1, 1]} : vector<8x128xf32> to vector<8x32xf32>
    %cst_102 = arith.constant 0.176776692 : f32
    %194 = vector.broadcast %cst_102 : f32 to vector<8x32xf32>
    %195 = arith.mulf %193, %194 : vector<8x32xf32>
    %196 = vector.extract_strided_slice %138 {offsets = [0, 64], sizes = [16, 32], strides = [1, 1]} : vector<16x128xf32> to vector<16x32xf32>
    %197 = vector.extract_strided_slice %139 {offsets = [0, 64], sizes = [16, 32], strides = [1, 1]} : vector<16x128xf32> to vector<16x32xf32>
    %cst_103 = arith.constant dense<0.000000e+00> : vector<8x16xf32>
    %198 = tpu.matmul %195, %196, %cst_103 {dimension_numbers = #tpu.dot_dimension_numbers<[1], [1], [0], [0], [0, 0, 1, 0], [], []>} : vector<8x32xf32>, vector<16x32xf32>, vector<8x16xf32> -> vector<8x16xf32>
    %cst_104 = arith.constant 0.000000e+00 : f32
    %199 = vector.broadcast %cst_104 : f32 to vector<8x16xf32>
    %200 = arith.cmpf oeq, %7, %199 : vector<8x16xf32>
    %cst_105 = arith.constant -1.000000e+09 : f32
    %201 = vector.broadcast %cst_105 : f32 to vector<8x16xf32>
    %202 = arith.select %200, %201, %198 : vector<8x16xi1>, vector<8x16xf32>
    %cst_106 = arith.constant dense<0xFF800000> : vector<8xf32>
    %203 = vector.multi_reduction <maximumf>, %202, %cst_106 [1] : vector<8x16xf32> to vector<8xf32>
    %204 = vector.shape_cast %203 : vector<8xf32> to vector<8x1xf32>
    %205 = vector.broadcast %204 : vector<8x1xf32> to vector<8x16xf32>
    %206 = arith.subf %202, %205 : vector<8x16xf32>
    %207 = math.exp %206 : vector<8x16xf32>
    %cst_107 = arith.constant dense<0.000000e+00> : vector<8xf32>
    %208 = vector.multi_reduction <add>, %207, %cst_107 [1] : vector<8x16xf32> to vector<8xf32>
    %209 = vector.shape_cast %208 : vector<8xf32> to vector<8x1xf32>
    %210 = vector.broadcast %209 : vector<8x1xf32> to vector<8x16xf32>
    %211 = arith.divf %207, %210 : vector<8x16xf32>
    %c0_108 = arith.constant 0 : index
    %c2 = arith.constant 2 : index
    %c0_109 = arith.constant 0 : index
    %c0_110 = arith.constant 0 : index
    %212 = vector.load %arg24[%c0_108, %c2, %c0_109, %c0_110] : memref<1x4x8x16xf32, #tpu.memory_space<vmem>>, vector<1x1x8x16xf32>
    %213 = vector.shape_cast %212 : vector<1x1x8x16xf32> to vector<8x16xf32>
    %214 = vector.shape_cast %211 : vector<8x16xf32> to vector<1x1x8x16xf32>
    tpu.vector_store %arg24[%c0_108, %c2, %c0_109, %c0_110], %214 {strides = array<i32>} : memref<1x4x8x16xf32, #tpu.memory_space<vmem>>, vector<1x1x8x16xf32>,
    %cst_111 = arith.constant dense<0.000000e+00> : vector<8x32xf32>
    %215 = tpu.matmul %211, %197, %cst_111 {dimension_numbers = #tpu.dot_dimension_numbers<[1], [0], [0], [1], [0, 0, 1, 1], [], []>} : vector<8x16xf32>, vector<16x32xf32>, vector<8x32xf32> -> vector<8x32xf32>
    %216 = vector.extract_strided_slice %134 {offsets = [64, 0], sizes = [32, 128], strides = [1, 1]} : vector<128x128xf32> to vector<32x128xf32>
    %cst_112 = arith.constant dense<0.000000e+00> : vector<8x128xf32>
    %217 = tpu.matmul %215, %216, %cst_112 {dimension_numbers = #tpu.dot_dimension_numbers<[1], [0], [0], [1], [0, 0, 1, 1], [], []>} : vector<8x32xf32>, vector<32x128xf32>, vector<8x128xf32> -> vector<8x128xf32>
    %218 = arith.addf %192, %217 : vector<8x128xf32>
    %219 = vector.extract_strided_slice %137 {offsets = [0, 96], sizes = [8, 32], strides = [1, 1]} : vector<8x128xf32> to vector<8x32xf32>
    %cst_113 = arith.constant 0.176776692 : f32
    %220 = vector.broadcast %cst_113 : f32 to vector<8x32xf32>
    %221 = arith.mulf %219, %220 : vector<8x32xf32>
    %222 = vector.extract_strided_slice %138 {offsets = [0, 96], sizes = [16, 32], strides = [1, 1]} : vector<16x128xf32> to vector<16x32xf32>
    %223 = vector.extract_strided_slice %139 {offsets = [0, 96], sizes = [16, 32], strides = [1, 1]} : vector<16x128xf32> to vector<16x32xf32>
    %cst_114 = arith.constant dense<0.000000e+00> : vector<8x16xf32>
    %224 = tpu.matmul %221, %222, %cst_114 {dimension_numbers = #tpu.dot_dimension_numbers<[1], [1], [0], [0], [0, 0, 1, 0], [], []>} : vector<8x32xf32>, vector<16x32xf32>, vector<8x16xf32> -> vector<8x16xf32>
    %cst_115 = arith.constant 0.000000e+00 : f32
    %225 = vector.broadcast %cst_115 : f32 to vector<8x16xf32>
    %226 = arith.cmpf oeq, %7, %225 : vector<8x16xf32>
    %cst_116 = arith.constant -1.000000e+09 : f32
    %227 = vector.broadcast %cst_116 : f32 to vector<8x16xf32>
    %228 = arith.select %226, %227, %224 : vector<8x16xi1>, vector<8x16xf32>
    %cst_117 = arith.constant dense<0xFF800000> : vector<8xf32>
    %229 = vector.multi_reduction <maximumf>, %228, %cst_117 [1] : vector<8x16xf32> to vector<8xf32>
    %230 = vector.shape_cast %229 : vector<8xf32> to vector<8x1xf32>
    %231 = vector.broadcast %230 : vector<8x1xf32> to vector<8x16xf32>
    %232 = arith.subf %228, %231 : vector<8x16xf32>
    %233 = math.exp %232 : vector<8x16xf32>
    %cst_118 = arith.constant dense<0.000000e+00> : vector<8xf32>
    %234 = vector.multi_reduction <add>, %233, %cst_118 [1] : vector<8x16xf32> to vector<8xf32>
    %235 = vector.shape_cast %234 : vector<8xf32> to vector<8x1xf32>
    %236 = vector.broadcast %235 : vector<8x1xf32> to vector<8x16xf32>
    %237 = arith.divf %233, %236 : vector<8x16xf32>
    %c0_119 = arith.constant 0 : index
    %c3 = arith.constant 3 : index
    %c0_120 = arith.constant 0 : index
    %c0_121 = arith.constant 0 : index
    %238 = vector.load %arg24[%c0_119, %c3, %c0_120, %c0_121] : memref<1x4x8x16xf32, #tpu.memory_space<vmem>>, vector<1x1x8x16xf32>
    %239 = vector.shape_cast %238 : vector<1x1x8x16xf32> to vector<8x16xf32>
    %240 = vector.shape_cast %237 : vector<8x16xf32> to vector<1x1x8x16xf32>
    tpu.vector_store %arg24[%c0_119, %c3, %c0_120, %c0_121], %240 {strides = array<i32>} : memref<1x4x8x16xf32, #tpu.memory_space<vmem>>, vector<1x1x8x16xf32>,
    %cst_122 = arith.constant dense<0.000000e+00> : vector<8x32xf32>
    %241 = tpu.matmul %237, %223, %cst_122 {dimension_numbers = #tpu.dot_dimension_numbers<[1], [0], [0], [1], [0, 0, 1, 1], [], []>} : vector<8x16xf32>, vector<16x32xf32>, vector<8x32xf32> -> vector<8x32xf32>
    %242 = vector.extract_strided_slice %134 {offsets = [96, 0], sizes = [32, 128], strides = [1, 1]} : vector<128x128xf32> to vector<32x128xf32>
    %cst_123 = arith.constant dense<0.000000e+00> : vector<8x128xf32>
    %243 = tpu.matmul %241, %242, %cst_123 {dimension_numbers = #tpu.dot_dimension_numbers<[1], [0], [0], [1], [0, 0, 1, 1], [], []>} : vector<8x32xf32>, vector<32x128xf32>, vector<8x128xf32> -> vector<8x128xf32>
    %244 = arith.addf %218, %243 : vector<8x128xf32>
    %245 = arith.addf %244, %130 : vector<8x128xf32>
    %cst_124 = arith.constant dense<0.000000e+00> : vector<8xf32>
    %246 = vector.multi_reduction <add>, %245, %cst_124 [1] : vector<8x128xf32> to vector<8xf32>
    %247 = vector.shape_cast %246 : vector<8xf32> to vector<8x1xf32>
    %cst_125 = arith.constant 1.280000e+02 : f32
    %248 = vector.broadcast %cst_125 : f32 to vector<8x1xf32>
    %249 = arith.divf %247, %248 : vector<8x1xf32>
    %250 = vector.broadcast %249 : vector<8x1xf32> to vector<8x128xf32>
    %251 = arith.subf %245, %250 : vector<8x128xf32>
    %252 = arith.mulf %251, %251 : vector<8x128xf32>
    %cst_126 = arith.constant dense<0.000000e+00> : vector<8xf32>
    %253 = vector.multi_reduction <add>, %252, %cst_126 [1] : vector<8x128xf32> to vector<8xf32>
    %254 = vector.shape_cast %253 : vector<8xf32> to vector<8x1xf32>
    %cst_127 = arith.constant 1.280000e+02 : f32
    %255 = vector.broadcast %cst_127 : f32 to vector<8x1xf32>
    %256 = arith.divf %254, %255 : vector<8x1xf32>
    %cst_128 = arith.constant 9.99999997E-7 : f32
    %257 = vector.broadcast %cst_128 : f32 to vector<8x1xf32>
    %258 = arith.addf %256, %257 : vector<8x1xf32>
    %259 = math.rsqrt %258 : vector<8x1xf32>
    %260 = vector.broadcast %259 : vector<8x1xf32> to vector<8x128xf32>
    %261 = arith.mulf %251, %260 : vector<8x128xf32>
    %262 = vector.broadcast %135 : vector<1x128xf32> to vector<8x128xf32>
    %263 = arith.mulf %261, %262 : vector<8x128xf32>
    %264 = vector.broadcast %136 : vector<1x128xf32> to vector<8x128xf32>
    %265 = arith.addf %263, %264 : vector<8x128xf32>
    %c0_129 = arith.constant 0 : index
    %c0_130 = arith.constant 0 : index
    %266 = vector.load %arg17[%c0_129, %c0_130] : memref<128x256xf32, #tpu.memory_space<vmem>>, vector<128x256xf32>
    %cst_131 = arith.constant dense<0.000000e+00> : vector<8x256xf32>
    %267 = tpu.matmul %265, %266, %cst_131 {dimension_numbers = #tpu.dot_dimension_numbers<[1], [0], [0], [1], [0, 0, 1, 1], [], []>} : vector<8x128xf32>, vector<128x256xf32>, vector<8x256xf32> -> vector<8x256xf32>
    %c0_132 = arith.constant 0 : index
    %c0_133 = arith.constant 0 : index
    %268 = vector.load %arg18[%c0_132, %c0_133] : memref<1x256xf32, #tpu.memory_space<vmem>>, vector<1x256xf32>
    %269 = vector.broadcast %268 : vector<1x256xf32> to vector<8x256xf32>
    %270 = arith.addf %267, %269 : vector<8x256xf32>
    %cst_134 = arith.constant 0.000000e+00 : f32
    %271 = vector.broadcast %cst_134 : f32 to vector<8x256xf32>
    %272 = arith.maximumf %270, %271 : vector<8x256xf32>
    %c0_135 = arith.constant 0 : index
    %c0_136 = arith.constant 0 : index
    %273 = vector.load %arg19[%c0_135, %c0_136] : memref<256x128xf32, #tpu.memory_space<vmem>>, vector<256x128xf32>
    %cst_137 = arith.constant dense<0.000000e+00> : vector<8x128xf32>
    %274 = tpu.matmul %272, %273, %cst_137 {dimension_numbers = #tpu.dot_dimension_numbers<[1], [0], [0], [1], [0, 0, 1, 1], [], []>} : vector<8x256xf32>, vector<256x128xf32>, vector<8x128xf32> -> vector<8x128xf32>
    %c0_138 = arith.constant 0 : index
    %c0_139 = arith.constant 0 : index
    %275 = vector.load %arg20[%c0_138, %c0_139] : memref<1x128xf32, #tpu.memory_space<vmem>>, vector<1x128xf32>
    %276 = vector.broadcast %275 : vector<1x128xf32> to vector<8x128xf32>
    %277 = arith.addf %274, %276 : vector<8x128xf32>
    %278 = arith.addf %277, %265 : vector<8x128xf32>
    %c0_140 = arith.constant 0 : index
    %c0_141 = arith.constant 0 : index
    %279 = vector.load %arg21[%c0_140, %c0_141] : memref<1x128xf32, #tpu.memory_space<vmem>>, vector<1x128xf32>
    %c0_142 = arith.constant 0 : index
    %c0_143 = arith.constant 0 : index
    %280 = vector.load %arg22[%c0_142, %c0_143] : memref<1x128xf32, #tpu.memory_space<vmem>>, vector<1x128xf32>
    %cst_144 = arith.constant dense<0.000000e+00> : vector<8xf32>
    %281 = vector.multi_reduction <add>, %278, %cst_144 [1] : vector<8x128xf32> to vector<8xf32>
    %282 = vector.shape_cast %281 : vector<8xf32> to vector<8x1xf32>
    %cst_145 = arith.constant 1.280000e+02 : f32
    %283 = vector.broadcast %cst_145 : f32 to vector<8x1xf32>
    %284 = arith.divf %282, %283 : vector<8x1xf32>
    %285 = vector.broadcast %284 : vector<8x1xf32> to vector<8x128xf32>
    %286 = arith.subf %278, %285 : vector<8x128xf32>
    %287 = arith.mulf %286, %286 : vector<8x128xf32>
    %cst_146 = arith.constant dense<0.000000e+00> : vector<8xf32>
    %288 = vector.multi_reduction <add>, %287, %cst_146 [1] : vector<8x128xf32> to vector<8xf32>
    %289 = vector.shape_cast %288 : vector<8xf32> to vector<8x1xf32>
    %cst_147 = arith.constant 1.280000e+02 : f32
    %290 = vector.broadcast %cst_147 : f32 to vector<8x1xf32>
    %291 = arith.divf %289, %290 : vector<8x1xf32>
    %cst_148 = arith.constant 9.99999997E-7 : f32
    %292 = vector.broadcast %cst_148 : f32 to vector<8x1xf32>
    %293 = arith.addf %291, %292 : vector<8x1xf32>
    %294 = math.rsqrt %293 : vector<8x1xf32>
    %295 = vector.broadcast %294 : vector<8x1xf32> to vector<8x128xf32>
    %296 = arith.mulf %286, %295 : vector<8x128xf32>
    %297 = vector.broadcast %279 : vector<1x128xf32> to vector<8x128xf32>
    %298 = arith.mulf %296, %297 : vector<8x128xf32>
    %299 = vector.broadcast %280 : vector<1x128xf32> to vector<8x128xf32>
    %300 = arith.addf %298, %299 : vector<8x128xf32>
    %c0_149 = arith.constant 0 : index
    %c0_150 = arith.constant 0 : index
    %c0_151 = arith.constant 0 : index
    %301 = vector.load %arg23[%c0_149, %c0_150, %c0_151] : memref<1x8x128xf32, #tpu.memory_space<vmem>>, vector<1x8x128xf32>
    %302 = vector.shape_cast %301 : vector<1x8x128xf32> to vector<8x128xf32>
    %303 = vector.shape_cast %300 : vector<8x128xf32> to vector<1x8x128xf32>
    tpu.vector_store %arg23[%c0_149, %c0_150, %c0_151], %303 {strides = array<i32>} : memref<1x8x128xf32, #tpu.memory_space<vmem>>, vector<1x8x128xf32>,
    return
  }
  func.func @transform_0(%arg0: i32) -> (i32, i32, i32) {
    %c0_i32 = arith.constant 0 : i32
    %c0_i32_0 = arith.constant 0 : i32
    %c0_i32_1 = arith.constant 0 : i32
    return %arg0, %c0_i32, %c0_i32_0 : i32, i32, i32
  }
  func.func @transform_1(%arg0: i32) -> (i32, i32, i32) {
    %c0_i32 = arith.constant 0 : i32
    %c0_i32_0 = arith.constant 0 : i32
    %c0_i32_1 = arith.constant 0 : i32
    return %arg0, %c0_i32, %c0_i32_0 : i32, i32, i32
  }
  func.func @transform_2(%arg0: i32) -> (i32, i32, i32) {
    %c0_i32 = arith.constant 0 : i32
    %c0_i32_0 = arith.constant 0 : i32
    %c0_i32_1 = arith.constant 0 : i32
    return %arg0, %c0_i32, %c0_i32_0 : i32, i32, i32
  }
  func.func @transform_3(%arg0: i32) -> (i32, i32, i32) {
    %c0_i32 = arith.constant 0 : i32
    %c0_i32_0 = arith.constant 0 : i32
    %c0_i32_1 = arith.constant 0 : i32
    return %arg0, %c0_i32, %c0_i32_0 : i32, i32, i32
  }
  func.func @transform_4(%arg0: i32) -> (i32, i32) {
    %c0_i32 = arith.constant 0 : i32
    %c0_i32_0 = arith.constant 0 : i32
    %c0_i32_1 = arith.constant 0 : i32
    return %c0_i32, %c0_i32_0 : i32, i32
  }
  func.func @transform_5(%arg0: i32) -> (i32, i32) {
    %c0_i32 = arith.constant 0 : i32
    %c0_i32_0 = arith.constant 0 : i32
    %c0_i32_1 = arith.constant 0 : i32
    return %c0_i32, %c0_i32_0 : i32, i32
  }
  func.func @transform_6(%arg0: i32) -> (i32, i32) {
    %c0_i32 = arith.constant 0 : i32
    %c0_i32_0 = arith.constant 0 : i32
    %c0_i32_1 = arith.constant 0 : i32
    return %c0_i32, %c0_i32_0 : i32, i32
  }
  func.func @transform_7(%arg0: i32) -> (i32, i32) {
    %c0_i32 = arith.constant 0 : i32
    %c0_i32_0 = arith.constant 0 : i32
    %c0_i32_1 = arith.constant 0 : i32
    return %c0_i32, %c0_i32_0 : i32, i32
  }
  func.func @transform_8(%arg0: i32) -> (i32, i32) {
    %c0_i32 = arith.constant 0 : i32
    %c0_i32_0 = arith.constant 0 : i32
    %c0_i32_1 = arith.constant 0 : i32
    return %c0_i32, %c0_i32_0 : i32, i32
  }
  func.func @transform_9(%arg0: i32) -> (i32, i32) {
    %c0_i32 = arith.constant 0 : i32
    %c0_i32_0 = arith.constant 0 : i32
    %c0_i32_1 = arith.constant 0 : i32
    return %c0_i32, %c0_i32_0 : i32, i32
  }
  func.func @transform_10(%arg0: i32) -> (i32, i32) {
    %c0_i32 = arith.constant 0 : i32
    %c0_i32_0 = arith.constant 0 : i32
    %c0_i32_1 = arith.constant 0 : i32
    return %c0_i32, %c0_i32_0 : i32, i32
  }
  func.func @transform_11(%arg0: i32) -> (i32, i32) {
    %c0_i32 = arith.constant 0 : i32
    %c0_i32_0 = arith.constant 0 : i32
    %c0_i32_1 = arith.constant 0 : i32
    return %c0_i32, %c0_i32_0 : i32, i32
  }
  func.func @transform_12(%arg0: i32) -> (i32, i32) {
    %c0_i32 = arith.constant 0 : i32
    %c0_i32_0 = arith.constant 0 : i32
    %c0_i32_1 = arith.constant 0 : i32
    return %c0_i32, %c0_i32_0 : i32, i32
  }
  func.func @transform_13(%arg0: i32) -> (i32, i32) {
    %c0_i32 = arith.constant 0 : i32
    %c0_i32_0 = arith.constant 0 : i32
    %c0_i32_1 = arith.constant 0 : i32
    return %c0_i32, %c0_i32_0 : i32, i32
  }
  func.func @transform_14(%arg0: i32) -> (i32, i32) {
    %c0_i32 = arith.constant 0 : i32
    %c0_i32_0 = arith.constant 0 : i32
    %c0_i32_1 = arith.constant 0 : i32
    return %c0_i32, %c0_i32_0 : i32, i32
  }
  func.func @transform_15(%arg0: i32) -> (i32, i32) {
    %c0_i32 = arith.constant 0 : i32
    %c0_i32_0 = arith.constant 0 : i32
    %c0_i32_1 = arith.constant 0 : i32
    return %c0_i32, %c0_i32_0 : i32, i32
  }
  func.func @transform_16(%arg0: i32) -> (i32, i32) {
    %c0_i32 = arith.constant 0 : i32
    %c0_i32_0 = arith.constant 0 : i32
    %c0_i32_1 = arith.constant 0 : i32
    return %c0_i32, %c0_i32_0 : i32, i32
  }
  func.func @transform_17(%arg0: i32) -> (i32, i32) {
    %c0_i32 = arith.constant 0 : i32
    %c0_i32_0 = arith.constant 0 : i32
    %c0_i32_1 = arith.constant 0 : i32
    return %c0_i32, %c0_i32_0 : i32, i32
  }
  func.func @transform_18(%arg0: i32) -> (i32, i32) {
    %c0_i32 = arith.constant 0 : i32
    %c0_i32_0 = arith.constant 0 : i32
    %c0_i32_1 = arith.constant 0 : i32
    return %c0_i32, %c0_i32_0 : i32, i32
  }
  func.func @transform_19(%arg0: i32) -> (i32, i32) {
    %c0_i32 = arith.constant 0 : i32
    %c0_i32_0 = arith.constant 0 : i32
    %c0_i32_1 = arith.constant 0 : i32
    return %c0_i32, %c0_i32_0 : i32, i32
  }
  func.func @transform_20(%arg0: i32) -> (i32, i32) {
    %c0_i32 = arith.constant 0 : i32
    %c0_i32_0 = arith.constant 0 : i32
    %c0_i32_1 = arith.constant 0 : i32
    return %c0_i32, %c0_i32_0 : i32, i32
  }
  func.func @transform_21(%arg0: i32) -> (i32, i32) {
    %c0_i32 = arith.constant 0 : i32
    %c0_i32_0 = arith.constant 0 : i32
    %c0_i32_1 = arith.constant 0 : i32
    return %c0_i32, %c0_i32_0 : i32, i32
  }
  func.func @transform_22(%arg0: i32) -> (i32, i32, i32) {
    %c0_i32 = arith.constant 0 : i32
    %c0_i32_0 = arith.constant 0 : i32
    %c0_i32_1 = arith.constant 0 : i32
    return %arg0, %c0_i32, %c0_i32_0 : i32, i32, i32
  }
  func.func @transform_23(%arg0: i32) -> (i32, i32, i32, i32) {
    %c0_i32 = arith.constant 0 : i32
    %c0_i32_0 = arith.constant 0 : i32
    %c0_i32_1 = arith.constant 0 : i32
    %c0_i32_2 = arith.constant 0 : i32
    return %arg0, %c0_i32, %c0_i32_0, %c0_i32_1 : i32, i32, i32, i32
  }
}

</mosaic_0001>

<bundles_post_ra>
// kernel: tpu_custom_call.1
= control target key start
LH: loop header
LB: loop body
LE: loop exit
PB: predicated region body
PF: predicated region fallthrough
CT: control target
= control target key end

     0   :  { %s6513_s0 = inlined_call_operand.hbm [shape: f32[2,8,128], index: 0, kind: input, shape index: {}]   ;;  %s6514_s1 = inlined_call_operand.hbm [shape: f32[2,16,128], index: 1, kind: input, shape index: {}]   ;;  %s6515_s2 = inlined_call_operand.hbm [shape: f32[2,8,8], index: 2, kind: input, shape index: {}]   ;;  %s6516_s3 = inlined_call_operand.hbm [shape: f32[2,8,16], index: 3, kind: input, shape index: {}]   ;;  %s6517_s4 = inlined_call_operand.hbm [shape: f32[128,128], index: 4, kind: input, shape index: {}]   ;;  %s6518_s5 = inlined_call_operand.hbm [shape: f32[128,128], index: 5, kind: input, shape index: {}]   ;;  %s6519_s6 = inlined_call_operand.hbm [shape: f32[128,128], index: 6, kind: input, shape index: {}]   ;;  %s6520_s7 = inlined_call_operand.hbm [shape: f32[128,128], index: 7, kind: input, shape index: {}]   ;;  %s6521_s8 = inlined_call_operand.vmem [shape: f32[1,128], index: 8, kind: input, shape index: {}]   ;;  %s6522_s9 = inlined_call_operand.vmem [shape: f32[1,128], index: 9, kind: input, shape index: {}]   ;;  %s6523_s10 = inlined_call_operand.hbm [shape: f32[128,128], index: 10, kind: input, shape index: {}]   ;;  %s6524_s11 = inlined_call_operand.hbm [shape: f32[128,128], index: 11, kind: input, shape index: {}]   ;;  %s6525_s12 = inlined_call_operand.hbm [shape: f32[128,128], index: 12, kind: input, shape index: {}]   ;;  %s6526_s13 = inlined_call_operand.hbm [shape: f32[128,128], index: 13, kind: input, shape index: {}]   ;;  %s6527_s14 = inlined_call_operand.vmem [shape: f32[1,128], index: 14, kind: input, shape index: {}]   ;;  %s6528_s15 = inlined_call_operand.vmem [shape: f32[1,128], index: 15, kind: input, shape index: {}]   ;;  %s6529_s16 = inlined_call_operand.hbm [shape: f32[128,256], index: 16, kind: input, shape index: {}]   ;;  %s6530_s17 = inlined_call_operand.vmem [shape: f32[1,256], index: 17, kind: input, shape index: {}]   ;;  %s6531_s18 = inlined_call_operand.hbm [shape: f32[256,128], index: 18, kind: input, shape index: {}]   ;;  %s6532_s19 = inlined_call_operand.vmem [shape: f32[1,128], index: 19, kind: input, shape index: {}]   ;;  %s6533_s20 = inlined_call_operand.vmem [shape: f32[1,128], index: 20, kind: input, shape index: {}]   ;;  %s6534_s21 = inlined_call_operand.vmem [shape: f32[1,128], index: 21, kind: input, shape index: {}]   ;;  %s6535_s22 = inlined_call_operand.hbm [shape: f32[2,8,128], index: 22, kind: output, shape index: {0}]   ;;  %s6536_s23 = inlined_call_operand.hbm [shape: f32[2,4,8,16], index: 23, kind: output, shape index: {1}]  }
   0x1   :  { %6565 = sst [smem:[#allocation45_spill]] %s6513_s0 }
   0x2   :  { %6566 = sst [smem:[#allocation46_spill]] %s6514_s1 }
   0x3   :  { %6567 = sst [smem:[#allocation47_spill]] %s6515_s2 }
   0x4   :  { %6568 = sst [smem:[#allocation48_spill]] %s6516_s3 }
   0x5   :  { %6569 = sst [smem:[#allocation49_spill]] %s6517_s4 }
   0x6   :  { %6570 = sst [smem:[#allocation50_spill]] %s6518_s5 }
   0x7   :  { %6571 = sst [smem:[#allocation51_spill]] %s6519_s6 }
   0x8   :  { %6572 = sst [smem:[#allocation52_spill]] %s6520_s7 }
   0x9   :  { %6573 = sst [smem:[#allocation53_spill]] %s6523_s10 }
   0xa   :  { %6574 = sst [smem:[#allocation54_spill]] %s6524_s11 }
   0xb   :  { %6575 = sst [smem:[#allocation55_spill]] %s6525_s12 }
   0xc   :  { %6576 = sst [smem:[#allocation56_spill]] %s6526_s13 }
   0xd   :  { %6577 = sst [smem:[#allocation57_spill]] %s6529_s16 }
   0xe   :  { %6578 = sst [smem:[#allocation58_spill]] %s6531_s18 }
   0xf   :  { %6579 = sst [smem:[#allocation59_spill]] %s6532_s19 }
  0x10   :  { %6580 = sst [smem:[#allocation60_spill]] %s6533_s20 }
  0x11   :  { %6581 = sst [smem:[#allocation61_spill]] %s6534_s21 }
  0x12   :  { %6582 = sst [smem:[#allocation62_spill]] %s6535_s22 }
  0x13   :  { %6583 = sst [smem:[#allocation63_spill]] %s6536_s23 }
  0x14   :  { %29 = vsyncpa [#allocation3], 0 }
  0x15   :  { %31 = vsyncpa [#allocation3 + $0x1], 0 }
  0x16   :  { %32 = vsyncpa [#allocation6], 0 }
  0x17   :  { %34 = vsyncpa [#allocation6 + $0x1], 0 }
  0x18   :  { %35 = vsyncpa [#allocation9], 0 }
  0x19   :  { %37 = vsyncpa [#allocation9 + $0x1], 0 }
  0x1a   :  { %38 = vsyncpa [#allocation12], 0 }
  0x1b   :  { %39 = vsyncpa [#allocation15], 0 }
  0x1c   :  { %40 = vsyncpa [#allocation18], 0 }
  0x1d   :  { %41 = vsyncpa [#allocation21], 0 }
  0x1e   :  { %42 = vsyncpa [#allocation24], 0 }
  0x1f   :  { %43 = vsyncpa [#allocation4], 0 }
  0x20   :  { %45 = vsyncpa [#allocation4 + $0x1], 0 }
  0x21   :  { %46 = vsyncpa [#allocation27], 0 }
  0x22   :  { %48 = vsyncpa [#allocation27 + $0x1], 0  ;;  %s5683_s4 = smov 0   ;;  %s5685_s30 = smov 0  }
  0x23   :  { %s5687_s24 = smov 0   ;;  %s5689_s25 = smov 0  }
  0x24 LB: > { %6584 = sst [smem:[#allocation39_spill]] %s5522_s4  ;;  %s5536_s5 = smov [#allocation10]   ;;  %s5534_s25 = sphi %s5689_s25, %s6643_s25   ;;  %s5530_s24 = sphi %s5687_s24, %s6645_s24   ;;  %s5526_s30 = sphi %s5685_s30, %s6647_s30   ;;  %s5522_s4 = sphi %s5683_s4, %s6646_s4  }
  0x25   : > { %6585 = sst [smem:[#allocation40_spill]] %s5530_s24  ;;  %s605_s1 = sshll.u32 %s5536_s5, 4  ;;  %s606_s1 = int_to_ptr.vmem [resolvable:$true] %s605_s1 }
  0x26   : > { %s5704_s26 = sadd.s32 4294967295, %s5534_s25   ;;  %p4114_p0 = scmp.ge.s32.totalorder %s5534_s25, 1 }
  0x27   : > { %p6555_p1 = scmp.eq.s32.totalorder %s5704_s26, 0  ;;  %p593_p2 = scmp.lt.s32.totalorder %s5534_s25, 3 }
  0x28   : > { %s5537_s6 = smov [#allocation11]   ;;  %s5538_s28 = smov [#allocation14]  }
  0x29   : > { %p5709_p3 = pnand %p4114_p0, %p593_p2  ;;  %s618_s27 = sshll.u32 %s5537_s6, 4  ;;  %s5722_s27 = int_to_ptr.vmem [resolvable:$true] %s618_s27 }
  0x2a   : > { %s644_s29 = sshll.u32 %s5538_s28, 4  ;;  %s5047_s0 = scalar_lea.vmem %s606_s1, 2048  ;;  %s5724_s29 = int_to_ptr.vmem [resolvable:$true] %s644_s29 }
  0x2b   : > { %s6586_s2 = scalar_select %p5709_p3, 1, 0 }
  0x2c   : > { %p4872_p5 = pneg %p5709_p3  ;;  %p5048_p8 = scmp.ne.s32.totalorder %s606_s1, %s5047_s0 }
  0x2d   : > { %p5055_p11 = scmp.lt.s32.totalorder %s606_s1, %s606_s1  ;;  %p5056_p12 = scmp.lt.s32.totalorder %s5047_s0, %s5047_s0 }
  0x2e   : > { %p5718_p6 = pnand %p4872_p5, %p6555_p1 }
  0x2f   : > { %p5057_p13 = por %p5056_p12, %p5055_p11 }
  0x30   : > { %s6587_s7 = scalar_select %p5718_p6, 1, 0 }
  0x31   : > { %p5728_p7 = pneg %p5718_p6 }
  0x33   : > { %s6588_s3 = scalar_select %p5728_p7, 1, 0 }
  0x34   : > { %p5050_p9 = pnand %p5048_p8, %p5728_p7 }
  0x36   : > { %p5051_p10 = pneg %p5050_p9 }
  0x38   : > { %p5058_p0 = pnand %p5057_p13, %p5051_p10 }
  0x3a   : > { %5061 = shalt.err (!%p5058_p0)
}
  0x3b   : > { %s6544_s5 = smov 128   ;;  %s6546_s6 = smov 8  }
  0x3c   : > { %s6589_s21 = sld [smem:[#allocation49_spill]]  ;;  %s5073_s20 = scalar_lea.vmem %s5722_s27, 2048 }
  0x3d   : > { %p5074_p2 = scmp.ne.s32.totalorder %s5722_s27, %s5073_s20  ;;  %p5081_p9 = scmp.lt.s32.totalorder %s5722_s27, %s5722_s27 }
  0x3e   : > { %p5082_p10 = scmp.lt.s32.totalorder %s5073_s20, %s5073_s20 }
  0x3f   : > { %p5076_p5 = pnand %p5074_p2, %p5728_p7 }
  0x40   : > { %p5083_p11 = por %p5082_p10, %p5081_p9 }
  0x41   : > { %p5077_p8 = pneg %p5076_p5 }
  0x42   : > { %4875 = dma.hbm_to_vmem [thread:$0]  (!%p5718_p6), %s6589_s21, 2048, %s606_s1, [#allocation9], %s6544_s5, %s6544_s5, %s6546_s6  }
  0x43   : > { %p5084_p12 = pnand %p5083_p11, %p5077_p8 }
  0x45   : > { %5087 = shalt.err (!%p5084_p12)
}
  0x46   : > { %s6590_s21 = sld [smem:[#allocation50_spill]]  ;;  %s5099_s1 = scalar_lea.vmem %s5724_s29, 2048 }
  0x47   : > { %p5100_p13 = scmp.ne.s32.totalorder %s5724_s29, %s5099_s1  ;;  %p5107_p5 = scmp.lt.s32.totalorder %s5724_s29, %s5724_s29 }
  0x48   : > { %p5108_p8 = scmp.lt.s32.totalorder %s5099_s1, %s5099_s1 }
  0x49   : > { %p5102_p0 = pnand %p5100_p13, %p5728_p7 }
  0x4a   : > { %p5109_p9 = por %p5108_p8, %p5107_p5 }
  0x4b   : > { %p5103_p2 = pneg %p5102_p0 }
  0x4c   : > { %4878 = dma.hbm_to_vmem [thread:$0]  (!%p5718_p6), %s6590_s21, 2048, %s5722_s27, [#allocation12], %s6544_s5, %s6544_s5, %s6546_s6  }
  0x4d   : > { %p5110_p10 = pnand %p5109_p9, %p5103_p2 }
  0x4f   : > { %5113 = shalt.err (!%p5110_p10)
}
  0x50   : > { %s6591_s27 = sld [smem:[#allocation52_spill]]  ;;  %s5541_s0 = smov [#allocation17]  }
  0x51   : > { %s676_s22 = sshll.u32 %s5541_s0, 4  ;;  %s5542_s21 = smov [#allocation20]   ;;  %s677_s22 = int_to_ptr.vmem [resolvable:$true] %s676_s22 }
  0x52   : > { %s702_s23 = sshll.u32 %s5542_s21, 4  ;;  %s5125_s1 = scalar_lea.vmem %s677_s22, 2048  ;;  %s703_s23 = int_to_ptr.vmem [resolvable:$true] %s702_s23 }
  0x53   : > { %p5126_p11 = scmp.ne.s32.totalorder %s677_s22, %s5125_s1  ;;  %p5133_p0 = scmp.lt.s32.totalorder %s677_s22, %s677_s22 }
  0x54   : > { %p5134_p2 = scmp.lt.s32.totalorder %s5125_s1, %s5125_s1 }
  0x55   : > { %p5128_p12 = pnand %p5126_p11, %p5728_p7 }
  0x56   : > { %4884 = dma.hbm_to_vmem [thread:$0]  (!%p5718_p6), %s6591_s27, 2048, %s5724_s29, [#allocation15], %s6544_s5, %s6544_s5, %s6546_s6  }
  0x57   : > { %p5129_p13 = pneg %p5128_p12  ;;  %p5135_p5 = por %p5134_p2, %p5133_p0 }
  0x59   : > { %p5136_p8 = pnand %p5135_p5, %p5129_p13 }
  0x5b   : > { %5139 = shalt.err (!%p5136_p8)
}
  0x5c   : > { %s6592_s11 = sld [smem:[#allocation54_spill]]  ;;  %s5151_s28 = scalar_lea.vmem %s703_s23, 2048 }
  0x5d   : > { %p5152_p9 = scmp.ne.s32.totalorder %s703_s23, %s5151_s28  ;;  %p5159_p12 = scmp.lt.s32.totalorder %s703_s23, %s703_s23 }
  0x5e   : > { %p5160_p0 = scmp.lt.s32.totalorder %s5151_s28, %s5151_s28 }
  0x5f   : > { %p5154_p10 = pnand %p5152_p9, %p5728_p7 }
  0x60   : > { %p5161_p13 = por %p5160_p0, %p5159_p12 }
  0x61   : > { %p5155_p11 = pneg %p5154_p10 }
  0x62   : > { %4890 = dma.hbm_to_vmem [thread:$0]  (!%p5718_p6), %s6592_s11, 2048, %s677_s22, [#allocation18], %s6544_s5, %s6544_s5, %s6546_s6  }
  0x63   : > { %p5162_p2 = pnand %p5161_p13, %p5155_p11 }
  0x65   : > { %5165 = shalt.err (!%p5162_p2)
}
  0x66   : > { %s6593_s13 = sld [smem:[#allocation56_spill]]  ;;  %s4113_s22 = sadd.s32 4294967294, %s5534_s25  }
  0x67   : > { %s5794_s21 = sadd.s32 1, %s5534_s25   ;;  %s61_s1 = sadd.s32 1, %s5530_s24 }
  0x68   : > { %6594 = sst [smem:[#allocation41_spill]] %s5794_s21  ;;  %s58_s29 = ssub.s32 %s5534_s25, %s5794_s21 }
  0x69   : > { %p68_p5 = scmp.ne.s32.totalorder %s5530_s24, %s5526_s30  ;;  %p59_p8 = scmp.eq.s32.totalorder %s58_s29, 0 }
  0x6a   : > { %p69_p9 = scmp.eq.s32.totalorder %s5534_s25, 0  ;;  %p74_p10 = scmp.ne.s32.totalorder %s5526_s30, %s5522_s4 }
  0x6b   : > { %p554_p11 = scmp.eq.s32.totalorder %s5704_s26, 1  ;;  %p560_p2 = scmp.eq.s32.totalorder %s4113_s22, 1 }
  0x6c   : > { %4896 = dma.hbm_to_vmem [thread:$0]  (!%p5718_p6), %s6593_s13, 2048, %s703_s23, [#allocation21], %s6544_s5, %s6544_s5, %s6546_s6  }
  0x6d   : > { %s5806_s20 = scalar_select %p59_p8, %s5530_s24, %s61_s1  }
  0x6e   : > { %p70_p12 = por %p69_p9, %p68_p5  ;;  %p5810_p0 = por %p6555_p1, %p74_p10 }
  0x6f   : > { %6595 = sst [smem:[#allocation42_spill]] %s5806_s20  ;;  %p5814_p13 = por %p554_p11, %p68_p5 }
  0x70   : > { %s6596_s23 = scalar_select %p5810_p0, 1, 0 }
  0x71   : > { %s6597_s28 = scalar_select %p5814_p13, 1, 0 }
  0x72   : > { %p4933_p4 = scmp.lt.s32.totalorder %s5534_s25, 2  ;;  %s5820_s27 = sand.u32 1, %s5530_s24  }
  0x73   : > { %6598 = sst [smem:[#allocation43_spill]] %s6597_s28  ;;  %p5822_p3 = por %p560_p2, %p74_p10 }
  0x74   : > { %s6556_s1 = sand.u32 1, %s5534_s25   ;;  %p5827_p8 = pnand %p4933_p4, %p70_p12 }
  0x75   : > { %s6599_s0 = scalar_select %p5822_p3, 1, 0 }
  0x76   : > { %s4128_s5 = sshll.u32 %s5820_s27, 4  ;;  %s4205_s6 = sshll.u32 %s5534_s25, 8 }
  0x77   : > { %6600 = sst [smem:[#allocation44_spill]] %s6599_s0  ;;  %s782_s24 = scalar_lea.vmem [#allocation5], %s4128_s5 }
  0x78   : > { %s6602_s20 = sld [smem:[#allocation46_spill]]  ;;  %s789_s21 = sshll.u32 %s782_s24, 4  ;;  %s5838_s21 = int_to_ptr.vmem [resolvable:$true] %s789_s21 }
  0x79   : > { %s5842_s0 = scalar_lea.sflag [#allocation6], %s6556_s1  ;;  %p5848_p5 = pneg %p5827_p8 }
  0x7e   : > { %s5836_s22 = scalar_lea.hbm %s6602_s20, %s4205_s6  ;;  %s5171_s24 = scalar_lea.hbm %s6602_s20, 512 }
  0x7f   : > { %s5166_s4 = scalar_lea.hbm %s5836_s22, 256  ;;  %p5172_p11 = scmp.lt.s32.totalorder %s5836_s22, %s6602_s20 }
  0x80   : > { %p5167_p4 = scmp.ne.s32.totalorder %s5836_s22, %s5166_s4  ;;  %p5173_p12 = scmp.lt.s32.totalorder %s5171_s24, %s5166_s4 }
  0x82   : > { %p5169_p9 = pnand %p5848_p5, %p5167_p4  ;;  %p5174_p2 = por %p5173_p12, %p5172_p11 }
  0x84   : > { %p5170_p10 = pneg %p5169_p9 }
  0x86   : > { %p5175_p1 = pnand %p5174_p2, %p5170_p10 }
  0x88   : > { %5178 = shalt.err (!%p5175_p1)
}
  0x89   : > { %s5179_s1 = scalar_lea.vmem %s5838_s21, 256  ;;  %s5543_s19 = smov [#allocation5]  }
  0x8a   : > { %p5180_p3 = scmp.ne.s32.totalorder %s5838_s21, %s5179_s1  ;;  %s5184_s11 = sshll.u32 %s5543_s19, 4  ;;  %s5185_s11 = int_to_ptr.vmem [resolvable:$false] %s5184_s11 }
  0x8b   : > { %s5186_s13 = scalar_lea.vmem %s5185_s11, 512  ;;  %p5187_p13 = scmp.lt.s32.totalorder %s5838_s21, %s5185_s11 }
  0x8c   : > { %p5182_p4 = pnand %p5180_p3, %p5848_p5  ;;  %p5188_p0 = scmp.lt.s32.totalorder %s5186_s13, %s5179_s1 }
  0x8e   : > { %p5183_p9 = pneg %p5182_p4  ;;  %p5189_p6 = por %p5188_p0, %p5187_p13 }
  0x90   : > { %p5190_p7 = pnand %p5189_p6, %p5183_p9 }
  0x92   : > { %5193 = shalt.err (!%p5190_p7)
}
  0x93   : > { %s6604_s4 = smov 8   ;;  %s6605_s24 = smov 128  }
  0x94   : > { %4909 = dma.hbm_to_vmem [thread:$0]  (!%p5827_p8), %s5836_s22, 256, %s5838_s21, %s5842_s0, %s6605_s24, %s6605_s24, %s6604_s4  }
  0x95   : > { %s5544_s5 = smov [#allocation13]   ;;  %s5545_s19 = smov [#allocation16]  }
  0x96   : > { %s631_s6 = sshll.u32 %s5544_s5, 4  ;;  %s663_s20 = sshll.u32 %s5545_s19, 4  ;;  %s632_s6 = int_to_ptr.vmem [resolvable:$true] %s631_s6  ;;  %s664_s20 = int_to_ptr.vmem [resolvable:$true] %s663_s20 }
  0x97   : > { %s5205_s11 = scalar_lea.vmem %s632_s6, 2048  ;;  %p6606_p3 = scmp.ne.s32.totalorder %s6588_s3, 0 }
  0x98   : > { %p5206_p1 = scmp.ne.s32.totalorder %s632_s6, %s5205_s11  ;;  %p5213_p0 = scmp.lt.s32.totalorder %s632_s6, %s632_s6 }
  0x99   : > { %p5214_p13 = scmp.lt.s32.totalorder %s5205_s11, %s5205_s11 }
  0x9a   : > { %p5208_p6 = pnand %p5206_p1, %p6606_p3 }
  0x9b   : > { %p5215_p10 = por %p5214_p13, %p5213_p0 }
  0x9c   : > { %p5209_p7 = pneg %p5208_p6 }
  0x9e   : > { %p5216_p11 = pnand %p5215_p10, %p5209_p7 }
  0xa0   : > { %5219 = shalt.err (!%p5216_p11)
}
  0xa1   : > { %p6607_p12 = scmp.ne.s32.totalorder %s6587_s7, 0  ;;  %s6608_s22 = sld [smem:[#allocation51_spill]] }
  0xa2   : > { %s5231_s13 = scalar_lea.vmem %s664_s20, 2048  ;;  %p5239_p1 = scmp.lt.s32.totalorder %s664_s20, %s664_s20 }
  0xa3   : > { %p5232_p2 = scmp.ne.s32.totalorder %s664_s20, %s5231_s13  ;;  %p5240_p6 = scmp.lt.s32.totalorder %s5231_s13, %s5231_s13 }
  0xa5   : > { %p5234_p4 = pnand %p5232_p2, %p6606_p3  ;;  %p5241_p7 = por %p5240_p6, %p5239_p1 }
  0xa7   : > { %4881 = dma.hbm_to_vmem [thread:$0]  (!%p6607_p12), %s6608_s22, 2048, %s632_s6, [#allocation12], %s6605_s24, %s6605_s24, %s6604_s4  }
  0xa8   : > { %p5235_p9 = pneg %p5234_p4 }
  0xaa   : > { %p5242_p0 = pnand %p5241_p7, %p5235_p9 }
  0xac   : > { %5245 = shalt.err (!%p5242_p0)
}
  0xad   : > { %s6609_s10 = sld [smem:[#allocation53_spill]]  ;;  %s5546_s6 = smov [#allocation19]  }
  0xae   : > { %s689_s11 = sshll.u32 %s5546_s6, 4  ;;  %s5547_s21 = smov [#allocation22]   ;;  %s690_s11 = int_to_ptr.vmem [resolvable:$true] %s689_s11 }
  0xaf   : > { %s721_s1 = sshll.u32 %s5547_s21, 4  ;;  %s5257_s22 = scalar_lea.vmem %s690_s11, 2048  ;;  %s722_s1 = int_to_ptr.vmem [resolvable:$true] %s721_s1 }
  0xb0   : > { %p5258_p13 = scmp.ne.s32.totalorder %s690_s11, %s5257_s22  ;;  %p5265_p2 = scmp.lt.s32.totalorder %s690_s11, %s690_s11 }
  0xb1   : > { %p5266_p4 = scmp.lt.s32.totalorder %s5257_s22, %s5257_s22 }
  0xb2   : > { %p5260_p10 = pnand %p5258_p13, %p6606_p3 }
  0xb3   : > { %4887 = dma.hbm_to_vmem [thread:$0]  (!%p6607_p12), %s6609_s10, 2048, %s664_s20, [#allocation15], %s6605_s24, %s6605_s24, %s6604_s4  }
  0xb4   : > { %p5261_p11 = pneg %p5260_p10  ;;  %p5267_p9 = por %p5266_p4, %p5265_p2 }
  0xb6   : > { %p5268_p1 = pnand %p5267_p9, %p5261_p11 }
  0xb8   : > { %5271 = shalt.err (!%p5268_p1)
}
  0xb9   : > { %s6610_s12 = sld [smem:[#allocation55_spill]]  ;;  %s5283_s5 = scalar_lea.vmem %s722_s1, 4096 }
  0xba   : > { %p5284_p6 = scmp.ne.s32.totalorder %s722_s1, %s5283_s5  ;;  %p5291_p13 = scmp.lt.s32.totalorder %s722_s1, %s722_s1 }
  0xbb   : > { %p5292_p10 = scmp.lt.s32.totalorder %s5283_s5, %s5283_s5 }
  0xbc   : > { %p5286_p7 = pnand %p5284_p6, %p6606_p3 }
  0xbd   : > { %p5293_p11 = por %p5292_p10, %p5291_p13 }
  0xbe   : > { %p5287_p0 = pneg %p5286_p7 }
  0xbf   : > { %4893 = dma.hbm_to_vmem [thread:$0]  (!%p6607_p12), %s6610_s12, 2048, %s690_s11, [#allocation18], %s6605_s24, %s6605_s24, %s6604_s4  }
  0xc0   : > { %p5294_p2 = pnand %p5293_p11, %p5287_p0 }
  0xc2   : > { %5297 = shalt.err (!%p5294_p2)
}
  0xc3   : > { %s5548_s19 = smov 256   ;;  %s5549_s6 = smov 16  }
  0xc4   : > { %s6611_s16 = sld [smem:[#allocation57_spill]]  ;;  %s5550_s11 = smov [#allocation23]  }
  0xc5   : > { %s737_s20 = sshll.u32 %s5550_s11, 4  ;;  %s5912_s13 = sshll.u32 %s5820_s27, 3  ;;  %s738_s20 = int_to_ptr.vmem [resolvable:$true] %s737_s20 }
  0xc6   : > { %s5309_s10 = scalar_lea.vmem %s738_s20, 4096  ;;  %p5317_p6 = scmp.lt.s32.totalorder %s738_s20, %s738_s20 }
  0xc7   : > { %p5310_p4 = scmp.ne.s32.totalorder %s738_s20, %s5309_s10  ;;  %p5318_p7 = scmp.lt.s32.totalorder %s5309_s10, %s5309_s10 }
  0xc9   : > { %p5312_p9 = pnand %p5310_p4, %p6606_p3  ;;  %p5319_p0 = por %p5318_p7, %p5317_p6 }
  0xca   : > { %4899 = dma.hbm_to_vmem [thread:$0]  (!%p6607_p12), %s6611_s16, 4096, %s722_s1, [#allocation21], %s5548_s19, %s5548_s19, %s5549_s6  }
  0xcb   : > { %p5313_p1 = pneg %p5312_p9 }
  0xcd   : > { %p5320_p13 = pnand %p5319_p0, %p5313_p1 }
  0xcf   : > { %5323 = shalt.err (!%p5320_p13)
}
  0xd0   : > { %s6612_s18 = sld [smem:[#allocation58_spill]]  ;;  %s5925_s3 = sshll.u32 %s5534_s25, 7 }
  0xd1   : > { %s6613_s6 = sld [smem:[#allocation45_spill]]  ;;  %s764_s7 = scalar_lea.vmem [#allocation2], %s5912_s13 }
  0xd2   : > { %s771_s22 = sshll.u32 %s764_s7, 4  ;;  %s761_s11 = scalar_lea.sflag [#allocation3], %s5820_s27  ;;  %s772_s22 = int_to_ptr.vmem [resolvable:$true] %s771_s22 }
  0xd6   : > { %4902 = dma.hbm_to_vmem [thread:$0]  (!%p6607_p12), %s6612_s18, 4096, %s738_s20, [#allocation24], %s6605_s24, %s6605_s24, %s6604_s4  }
  0xd7   : > { %s5931_s21 = scalar_lea.hbm %s6613_s6, %s5925_s3  ;;  %s5329_s20 = scalar_lea.hbm %s6613_s6, 256 }
  0xd8   : > { %s5324_s1 = scalar_lea.hbm %s5931_s21, 128  ;;  %p5330_p11 = scmp.lt.s32.totalorder %s5931_s21, %s6613_s6 }
  0xd9   : > { %p5325_p3 = scmp.ne.s32.totalorder %s5931_s21, %s5324_s1  ;;  %p5331_p2 = scmp.lt.s32.totalorder %s5329_s20, %s5324_s1 }
  0xdb   : > { %p5327_p10 = pnand %p5325_p3, %p5848_p5  ;;  %p5332_p4 = por %p5331_p2, %p5330_p11 }
  0xdd   : > { %p5328_p12 = pneg %p5327_p10 }
  0xdf   : > { %p5333_p9 = pnand %p5332_p4, %p5328_p12 }
  0xe1   : > { %5336 = shalt.err (!%p5333_p9)
}
  0xe2   : > { %s5337_s19 = scalar_lea.vmem %s772_s22, 128  ;;  %s5551_s27 = smov [#allocation2]  }
  0xe3   : > { %p5338_p1 = scmp.ne.s32.totalorder %s772_s22, %s5337_s19  ;;  %s5342_s7 = sshll.u32 %s5551_s27, 4  ;;  %s5343_s7 = int_to_ptr.vmem [resolvable:$false] %s5342_s7 }
  0xe4   : > { %s5344_s12 = scalar_lea.vmem %s5343_s7, 256  ;;  %p5345_p0 = scmp.lt.s32.totalorder %s772_s22, %s5343_s7 }
  0xe5   : > { %p5340_p6 = pnand %p5338_p1, %p5848_p5  ;;  %p5346_p13 = scmp.lt.s32.totalorder %s5344_s12, %s5337_s19 }
  0xe7   : > { %p5341_p7 = pneg %p5340_p6  ;;  %p5347_p3 = por %p5346_p13, %p5345_p0 }
  0xe9   : > { %p5348_p10 = pnand %p5347_p3, %p5341_p7 }
  0xeb   : > { %5351 = shalt.err (!%p5348_p10)
}
  0xec   : > { %4906 = dma.hbm_to_vmem [thread:$0]  (!%p5827_p8), %s5931_s21, 128, %s772_s22, %s761_s11  }
  0xed   : > { %s6614_s24 = sld [smem:[#allocation47_spill]]  ;;  %s803_s10 = scalar_lea.vmem [#allocation7], %s5912_s13 }
  0xee   : > { %s810_s27 = sshll.u32 %s803_s10, 4  ;;  %s811_s27 = int_to_ptr.vmem [resolvable:$true] %s810_s27 }
  0xf3   : > { %s6615_s20 = smov %s6614_s24  ;;  %s808_s5 = scalar_lea.hbm %s6614_s24, %s5925_s3 }
  0xf4   : > { %s5352_s6 = scalar_lea.hbm %s808_s5, 128  ;;  %s5357_s7 = scalar_lea.hbm %s6615_s20, 256 }
  0xf5   : > { %p5353_p12 = scmp.ne.s32.totalorder %s808_s5, %s5352_s6  ;;  %p5358_p4 = scmp.lt.s32.totalorder %s808_s5, %s6615_s20 }
  0xf6   : > { %p5359_p9 = scmp.lt.s32.totalorder %s5357_s7, %s5352_s6 }
  0xf7   : > { %p5355_p11 = pnand %p5353_p12, %p5848_p5 }
  0xf8   : > { %p5360_p1 = por %p5359_p9, %p5358_p4 }
  0xf9   : > { %p5356_p2 = pneg %p5355_p11 }
  0xfb   : > { %p5361_p6 = pnand %p5360_p1, %p5356_p2 }
  0xfd   : > { %5364 = shalt.err (!%p5361_p6)
}
  0xfe   : > { %s5365_s21 = scalar_lea.vmem %s811_s27, 128  ;;  %s5552_s22 = smov [#allocation7]  }
  0xff   : > { %p5366_p7 = scmp.ne.s32.totalorder %s811_s27, %s5365_s21  ;;  %s5370_s11 = sshll.u32 %s5552_s22, 4  ;;  %s5371_s11 = int_to_ptr.vmem [resolvable:$false] %s5370_s11 }
 0x100   : > { %s5372_s1 = scalar_lea.vmem %s5371_s11, 256  ;;  %p5373_p3 = scmp.lt.s32.totalorder %s811_s27, %s5371_s11 }
 0x101   : > { %p5368_p0 = pnand %p5366_p7, %p5848_p5  ;;  %p5374_p10 = scmp.lt.s32.totalorder %s5372_s1, %s5365_s21 }
 0x103   : > { %p5369_p13 = pneg %p5368_p0  ;;  %p5375_p12 = por %p5374_p10, %p5373_p3 }
 0x105   : > { %p5376_p11 = pnand %p5375_p12, %p5369_p13 }
 0x107   : > { %5379 = shalt.err (!%p5376_p11)
}
 0x108   : > { %4912 = dma.hbm_to_vmem [thread:$0]  (!%p5827_p8), %s808_s5, 128, %s811_s27, %s5842_s0  }
 0x109   : > { %s6616_s6 = sld [smem:[#allocation48_spill]]  ;;  %s821_s24 = scalar_lea.vmem [#allocation8], %s5912_s13 }
 0x10a   : > { %s828_s10 = sshll.u32 %s821_s24, 4  ;;  %s6617_s12 = sand.u32 1, %s5534_s25   ;;  %s829_s10 = int_to_ptr.vmem [resolvable:$true] %s828_s10 }
 0x10b   : > { %s818_s19 = scalar_lea.sflag [#allocation9], %s6617_s12 }
 0x10f   : > { %s5973_s4 = scalar_lea.hbm %s6616_s6, %s5925_s3  ;;  %s5385_s5 = scalar_lea.hbm %s6616_s6, 256 }
 0x110   : > { %s5380_s7 = scalar_lea.hbm %s5973_s4, 128  ;;  %p5386_p1 = scmp.lt.s32.totalorder %s5973_s4, %s6616_s6 }
 0x111   : > { %p5381_p2 = scmp.ne.s32.totalorder %s5973_s4, %s5380_s7  ;;  %p5387_p6 = scmp.lt.s32.totalorder %s5385_s5, %s5380_s7 }
 0x113   : > { %p5383_p4 = pnand %p5381_p2, %p5848_p5  ;;  %p5388_p7 = por %p5387_p6, %p5386_p1 }
 0x115   : > { %p5384_p9 = pneg %p5383_p4 }
 0x117   : > { %p5389_p0 = pnand %p5388_p7, %p5384_p9 }
 0x119   : > { %5392 = shalt.err (!%p5389_p0)
}
 0x11a   : > { %s5393_s13 = scalar_lea.vmem %s829_s10, 128  ;;  %s5553_s22 = smov [#allocation8]  }
 0x11b   : > { %p5394_p13 = scmp.ne.s32.totalorder %s829_s10, %s5393_s13  ;;  %s5398_s11 = sshll.u32 %s5553_s22, 4  ;;  %s5399_s11 = int_to_ptr.vmem [resolvable:$false] %s5398_s11 }
 0x11c   : > { %s5400_s1 = scalar_lea.vmem %s5399_s11, 256  ;;  %p5401_p12 = scmp.lt.s32.totalorder %s829_s10, %s5399_s11 }
 0x11d   : > { %p5396_p3 = pnand %p5394_p13, %p5848_p5  ;;  %p5402_p11 = scmp.lt.s32.totalorder %s5400_s1, %s5393_s13 }
 0x11f   : > { %p5397_p10 = pneg %p5396_p3  ;;  %p5403_p2 = por %p5402_p11, %p5401_p12 }
 0x121   : > { %p5404_p4 = pnand %p5403_p2, %p5397_p10 }
 0x123   : > { %5407 = shalt.err (!%p5404_p4)
}
 0x124   : > { %4915 = dma.hbm_to_vmem [thread:$0]  (!%p5827_p8), %s5973_s4, 128, %s829_s10, %s818_s19  }
 0x125   : > { %p6618_p9 = scmp.ne.s32.totalorder %s6586_s2, 0 }
 0x126   : > { %s5997_s28 = sand.u32 (!%p6618_p9), 1, %s5526_s30   ;;  %p6619_p5 = scmp.ne.s32.totalorder (!%p6618_p9), %s6596_s23, 0 }
 0x127   : > { %837 = sbr.rel (%p6618_p9) target bundleno = 7024 (0x1b70), region = 108  ;;  %s6000_s16 = sshll.u32 (!%p6618_p9), %s5997_s28, 3 }
 0x128   : > { %s840_s18 = scalar_lea.sflag (!%p6618_p9), [#allocation3], %s5997_s28  ;;  %s843_s24 = scalar_lea.vmem (!%p6618_p9), [#allocation2], %s6000_s16 }
 0x12c   : > { %5477 = dma.done.wait (%p6619_p5), %s840_s18, 128  }
 0x12d   : > { %5479 = vsyncadd (%p6619_p5), %s840_s18, 4294967168  ;;  %s848_s2 = sand.u32 1, %s5704_s26   ;;  %s4137_s29 = sshll.u32 %s5997_s28, 4 }
 0x12e   : > { %s849_s4 = scalar_lea.sflag [#allocation6], %s848_s2  ;;  %s6010_s10 = scalar_lea.vmem [#allocation5], %s4137_s29 }
 0x12f   : > { %5481 = dma.done.wait (%p6619_p5), %s849_s4, 384  }
 0x130   : > { %5483 = vsyncadd (%p6619_p5), %s849_s4, 4294966912  ;;  %s861_s12 = scalar_lea.vmem [#allocation7], %s6000_s16  ;;  %s867_s19 = scalar_lea.sflag [#allocation9], %s848_s2 }
 0x131   : > { %s870_s7 = scalar_lea.vmem [#allocation8], %s6000_s16 }
 0x132   : > { %5485 = dma.done.wait (%p6619_p5), %s867_s19, 128  }
 0x133   : > { %5487 = vsyncadd (%p6619_p5), %s867_s19, 4294967168  ;;  %p6620_p8 = scmp.eq.s32.totalorder %s5704_s26, 0 }
 0x135   : > { %5489 = dma.done.wait (%p6620_p8), [#allocation9], 2048   ;;  %p6621_p1 = pmov %p6620_p8 }
 0x137   : > { %5491 = vsyncadd (%p6621_p1), [#allocation9], 4294965248  ;;  %p6622_p6 = pmov %p6621_p1 }
 0x138   : > { %p6623_p7 = pmov %p6621_p1 }
 0x139   : > { %5493 = dma.done.wait (%p6622_p6), [#allocation12], 4096  }
 0x13a   : > { %5495 = vsyncadd (%p6623_p7), [#allocation12], 4294963200  ;;  %p6624_p0 = pmov %p6621_p1 }
 0x13c   : > { %5497 = dma.done.wait (%p6624_p0), [#allocation15], 4096   ;;  %p6625_p13 = pmov %p6624_p0 }
 0x13d   : > { %p6626_p3 = pmov %p6624_p0 }
 0x13e   : > { %5499 = vsyncadd (%p6625_p13), [#allocation15], 4294963200 }
 0x13f   : > { %5501 = dma.done.wait (%p6626_p3), [#allocation18], 4096   ;;  %p6627_p10 = pmov %p6624_p0 }
 0x140   : > { %p6628_p12 = pmov %p6624_p0 }
 0x141   : > { %5503 = vsyncadd (%p6627_p10), [#allocation18], 4294963200 }
 0x142   : > { %5505 = dma.done.wait (%p6628_p12), [#allocation21], 6144   ;;  %p6629_p11 = pmov %p6624_p0 }
 0x143   : > { %p6630_p2 = pmov %p6624_p0 }
 0x144   : > { %5507 = vsyncadd (%p6629_p11), [#allocation21], 4294961152 }
 0x145   : > { %5509 = dma.done.wait (%p6630_p2), [#allocation24], 4096   ;;  %p6631_p4 = pmov %p6624_p0 }
 0x146   : > { %v5554_v0 = vmov 0.0   ;;  %vm5555_vm0 = vmmov 0   ;;  %v1013_v1 = vld [vmem:[#allocation10 + $0x78] sm:$0xff]  ;;  %v1012_v3 = vld [vmem:[#allocation10 + $0x70] sm:$0xff]  ;;  %v1011_v5 = vld [vmem:[#allocation10 + $0x68] sm:$0xff]  ;;  %vm1275_vm1 = vcmask 261120  }
 0x147   : > { %5511 = vsyncadd (%p6631_p4), [#allocation24], 4294963200  ;;  %4426 = vmatprep.subr.mxu0 %v5554_v0  ;;  %4461 = vmatprep.subr.mxu1 %v5554_v0  ;;  %v1029_v2 = vld [vmem:[#allocation11 + $0x78] sm:$0xff]  ;;  %v1028_v4 = vld [vmem:[#allocation11 + $0x70] sm:$0xff]  ;;  %s5556_s23 = smov 96   ;;  %vm1354_vm3 = vcmask 64512  }
 0x148   : > { %4458 = vmatprep.mubr.msk.f32.mxu0 %vm5555_vm0, %v5554_v0  ;;  %4493 = vmatprep.mubr.msk.f32.mxu1 %vm5555_vm0, %v5554_v0  ;;  %v1027_v6 = vld [vmem:[#allocation11 + $0x68] sm:$0xff]  ;;  %v1010_v7 = vld [vmem:[#allocation10 + $0x60] sm:$0xff]  ;;  %v1009_v9 = vld [vmem:[#allocation10 + $0x58] sm:$0xff]  ;;  %s5557_s21 = smov 64   ;;  %s5558_s0 = smov 32   ;;  %vm2627_vm5 = vcmask 130048  }
 0x149   : > { %4427 = vmatpush3.msra.mxu0 %v1013_v1  ;;  %4462 = vmatpush3.msra.mxu1 %v1029_v2  ;;  %v1026_v8 = vld [vmem:[#allocation11 + $0x60] sm:$0xff]  ;;  %v1025_v10 = vld [vmem:[#allocation11 + $0x58] sm:$0xff]  ;;  %v1008_v11 = vld [vmem:[#allocation10 + $0x50] sm:$0xff]  ;;  %s4151_s22 = sshll.u32 %s5997_s28, 5  ;;  %s6632_s19 = sld [smem:[#allocation59_spill]] }
 0x14a   : > { %4428 = vmatprep.subr.mxu0 %v5554_v0  ;;  %4463 = vmatprep.subr.mxu1 %v5554_v0  ;;  %v1024_v12 = vld [vmem:[#allocation11 + $0x50] sm:$0xff]  ;;  %v1007_v13 = vld [vmem:[#allocation10 + $0x48] sm:$0xff]  ;;  %v1006_v15 = vld [vmem:[#allocation10 + $0x40] sm:$0xff]  ;;  %s6310_s11 = scalar_lea.vmem [#allocation26], %s4151_s22  ;;  %s6634_s27 = sld [smem:[#allocation63_spill]] }
 0x14b   : > { %4429 = vmatpush3.msra.mxu0 %v1012_v3  ;;  %4464 = vmatpush3.msra.mxu1 %v1028_v4  ;;  %v1023_v14 = vld [vmem:[#allocation11 + $0x48] sm:$0xff]  ;;  %v1022_v16 = vld [vmem:[#allocation11 + $0x40] sm:$0xff]  ;;  %v1005_v17 = vld [vmem:[#allocation10 + $0x38] sm:$0xff]  ;;  %s3821_s13 = scalar_lea.sflag [#allocation27], %s5997_s28  ;;  %s5559_s1 = smov [#allocation26]  }
 0x14c   : > { %4430 = vmatprep.subr.mxu0 %v5554_v0  ;;  %4465 = vmatprep.subr.mxu1 %v5554_v0  ;;  %v1021_v18 = vld [vmem:[#allocation11 + $0x38] sm:$0xff]  ;;  %v1004_v19 = vld [vmem:[#allocation10 + $0x30] sm:$0xff]  ;;  %v1003_v21 = vld [vmem:[#allocation10 + $0x28] sm:$0xff]  ;;  %s5412_s18 = sshll.u32 %s5559_s1, 4  ;;  %s5413_s18 = int_to_ptr.vmem [resolvable:$false] %s5412_s18 }
 0x14d   : > { %4431 = vmatpush3.msra.mxu0 %v1011_v5  ;;  %4466 = vmatpush3.msra.mxu1 %v1027_v6  ;;  %v1020_v20 = vld [vmem:[#allocation11 + $0x30] sm:$0xff]  ;;  %v1019_v22 = vld [vmem:[#allocation11 + $0x28] sm:$0xff]  ;;  %v1002_v23 = vld [vmem:[#allocation10 + $0x20] sm:$0xff] }
 0x14e   : > { %4432 = vmatprep.subr.mxu0 %v5554_v0  ;;  %4467 = vmatprep.subr.mxu1 %v5554_v0  ;;  %v1018_v24 = vld [vmem:[#allocation11 + $0x20] sm:$0xff]  ;;  %v1001_v25 = vld [vmem:[#allocation10 + $0x18] sm:$0xff]  ;;  %v1000_v27 = vld [vmem:[#allocation10 + $0x10] sm:$0xff] }
 0x14f   : > { %4433 = vmatpush3.msra.mxu0 %v1010_v7  ;;  %4468 = vmatpush3.msra.mxu1 %v1026_v8  ;;  %v1017_v26 = vld [vmem:[#allocation11 + $0x18] sm:$0xff]  ;;  %v1016_v28 = vld [vmem:[#allocation11 + $0x10] sm:$0xff]  ;;  %v999_v29 = vld [vmem:[#allocation10 + $0x8] sm:$0xff] }
 0x150   : > { %4434 = vmatprep.subr.mxu0 %v5554_v0  ;;  %4469 = vmatprep.subr.mxu1 %v5554_v0  ;;  %v1015_v30 = vld [vmem:[#allocation11 + $0x8] sm:$0xff]  ;;  %v998_v31 = vld [vmem:[#allocation10] sm:$0xff]  ;;  %v6082_v33 = vld [vmem:[%s843_s24] sm:$0xff] }
 0x151   : > { %4435 = vmatpush3.msra.mxu0 %v1009_v9  ;;  %4470 = vmatpush3.msra.mxu1 %v1025_v10  ;;  %v1014_v32 = vld [vmem:[#allocation11] sm:$0xff]  ;;  %v1045_v39 = vld [vmem:[#allocation13 + $0x78] sm:$0xff]  ;;  %v1044_v40 = vld [vmem:[#allocation13 + $0x70] sm:$0xff] }
 0x152   : > { %4436 = vmatprep.subr.mxu0 %v5554_v0  ;;  %4471 = vmatprep.subr.mxu1 %v5554_v0  ;;  %v1043_v41 = vld [vmem:[#allocation13 + $0x68] sm:$0xff]  ;;  %v1042_v42 = vld [vmem:[#allocation13 + $0x60] sm:$0xff]  ;;  %v1041_v43 = vld [vmem:[#allocation13 + $0x58] sm:$0xff] }
 0x153   : > { %4437 = vmatpush3.msra.mxu0 %v1008_v11  ;;  %4472 = vmatpush3.msra.mxu1 %v1024_v12  ;;  %v1040_v44 = vld [vmem:[#allocation13 + $0x50] sm:$0xff]  ;;  %v1039_v45 = vld [vmem:[#allocation13 + $0x48] sm:$0xff]  ;;  %v1038_v46 = vld [vmem:[#allocation13 + $0x40] sm:$0xff] }
 0x154   : > { %4438 = vmatprep.subr.mxu0 %v5554_v0  ;;  %4473 = vmatprep.subr.mxu1 %v5554_v0  ;;  %v1037_v47 = vld [vmem:[#allocation13 + $0x38] sm:$0xff]  ;;  %v1036_v48 = vld [vmem:[#allocation13 + $0x30] sm:$0xff]  ;;  %v1035_v49 = vld [vmem:[#allocation13 + $0x28] sm:$0xff] }
 0x155   : > { %4439 = vmatpush3.msra.mxu0 %v1007_v13  ;;  %4474 = vmatpush3.msra.mxu1 %v1023_v14  ;;  %v1034_v50 = vld [vmem:[#allocation13 + $0x20] sm:$0xff]  ;;  %v1033_v51 = vld [vmem:[#allocation13 + $0x18] sm:$0xff]  ;;  %v1032_v52 = vld [vmem:[#allocation13 + $0x10] sm:$0xff] }
 0x156   : > { %4440 = vmatprep.subr.mxu0 %v5554_v0  ;;  %4475 = vmatprep.subr.mxu1 %v5554_v0  ;;  %v1031_v53 = vld [vmem:[#allocation13 + $0x8] sm:$0xff]  ;;  %v1030_v54 = vld [vmem:[#allocation13] sm:$0xff] }
 0x157   : > { %4441 = vmatpush3.msra.mxu0 %v1006_v15  ;;  %4476 = vmatpush3.msra.mxu1 %v1022_v16  ;;  %v6130_v55 = vld [vmem:[%s861_s12] sm:$0xff] }
 0x158   : > { %4442 = vmatprep.subr.mxu0 %v5554_v0  ;;  %4477 = vmatprep.subr.mxu1 %v5554_v0  ;;  %vm1352_vm2 = vcmp.eq.f32.partialorder %v6130_v55, 0.0  ;;  %v1061_v55 = vld [vmem:[#allocation14 + $0x78] sm:$0xff] }
 0x159   : > { %4443 = vmatpush3.msra.mxu0 %v1005_v17  ;;  %4478 = vmatpush3.msra.mxu1 %v1021_v18 }
 0x15a   : > { %4444 = vmatprep.subr.mxu0 %v5554_v0  ;;  %4479 = vmatprep.subr.mxu1 %v5554_v0 }
 0x15b   : > { %4445 = vmatpush3.msra.mxu0 %v1004_v19  ;;  %4480 = vmatpush3.msra.mxu1 %v1020_v20 }
 0x15c   : > { %4446 = vmatprep.subr.mxu0 %v5554_v0  ;;  %4481 = vmatprep.subr.mxu1 %v5554_v0 }
 0x15d   : > { %4447 = vmatpush3.msra.mxu0 %v1003_v21  ;;  %4482 = vmatpush3.msra.mxu1 %v1019_v22 }
 0x15e   : > { %4448 = vmatprep.subr.mxu0 %v5554_v0  ;;  %4483 = vmatprep.subr.mxu1 %v5554_v0 }
 0x15f   : > { %4449 = vmatpush3.msra.mxu0 %v1002_v23  ;;  %4484 = vmatpush3.msra.mxu1 %v1018_v24  ;;  %v1053_v24 = vld [vmem:[#allocation14 + $0x38] sm:$0xff] }
 0x160   : > { %4450 = vmatprep.subr.mxu0 %v5554_v0  ;;  %4485 = vmatprep.subr.mxu1 %v5554_v0 }
 0x161   : > { %4451 = vmatpush3.msra.mxu0 %v1001_v25  ;;  %4486 = vmatpush3.msra.mxu1 %v1017_v26  ;;  %v1052_v25 = vld [vmem:[#allocation14 + $0x30] sm:$0xff]  ;;  %v1051_v26 = vld [vmem:[#allocation14 + $0x28] sm:$0xff] }
 0x162   : > { %4452 = vmatprep.subr.mxu0 %v5554_v0  ;;  %4487 = vmatprep.subr.mxu1 %v5554_v0 }
 0x163   : > { %4453 = vmatpush3.msra.mxu0 %v1000_v27  ;;  %4488 = vmatpush3.msra.mxu1 %v1016_v28  ;;  %v1050_v27 = vld [vmem:[#allocation14 + $0x20] sm:$0xff]  ;;  %v1049_v28 = vld [vmem:[#allocation14 + $0x18] sm:$0xff] }
 0x164   : > { %4454 = vmatprep.subr.mxu0 %v5554_v0  ;;  %4489 = vmatprep.subr.mxu1 %v5554_v0 }
 0x165   : > { %4455 = vmatpush3.msra.mxu0 %v999_v29  ;;  %4490 = vmatpush3.msra.mxu1 %v1015_v30  ;;  %v1048_v30 = vld [vmem:[#allocation14 + $0x10] sm:$0xff] }
 0x166   : > { %4456 = vmatprep.subr.mxu0 %v5554_v0  ;;  %4491 = vmatprep.subr.mxu1 %v5554_v0 }
 0x167   : > { %4457 = vmatpush3.msra.mxu0 %v998_v31  ;;  %4492 = vmatpush3.msra.mxu1 %v1014_v32  ;;  %v1047_v32 = vld [vmem:[#allocation14 + $0x8] sm:$0xff] }
 0x168   : > { %4459 = vmatmul.mubr.f32.vlgmr.msra.gmra.mxu0 %v6082_v33  ;;  %4494 = vmatmul.mubr.f32.vlgmr.msra.gmra.mxu1 %v6082_v33 }
 0x169   : > { %4531 = vmatprep.subr.mxu1 %v5554_v0  ;;  %4533 = vmatprep.mubr.msk.f32.mxu1 %vm5555_vm0, %v5554_v0 }
 0x16a   : > { %4496 = vmatprep.subr.mxu0 %v5554_v0  ;;  %4528 = vmatprep.mubr.msk.f32.mxu0 %vm5555_vm0, %v5554_v0 }
 0x16b   : > { %4497 = vmatpush3.msra.mxu0 %v1045_v39 }
 0x16c   : > { %4498 = vmatprep.subr.mxu0 %v5554_v0 }
 0x16d   : > { %4499 = vmatpush3.msra.mxu0 %v1044_v40 }
 0x16e   : > { %4500 = vmatprep.subr.mxu0 %v5554_v0 }
 0x16f   : > { %4501 = vmatpush3.msra.mxu0 %v1043_v41 }
 0x170   : > { %4502 = vmatprep.subr.mxu0 %v5554_v0 }
 0x171   : > { %4503 = vmatpush3.msra.mxu0 %v1042_v42 }
 0x172   : > { %4504 = vmatprep.subr.mxu0 %v5554_v0 }
 0x173   : > { %4505 = vmatpush3.msra.mxu0 %v1041_v43 }
 0x174   : > { %4506 = vmatprep.subr.mxu0 %v5554_v0 }
 0x175   : > { %4507 = vmatpush3.msra.mxu0 %v1040_v44 }
 0x176   : > { %4508 = vmatprep.subr.mxu0 %v5554_v0 }
 0x177   : > { %4509 = vmatpush3.msra.mxu0 %v1039_v45 }
 0x178   : > { %4510 = vmatprep.subr.mxu0 %v5554_v0 }
 0x179   : > { %4511 = vmatpush3.msra.mxu0 %v1038_v46 }
 0x17a   : > { %4512 = vmatprep.subr.mxu0 %v5554_v0 }
 0x17b   : > { %4513 = vmatpush3.msra.mxu0 %v1037_v47 }
 0x17c   : > { %4514 = vmatprep.subr.mxu0 %v5554_v0 }
 0x17d   : > { %4515 = vmatpush3.msra.mxu0 %v1036_v48 }
 0x17e   : > { %4516 = vmatprep.subr.mxu0 %v5554_v0 }
 0x17f   : > { %4517 = vmatpush3.msra.mxu0 %v1035_v49 }
 0x180   : > { %4518 = vmatprep.subr.mxu0 %v5554_v0 }
 0x181   : > { %4519 = vmatpush3.msra.mxu0 %v1034_v50 }
 0x182   : > { %4520 = vmatprep.subr.mxu0 %v5554_v0 }
 0x183   : > { %4521 = vmatpush3.msra.mxu0 %v1033_v51 }
 0x184   : > { %4522 = vmatprep.subr.mxu0 %v5554_v0 }
 0x185   : > { %4523 = vmatpush3.msra.mxu0 %v1032_v52 }
 0x186   : > { %4524 = vmatprep.subr.mxu0 %v5554_v0 }
 0x187   : > { %4525 = vmatpush3.msra.mxu0 %v1031_v53  ;;  %v1057_v53 = vld [vmem:[#allocation14 + $0x58] sm:$0xff] }
 0x188   : > { %4526 = vmatprep.subr.mxu0 %v5554_v0 }
 0x189   : > { %4527 = vmatpush3.msra.mxu0 %v1030_v54  ;;  %v1056_v54 = vld [vmem:[#allocation14 + $0x50] sm:$0xff] }
 0x18a   : > { %4529 = vmatmul.mubr.f32.vlgmr.msra.gmra.mxu0 %v6082_v33  ;;  %4583 = vmatprep.subr.mxu0 %v5554_v0 }
 0x18b   : > { %4591 = vmatprep.mubr.msk.f32.mxu0 %vm5555_vm0, %v5554_v0  ;;  %4584 = vmatpush3.msra.mxu0 %v1057_v53  ;;  %v2277_v53 = vld [vmem:[#allocation17 + $0x10] sm:$0xff] }
 0x18c   : > { %4585 = vmatprep.subr.mxu0 %v5554_v0 }
 0x18d   : > { %4586 = vmatpush3.msra.mxu0 %v1056_v54  ;;  %v2265_v54 = vld [vmem:[#allocation16 + $0x30] sm:$0xff] }
 0x18e   : > { %4587 = vmatprep.subr.mxu0 %v5554_v0 }
 0x228   : > { %v1130_v34 = vpop.f32.mrf.mxu0  ;;  %v6094_v35 = vpop.f32.mrf.mxu1 }
 0x229   : > { %v6096_v36 = vmul.f32 0.17677669, %v1130_v34  ;;  %1441 = vrot.lane.b32.xlu1 %v6094_v35, %s5556_s23  ;;  %4532 = vmatpush3.xpose.msk.msra.mxu1 %vm1275_vm1, %v6094_v35  ;;  %v1046_v34 = vld [vmem:[#allocation14] sm:$0xff] }
 0x22a   : > { %v4460_v37 = vpop.f32.mrf.mxu0  ;;  %v4495_v38 = vpop.f32.mrf.mxu1  ;;  %4536 = vmatprep.subr.mxu1 %v5554_v0 }
 0x22c   : > { %4534 = vmatmul.mubr.msk.f32.vlgmr.msra.gmra.mxu1 %vm1275_vm1, %v6096_v36 }
 0x22d   : > { %1439 = vrot.lane.b32.xlu1 %v6096_v36, %s5556_s23  ;;  %4538 = vmatprep.mubr.msk.f32.mxu1 %vm5555_vm0, %v5554_v0 }
 0x24a   : > { %v6137_v2 = vpop.f32.mrf.mxu0 }
 0x24b   : > { %4537 = vmatpush3.msra.mxu1 %v6137_v2 }
 0x24c   : > { %v4530_v3 = vpop.f32.mrf.mxu0  ;;  %4541 = vmatprep.subr.mxu1 %v5554_v0 }
 0x29b   : > { %v1442_v6 = vpop.permute.xlu1 %1441 }
 0x29f   : > { %v1440_v8 = vpop.permute.xlu1 %1439 }
 0x2ec   : > { %v1348_v56 = vpop.f32.mrf.mxu1 }
 0x2ed   : > { %v1353_v57 = vsel %vm1352_vm2, -1e+09, %v1348_v56  ;;  %v1055_v56 = vld [vmem:[#allocation14 + $0x48] sm:$0xff] }
 0x2ee   : > { %v4535_v58 = vpop.f32.mrf.mxu1  ;;  %v1355_v59 = vsel %vm1354_vm3, %v1353_v57, -inf  ;;  %4588 = vmatpush3.msra.mxu0 %v1055_v56  ;;  %v2276_v56 = vld [vmem:[#allocation17 + $0x8] sm:$0xff] }
 0x2ef   : > { %1356 = vmax.xlane.f32.xlu0 %v1355_v59  ;;  %4589 = vmatprep.subr.mxu0 %v5554_v0 }
 0x378   : > { %v1357_v60 = vpop.xlane.xlu0 %1356 }
 0x379   : > { %v1358_v61 = vsub.f32 %v1353_v57, %v1357_v60 }
 0x37b   : > { %v1359_v62 = vmul.f32 1.442695, %v1358_v61  ;;  %v1054_v61 = vld [vmem:[#allocation14 + $0x40] sm:$0xff] }
 0x37c   : > { %4590 = vmatpush3.msra.mxu0 %v1054_v61  ;;  %v2262_v61 = vld [vmem:[#allocation16 + $0x18] sm:$0xff] }
 0x37d   : > { %4998 = vpow2.f32 %v1359_v62  ;;  %4604 = vmatprep.subr.mxu0 %v5554_v0 }
 0x38a   : > { %v4999_v63 = vpop.eup %4998 }
 0x38b   : > { %v1361_v1 = vsel %vm1354_vm3, %v4999_v63, 0.0 }
 0x38c   : > { %1362 = vadd.xlane.f32.xlu0 %v1361_v1 }
 0x415   : > { %v1363_v4 = vpop.xlane.xlu0 %1362 }
 0x416   : > { %5000 = vrcp.f32 %v1363_v4 }
 0x423   : > { %v5001_v5 = vpop.eup %5000 }
 0x424   : > { %v1365_v7 = vmul.f32 %v5001_v5, %v4999_v63 }
 0x426   : > { %4539 = vmatmul.mubr.msk.f32.vlgmr.msra.gmra.mxu1 %vm1354_vm3, %v1365_v7 }
 0x427   : > { %4542 = vmatpush3.xpose.msk.msra.mxu1 %vm1275_vm1, %v1442_v6  ;;  %4543 = vmatprep.mubr.msk.f32.mxu1 %vm5555_vm0, %v5554_v0 }
 0x428   : > { %4546 = vmatprep.subr.mxu1 %v5554_v0 }
 0x42a   : > { %4544 = vmatmul.mubr.msk.f32.vlgmr.msra.gmra.mxu1 %vm1275_vm1, %v1440_v8 }
 0x42b   : > { %4548 = vmatprep.mubr.msk.f32.mxu1 %vm5555_vm0, %v5554_v0 }
 0x4e6   : > { %v1435_v9 = vpop.f32.mrf.mxu1 }
 0x4e8   : > { %v4540_v10 = vpop.f32.mrf.mxu1 }
 0x4ea   : > { %v1513_v11 = vpop.f32.mrf.mxu1 }
 0x4eb   : > { %v1517_v12 = vsel %vm1352_vm2, -1e+09, %v1513_v11 }
 0x4ec   : > { %v4545_v13 = vpop.f32.mrf.mxu1  ;;  %v1518_v14 = vsel %vm1354_vm3, %v1517_v12, -inf }
 0x4ed   : > { %1519 = vmax.xlane.f32.xlu0 %v1518_v14  ;;  %v1059_v13 = vld [vmem:[#allocation14 + $0x68] sm:$0xff] }
 0x503   : > { %1530 = vrot.lane.b32.xlu0 %v6137_v2, %s5556_s23 }
 0x507   : > { %1754 = vrot.lane.b32.xlu0 %v6094_v35, %s5557_s21 }
 0x50b   : > { %1752 = vrot.lane.b32.xlu0 %v6096_v36, %s5557_s21 }
 0x576   : > { %v1520_v15 = vpop.xlane.xlu0 %1519 }
 0x577   : > { %v1521_v16 = vsub.f32 %v1517_v12, %v1520_v15  ;;  %v1060_v12 = vld [vmem:[#allocation14 + $0x70] sm:$0xff] }
 0x579   : > { %v1522_v17 = vmul.f32 1.442695, %v1521_v16 }
 0x57a   : > { %v1531_v18 = vpop.permute.xlu0 %1530 }
 0x57b   : > { %5002 = vpow2.f32 %v1522_v17  ;;  %4547 = vmatpush3.msra.mxu1 %v1531_v18 }
 0x57c   : > { %4551 = vmatprep.subr.mxu1 %v5554_v0 }
 0x588   : > { %v5003_v19 = vpop.eup %5002 }
 0x589   : > { %v1524_v20 = vsel %vm1354_vm3, %v5003_v19, 0.0 }
 0x58a   : > { %1525 = vadd.xlane.f32.xlu1 %v1524_v20 }
 0x59b   : > { %1842 = vrot.lane.b32.xlu1 %v6137_v2, %s5557_s21 }
 0x59f   : > { %1994 = vrot.lane.b32.xlu1 %v6094_v35, %s5558_s0  ;;  %v1755_v35 = vpop.permute.xlu0 %1754 }
 0x5a3   : > { %v1753_v37 = vpop.permute.xlu0 %1752 }
 0x613   : > { %v1526_v21 = vpop.xlane.xlu1 %1525 }
 0x614   : > { %5004 = vrcp.f32 %v1526_v21 }
 0x617   : > { %v1843_v38 = vpop.permute.xlu1 %1842 }
 0x61b   : > { %v1995_v57 = vpop.permute.xlu1 %1994 }
 0x621   : > { %v5005_v22 = vpop.eup %5004 }
 0x622   : > { %v1528_v23 = vmul.f32 %v5005_v22, %v5003_v19  ;;  %v1058_v19 = vld [vmem:[#allocation14 + $0x60] sm:$0xff] }
 0x624   : > { %4549 = vmatmul.mubr.msk.f32.vlgmr.msra.gmra.mxu1 %vm1354_vm3, %v1528_v23 }
 0x625   : > { %4552 = vmatpush3.msra.mxu1 %v1053_v24  ;;  %4559 = vmatprep.mubr.msk.f32.mxu1 %vm5555_vm0, %v5554_v0 }
 0x626   : > { %4553 = vmatprep.subr.mxu1 %v5554_v0 }
 0x627   : > { %4554 = vmatpush3.msra.mxu1 %v1052_v25 }
 0x628   : > { %4555 = vmatprep.subr.mxu1 %v5554_v0 }
 0x629   : > { %4556 = vmatpush3.msra.mxu1 %v1051_v26  ;;  %v2290_v26 = vld [vmem:[#allocation17 + $0x78] sm:$0xff] }
 0x62a   : > { %4557 = vmatprep.subr.mxu1 %v5554_v0 }
 0x62b   : > { %4558 = vmatpush3.msra.mxu1 %v1050_v27  ;;  %v2289_v27 = vld [vmem:[#allocation17 + $0x70] sm:$0xff] }
 0x62c   : > { %4562 = vmatprep.subr.mxu1 %v5554_v0 }
 0x6e4   : > { %v1602_v29 = vpop.f32.mrf.mxu1 }
 0x6e5   : > { %4560 = vmatmul.mubr.msk.f32.vlgmr.msra.gmra.mxu1 %vm1275_vm1, %v1602_v29  ;;  %v2288_v29 = vld [vmem:[#allocation17 + $0x68] sm:$0xff] }
 0x6e6   : > { %4563 = vmatpush3.msra.mxu1 %v1049_v28  ;;  %v4550_v31 = vpop.f32.mrf.mxu1  ;;  %4570 = vmatprep.mubr.msk.f32.mxu1 %vm5555_vm0, %v5554_v0  ;;  %v2274_v28 = vld [vmem:[#allocation16 + $0x78] sm:$0xff] }
 0x6e7   : > { %4564 = vmatprep.subr.mxu1 %v5554_v0  ;;  %v2272_v31 = vld [vmem:[#allocation16 + $0x68] sm:$0xff] }
 0x6e8   : > { %4565 = vmatpush3.msra.mxu1 %v1048_v30  ;;  %v2273_v30 = vld [vmem:[#allocation16 + $0x70] sm:$0xff] }
 0x6e9   : > { %4566 = vmatprep.subr.mxu1 %v5554_v0 }
 0x6ea   : > { %4567 = vmatpush3.msra.mxu1 %v1047_v32  ;;  %v2287_v32 = vld [vmem:[#allocation17 + $0x60] sm:$0xff] }
 0x6eb   : > { %4568 = vmatprep.subr.mxu1 %v5554_v0 }
 0x6ec   : > { %4569 = vmatpush3.msra.mxu1 %v1046_v34  ;;  %v2286_v34 = vld [vmem:[#allocation17 + $0x58] sm:$0xff] }
 0x6ed   : > { %4571 = vmatmul.mubr.msk.f32.vlgmr.msra.gmra.mxu1 %vm1275_vm1, %v1435_v9  ;;  %4573 = vmatprep.subr.mxu1 %v5554_v0 }
 0x6ee   : > { %4574 = vmatpush3.xpose.msk.msra.mxu1 %vm1275_vm1, %v1755_v35  ;;  %4575 = vmatprep.mubr.msk.f32.mxu1 %vm5555_vm0, %v5554_v0  ;;  %v2285_v35 = vld [vmem:[#allocation17 + $0x50] sm:$0xff] }
 0x6ef   : > { %4578 = vmatprep.subr.mxu1 %v5554_v0 }
 0x6f1   : > { %4576 = vmatmul.mubr.msk.f32.vlgmr.msra.gmra.mxu1 %vm1275_vm1, %v1753_v37  ;;  %v2284_v37 = vld [vmem:[#allocation17 + $0x48] sm:$0xff] }
 0x6f2   : > { %4579 = vmatpush3.msra.mxu1 %v1843_v38  ;;  %4580 = vmatprep.mubr.msk.f32.mxu1 %vm5555_vm0, %v5554_v0  ;;  %v2283_v38 = vld [vmem:[#allocation17 + $0x40] sm:$0xff] }
 0x6f3   : > { %4594 = vmatprep.subr.mxu1 %v5554_v0 }
 0x7a5   : > { %v1675_v39 = vpop.f32.mrf.mxu1 }
 0x7a7   : > { %v4561_v40 = vpop.f32.mrf.mxu1 }
 0x7ad   : > { %v1748_v41 = vpop.f32.mrf.mxu1 }
 0x7ae   : > { %v6187_v42 = vadd.f32 %v1748_v41, %v1675_v39 }
 0x7af   : > { %v4572_v43 = vpop.f32.mrf.mxu1 }
 0x7b0   : > { %v2282_v43 = vld [vmem:[#allocation17 + $0x38] sm:$0xff] }
 0x7b1   : > { %v1826_v44 = vpop.f32.mrf.mxu1 }
 0x7b2   : > { %v1830_v45 = vsel %vm1352_vm2, -1e+09, %v1826_v44  ;;  %v2270_v44 = vld [vmem:[#allocation16 + $0x58] sm:$0xff] }
 0x7b3   : > { %v4577_v46 = vpop.f32.mrf.mxu1  ;;  %v1831_v47 = vsel %vm1354_vm3, %v1830_v45, -inf }
 0x7b4   : > { %1832 = vmax.xlane.f32.xlu0 %v1831_v47  ;;  %v2269_v46 = vld [vmem:[#allocation16 + $0x50] sm:$0xff]  ;;  %v2280_v47 = vld [vmem:[#allocation17 + $0x28] sm:$0xff] }
 0x83d   : > { %v1833_v48 = vpop.xlane.xlu0 %1832 }
 0x83e   : > { %v1834_v49 = vsub.f32 %v1830_v45, %v1833_v48  ;;  %v2281_v45 = vld [vmem:[#allocation17 + $0x30] sm:$0xff]  ;;  %v2268_v48 = vld [vmem:[#allocation16 + $0x48] sm:$0xff] }
 0x840   : > { %v1835_v50 = vmul.f32 1.442695, %v1834_v49  ;;  %v2279_v49 = vld [vmem:[#allocation17 + $0x20] sm:$0xff] }
 0x842   : > { %5006 = vpow2.f32 %v1835_v50  ;;  %v2267_v50 = vld [vmem:[#allocation16 + $0x40] sm:$0xff] }
 0x84f   : > { %v5007_v51 = vpop.eup %5006 }
 0x850   : > { %v1837_v52 = vsel %vm1354_vm3, %v5007_v51, 0.0 }
 0x851   : > { %1838 = vadd.xlane.f32.xlu1 %v1837_v52  ;;  %v2266_v52 = vld [vmem:[#allocation16 + $0x38] sm:$0xff] }
 0x862   : > { %1992 = vrot.lane.b32.xlu1 %v6096_v36, %s5558_s0 }
 0x8da   : > { %v1839_v58 = vpop.xlane.xlu1 %1838 }
 0x8db   : > { %5008 = vrcp.f32 %v1839_v58  ;;  %v2275_v58 = vld [vmem:[#allocation17] sm:$0xff] }
 0x8de   : > { %v1993_v36 = vpop.permute.xlu1 %1992 }
 0x8e8   : > { %v5009_v59 = vpop.eup %5008 }
 0x8e9   : > { %v1841_v60 = vmul.f32 %v5009_v59, %v5007_v51  ;;  %v2278_v51 = vld [vmem:[#allocation17 + $0x18] sm:$0xff]  ;;  %v2263_v59 = vld [vmem:[#allocation16 + $0x20] sm:$0xff] }
 0x8eb   : > { %4581 = vmatmul.mubr.msk.f32.vlgmr.msra.gmra.mxu1 %vm1354_vm3, %v1841_v60  ;;  %v994_v60 = vld [vmem:[%s6010_s10] sm:$0xff] }
 0x8ec   : > { %4595 = vmatpush3.xpose.msk.msra.mxu1 %vm1275_vm1, %v1995_v57  ;;  %4596 = vmatprep.mubr.msk.f32.mxu1 %vm5555_vm0, %v5554_v0  ;;  %v2264_v57 = vld [vmem:[#allocation16 + $0x28] sm:$0xff] }
 0x8ed   : > { %4599 = vmatprep.subr.mxu1 %v5554_v0 }
 0x8ef   : > { %4597 = vmatmul.mubr.msk.f32.vlgmr.msra.gmra.mxu1 %vm1275_vm1, %v1993_v36  ;;  %v6242_v36 = vld [vmem:[%s6010_s10 + $0x8] sm:$0xff] }
 0x8f0   : > { %4601 = vmatprep.mubr.msk.f32.mxu1 %vm5555_vm0, %v5554_v0 }
 0x9ab   : > { %v1914_v62 = vpop.f32.mrf.mxu1 }
 0x9ac   : > { %4592 = vmatmul.mubr.msk.f32.vlgmr.msra.gmra.mxu0 %vm1275_vm1, %v1914_v62  ;;  %v2261_v62 = vld [vmem:[#allocation16 + $0x10] sm:$0xff] }
 0x9ad   : > { %v4582_v63 = vpop.f32.mrf.mxu1  ;;  %4612 = vmatprep.mubr.msk.f32.mxu0 %vm5555_vm0, %v5554_v0  ;;  %4605 = vmatpush3.msra.mxu0 %v1061_v55 }
 0x9ae   : > { %4606 = vmatprep.subr.mxu0 %v5554_v0  ;;  %v2260_v63 = vld [vmem:[#allocation16 + $0x8] sm:$0xff] }
 0x9af   : > { %v2066_v1 = vpop.f32.mrf.mxu1  ;;  %4607 = vmatpush3.msra.mxu0 %v1060_v12 }
 0x9b0   : > { %v2070_v3 = vsel %vm1352_vm2, -1e+09, %v2066_v1  ;;  %4608 = vmatprep.subr.mxu0 %v5554_v0  ;;  %v2259_v1 = vld [vmem:[#allocation16] sm:$0xff] }
 0x9b1   : > { %v4598_v4 = vpop.f32.mrf.mxu1  ;;  %v2071_v5 = vsel %vm1354_vm3, %v2070_v3, -inf  ;;  %4609 = vmatpush3.msra.mxu0 %v1059_v13 }
 0x9b2   : > { %2072 = vmax.xlane.f32.xlu0 %v2071_v5  ;;  %4610 = vmatprep.subr.mxu0 %v5554_v0 }
 0x9b3   : > { %4611 = vmatpush3.msra.mxu0 %v1058_v19  ;;  %v2302_v19 = vld [vmem:[#allocation19 + $0x58] sm:$0xff] }
 0x9b4   : > { %4650 = vmatprep.subr.mxu0 %v2290_v26 }
 0x9c8   : > { %2082 = vrot.lane.b32.xlu0 %v6137_v2, %s5558_s0 }
 0xa3b   : > { %v2073_v6 = vpop.xlane.xlu0 %2072 }
 0xa3c   : > { %v2074_v7 = vsub.f32 %v2070_v3, %v2073_v6 }
 0xa3e   : > { %v2075_v8 = vmul.f32 1.442695, %v2074_v7  ;;  %v4168_v7 = vld [vmem:[%s6521_s8] ss:$0 sm:$0xff] }
 0xa3f   : > { %v2083_v9 = vpop.permute.xlu0 %2082 }
 0xa40   : > { %5010 = vpow2.f32 %v2075_v8  ;;  %4600 = vmatpush3.msra.mxu1 %v2083_v9  ;;  %v4169_v9 = vld [vmem:[%s6522_s9] ss:$0 sm:$0xff] }
 0xa41   : > { %4615 = vmatprep.subr.mxu1 %v5554_v0 }
 0xa4d   : > { %v5011_v10 = vpop.eup %5010 }
 0xa4e   : > { %v2077_v11 = vsel %vm1354_vm3, %v5011_v10, 0.0 }
 0xa4f   : > { %2078 = vadd.xlane.f32.xlu1 %v2077_v11 }
 0xa6c   : > { %v1987_v14 = vpop.f32.mrf.mxu0 }
 0xa6d   : > { %v1991_v2 = vadd.f32 %v1987_v14, %v6187_v42 }
 0xa6e   : > { %v4593_v15 = vpop.f32.mrf.mxu0 }
 0xa6f   : > { %v2306_v15 = vld [vmem:[#allocation19 + $0x78] sm:$0xff] }
 0xad8   : > { %v2079_v16 = vpop.xlane.xlu1 %2078 }
 0xad9   : > { %5012 = vrcp.f32 %v2079_v16  ;;  %v2305_v16 = vld [vmem:[#allocation19 + $0x70] sm:$0xff] }
 0xae6   : > { %v5013_v17 = vpop.eup %5012 }
 0xae7   : > { %v2081_v18 = vmul.f32 %v5013_v17, %v5011_v10  ;;  %v2304_v17 = vld [vmem:[#allocation19 + $0x68] sm:$0xff] }
 0xae9   : > { %4602 = vmatmul.mubr.msk.f32.vlgmr.msra.gmra.mxu1 %vm1354_vm3, %v2081_v18  ;;  %v2303_v18 = vld [vmem:[#allocation19 + $0x60] sm:$0xff] }
 0xaea   : > { %4647 = vmatprep.mubr.msk.f32.mxu1 %vm5555_vm0, %v5554_v0  ;;  %4616 = vmatpush3.msra.mxu1 %v2274_v28  ;;  %v2293_v28 = vld [vmem:[#allocation19 + $0x10] sm:$0xff] }
 0xaeb   : > { %4617 = vmatprep.subr.mxu1 %v5554_v0 }
 0xaec   : > { %4618 = vmatpush3.msra.mxu1 %v2273_v30  ;;  %v2291_v30 = vld [vmem:[#allocation19] sm:$0xff] }
 0xaed   : > { %4619 = vmatprep.subr.mxu1 %v5554_v0 }
 0xaee   : > { %4620 = vmatpush3.msra.mxu1 %v2272_v31  ;;  %v6287_v31 = vld [vmem:[%s870_s7] sm:$0xff]  ;;  %s6633_s7 = sld [smem:[#allocation43_spill]] }
 0xaef   : > { %4621 = vmatprep.subr.mxu1 %v5554_v0  ;;  %vm2625_vm4 = vcmp.eq.f32.partialorder %v6287_v31, 0.0 }
 0xaf4   : > { %p6635_p5 = scmp.ne.s32.totalorder %s6633_s7, 0 }
 0xba9   : > { %v2154_v20 = vpop.f32.mrf.mxu1 }
 0xbaa   : > { %4613 = vmatmul.mubr.msk.f32.vlgmr.msra.gmra.mxu0 %vm1275_vm1, %v2154_v20  ;;  %v2301_v20 = vld [vmem:[#allocation19 + $0x50] sm:$0xff] }
 0xbab   : > { %v4603_v21 = vpop.f32.mrf.mxu1  ;;  %4651 = vmatpush3.msra.mxu0 %v2290_v26  ;;  %4682 = vmatprep.mubr.f32.mxu0 %v994_v60  ;;  %v2295_v26 = vld [vmem:[#allocation19 + $0x20] sm:$0xff] }
 0xbac   : > { %4652 = vmatprep.subr.mxu0 %v2289_v27  ;;  %v2300_v21 = vld [vmem:[#allocation19 + $0x48] sm:$0xff] }
 0xbad   : > { %4653 = vmatpush3.msra.mxu0 %v2289_v27  ;;  %v2294_v27 = vld [vmem:[#allocation19 + $0x18] sm:$0xff] }
 0xbae   : > { %4654 = vmatprep.subr.mxu0 %v2288_v29 }
 0xbaf   : > { %4655 = vmatpush3.msra.mxu0 %v2288_v29  ;;  %v2292_v29 = vld [vmem:[#allocation19 + $0x8] sm:$0xff] }
 0xbb0   : > { %4656 = vmatprep.subr.mxu0 %v2287_v32 }
 0xbb1   : > { %4657 = vmatpush3.msra.mxu0 %v2287_v32 }
 0xbb2   : > { %4658 = vmatprep.subr.mxu0 %v2286_v34 }
 0xbb3   : > { %4659 = vmatpush3.msra.mxu0 %v2286_v34 }
 0xbb4   : > { %4660 = vmatprep.subr.mxu0 %v2285_v35 }
 0xbb5   : > { %4661 = vmatpush3.msra.mxu0 %v2285_v35 }
 0xbb6   : > { %4662 = vmatprep.subr.mxu0 %v2284_v37 }
 0xbb7   : > { %4663 = vmatpush3.msra.mxu0 %v2284_v37 }
 0xbb8   : > { %4664 = vmatprep.subr.mxu0 %v2283_v38 }
 0xbb9   : > { %4665 = vmatpush3.msra.mxu0 %v2283_v38 }
 0xbba   : > { %4666 = vmatprep.subr.mxu0 %v2282_v43 }
 0xbbb   : > { %4667 = vmatpush3.msra.mxu0 %v2282_v43 }
 0xbbc   : > { %4668 = vmatprep.subr.mxu0 %v2281_v45 }
 0xbbd   : > { %4669 = vmatpush3.msra.mxu0 %v2281_v45  ;;  %v2309_v45 = vld [vmem:[#allocation20 + $0x10] sm:$0xff] }
 0xbbe   : > { %4670 = vmatprep.subr.mxu0 %v2280_v47 }
 0xbbf   : > { %4671 = vmatpush3.msra.mxu0 %v2280_v47 }
 0xbc0   : > { %4672 = vmatprep.subr.mxu0 %v2279_v49 }
 0xbc1   : > { %4673 = vmatpush3.msra.mxu0 %v2279_v49 }
 0xbc2   : > { %4674 = vmatprep.subr.mxu0 %v2278_v51 }
 0xbc3   : > { %4675 = vmatpush3.msra.mxu0 %v2278_v51 }
 0xbc4   : > { %4676 = vmatprep.subr.mxu0 %v2277_v53 }
 0xbc5   : > { %4677 = vmatpush3.msra.mxu0 %v2277_v53  ;;  %v2307_v53 = vld [vmem:[#allocation20] sm:$0xff] }
 0xbc6   : > { %4678 = vmatprep.subr.mxu0 %v2276_v56 }
 0xbc7   : > { %4679 = vmatpush3.msra.mxu0 %v2276_v56 }
 0xbc8   : > { %4680 = vmatprep.subr.mxu0 %v2275_v58 }
 0xbc9   : > { %4681 = vmatpush3.msra.mxu0 %v2275_v58 }
 0xbca   : > { %4683 = vmatmul.mubr.f32.vlgmr.msra.gmra.mxu0 %v6242_v36  ;;  %4720 = vmatprep.subr.mxu0 %v5554_v0 }
 0xbcb   : > { %4724 = vmatprep.mubr.msk.f32.mxu0 %vm5555_vm0, %v5554_v0 }
 0xc6a   : > { %v2227_v22 = vpop.f32.mrf.mxu0 }
 0xc6b   : > { %v2231_v23 = vadd.f32 %v2227_v22, %v1991_v2  ;;  %v2299_v22 = vld [vmem:[#allocation19 + $0x40] sm:$0xff] }
 0xc6c   : > { %v4614_v24 = vpop.f32.mrf.mxu0 }
 0xc6d   : > { %v2232_v25 = vadd.f32 %v2231_v23, %v6082_v33  ;;  %v2271_v33 = vld [vmem:[#allocation16 + $0x60] sm:$0xff]  ;;  %v2298_v23 = vld [vmem:[#allocation19 + $0x38] sm:$0xff]  ;;  %v2297_v24 = vld [vmem:[#allocation19 + $0x30] sm:$0xff] }
 0xc6e   : > { %4622 = vmatpush3.msra.mxu1 %v2271_v33 }
 0xc6f   : > { %2233 = vadd.xlane.f32.xlu0 %v2232_v25  ;;  %4623 = vmatprep.subr.mxu1 %v5554_v0 }
 0xc70   : > { %4624 = vmatpush3.msra.mxu1 %v2270_v44  ;;  %v2310_v44 = vld [vmem:[#allocation20 + $0x18] sm:$0xff] }
 0xc71   : > { %4625 = vmatprep.subr.mxu1 %v5554_v0 }
 0xc72   : > { %4626 = vmatpush3.msra.mxu1 %v2269_v46  ;;  %v2308_v46 = vld [vmem:[#allocation20 + $0x8] sm:$0xff] }
 0xc73   : > { %4627 = vmatprep.subr.mxu1 %v5554_v0 }
 0xc74   : > { %4628 = vmatpush3.msra.mxu1 %v2268_v48 }
 0xc75   : > { %4629 = vmatprep.subr.mxu1 %v5554_v0 }
 0xc76   : > { %4630 = vmatpush3.msra.mxu1 %v2267_v50 }
 0xc77   : > { %4631 = vmatprep.subr.mxu1 %v5554_v0 }
 0xc78   : > { %4632 = vmatpush3.msra.mxu1 %v2266_v52 }
 0xc79   : > { %4633 = vmatprep.subr.mxu1 %v5554_v0 }
 0xc7a   : > { %4634 = vmatpush3.msra.mxu1 %v2265_v54 }
 0xc7b   : > { %4635 = vmatprep.subr.mxu1 %v5554_v0 }
 0xc7c   : > { %4636 = vmatpush3.msra.mxu1 %v2264_v57 }
 0xc7d   : > { %4637 = vmatprep.subr.mxu1 %v5554_v0 }
 0xc7e   : > { %4638 = vmatpush3.msra.mxu1 %v2263_v59 }
 0xc7f   : > { %4639 = vmatprep.subr.mxu1 %v5554_v0 }
 0xc80   : > { %4640 = vmatpush3.msra.mxu1 %v2262_v61 }
 0xc81   : > { %4641 = vmatprep.subr.mxu1 %v5554_v0 }
 0xc82   : > { %4642 = vmatpush3.msra.mxu1 %v2261_v62 }
 0xc83   : > { %4643 = vmatprep.subr.mxu1 %v5554_v0 }
 0xc84   : > { %4644 = vmatpush3.msra.mxu1 %v2260_v63 }
 0xc85   : > { %4645 = vmatprep.subr.mxu1 %v5554_v0 }
 0xc86   : > { %4646 = vmatpush3.msra.mxu1 %v2259_v1 }
 0xc87   : > { %4685 = vmatprep.subr.mxu1 %v2306_v15 }
 0xc8a   : > { %v6263_v55 = vpop.f32.mrf.mxu0 }
 0xc8b   : > { %4721 = vmatpush3.xpose.msk.msra.mxu0 %vm1275_vm1, %v6263_v55 }
 0xc8c   : > { %v6267_v12 = vpop.f32.mrf.mxu0  ;;  %4722 = vmatprep.subr.mxu0 %v5554_v0 }
 0xc8d   : > { %2715 = vrot.lane.b32.xlu0 %v6267_v12, %s5556_s23 }
 0xc8f   : > { %4723 = vmatpush3.xpose.msk.msra.mxu0 %vm1275_vm1, %v6267_v12 }
 0xc90   : > { %4727 = vmatprep.subr.mxu0 %v5554_v0 }
 0xcf8   : > { %v2234_v39 = vpop.xlane.xlu0 %2233 }
 0xcf9   : > { %v2236_v40 = vmul.f32 0.0078125, %v2234_v39 }
 0xcfb   : > { %v6230_v41 = vsub.f32 %v2232_v25, %v2236_v40  ;;  %v2296_v25 = vld [vmem:[#allocation19 + $0x28] sm:$0xff] }
 0xcfd   : > { %v2238_v42 = vmul.f32 %v6230_v41, %v6230_v41 }
 0xcff   : > { %2239 = vadd.xlane.f32.xlu1 %v2238_v42  ;;  %v2716_v51 = vpop.permute.xlu0 %2715 }
 0xd88   : > { %v2240_v3 = vpop.xlane.xlu1 %2239 }
 0xd89   : > { %v2241_v4 = vmul.f32 0.0078125, %v2240_v3 }
 0xd8b   : > { %v2242_v5 = vadd.f32 1e-06, %v2241_v4 }
 0xd8d   : > { %5014 = vrsqrt.f32 %v2242_v5 }
 0xd9a   : > { %v5015_v6 = vpop.eup %5014 }
 0xd9b   : > { %v2244_v8 = vmul.f32 %v5015_v6, %v6230_v41 }
 0xd9d   : > { %v2251_v10 = vmul.f32 %v4168_v7, %v2244_v8 }
 0xd9f   : > { %v6260_v11 = vadd.f32 %v4169_v9, %v2251_v10  ;;  %v2314_v10 = vld [vmem:[#allocation20 + $0x38] sm:$0xff] }
 0xda1   : > { %4648 = vmatmul.mubr.f32.vlgmr.msra.gmra.mxu1 %v6260_v11 }
 0xda2   : > { %4717 = vmatprep.mubr.f32.mxu1 %v994_v60  ;;  %4686 = vmatpush3.msra.mxu1 %v2306_v15 }
 0xda3   : > { %4687 = vmatprep.subr.mxu1 %v2305_v16 }
 0xda4   : > { %4688 = vmatpush3.msra.mxu1 %v2305_v16 }
 0xda5   : > { %4689 = vmatprep.subr.mxu1 %v2304_v17 }
 0xda6   : > { %4690 = vmatpush3.msra.mxu1 %v2304_v17 }
 0xda7   : > { %4691 = vmatprep.subr.mxu1 %v2303_v18 }
 0xda8   : > { %4692 = vmatpush3.msra.mxu1 %v2303_v18 }
 0xda9   : > { %4693 = vmatprep.subr.mxu1 %v2302_v19 }
 0xdaa   : > { %4694 = vmatpush3.msra.mxu1 %v2302_v19 }
 0xdab   : > { %4695 = vmatprep.subr.mxu1 %v2301_v20 }
 0xdac   : > { %4696 = vmatpush3.msra.mxu1 %v2301_v20 }
 0xdad   : > { %4697 = vmatprep.subr.mxu1 %v2300_v21 }
 0xdae   : > { %4698 = vmatpush3.msra.mxu1 %v2300_v21 }
 0xdaf   : > { %4699 = vmatprep.subr.mxu1 %v2299_v22 }
 0xdb0   : > { %4700 = vmatpush3.msra.mxu1 %v2299_v22 }
 0xdb1   : > { %4701 = vmatprep.subr.mxu1 %v2298_v23 }
 0xdb2   : > { %4702 = vmatpush3.msra.mxu1 %v2298_v23 }
 0xdb3   : > { %4703 = vmatprep.subr.mxu1 %v2297_v24 }
 0xdb4   : > { %4704 = vmatpush3.msra.mxu1 %v2297_v24 }
 0xdb5   : > { %4705 = vmatprep.subr.mxu1 %v2296_v25 }
 0xdb6   : > { %4706 = vmatpush3.msra.mxu1 %v2296_v25 }
 0xdb7   : > { %4707 = vmatprep.subr.mxu1 %v2295_v26 }
 0xdb8   : > { %4708 = vmatpush3.msra.mxu1 %v2295_v26 }
 0xdb9   : > { %4709 = vmatprep.subr.mxu1 %v2294_v27 }
 0xdba   : > { %4710 = vmatpush3.msra.mxu1 %v2294_v27 }
 0xdbb   : > { %4711 = vmatprep.subr.mxu1 %v2293_v28 }
 0xdbc   : > { %4712 = vmatpush3.msra.mxu1 %v2293_v28 }
 0xdbd   : > { %4713 = vmatprep.subr.mxu1 %v2292_v29 }
 0xdbe   : > { %4714 = vmatpush3.msra.mxu1 %v2292_v29 }
 0xdbf   : > { %4715 = vmatprep.subr.mxu1 %v2291_v30 }
 0xdc0   : > { %4716 = vmatpush3.msra.mxu1 %v2291_v30 }
 0xdc1   : > { %4718 = vmatmul.mubr.f32.vlgmr.msra.gmra.mxu1 %v6242_v36  ;;  %4759 = vmatprep.subr.mxu1 %v5554_v0 }
 0xdc2   : > { %4767 = vmatprep.mubr.msk.f32.mxu1 %vm5555_vm0, %v5554_v0  ;;  %4760 = vmatpush3.msra.mxu1 %v2310_v44 }
 0xdc3   : > { %4761 = vmatprep.subr.mxu1 %v5554_v0 }
 0xdc4   : > { %4762 = vmatpush3.msra.mxu1 %v2309_v45 }
 0xdc5   : > { %4763 = vmatprep.subr.mxu1 %v5554_v0 }
 0xdc6   : > { %4764 = vmatpush3.msra.mxu1 %v2308_v46 }
 0xdc7   : > { %4765 = vmatprep.subr.mxu1 %v5554_v0 }
 0xdc8   : > { %4766 = vmatpush3.msra.mxu1 %v2307_v53 }
 0xdc9   : > { %4777 = vmatprep.subr.mxu1 %v5554_v0 }
 0xe61   : > { %v2391_v13 = vpop.f32.mrf.mxu1 }
 0xe62   : > { %v6275_v14 = vmul.f32 0.17677669, %v2391_v13  ;;  %v2311_v13 = vld [vmem:[#allocation20 + $0x20] sm:$0xff] }
 0xe63   : > { %v4649_v2 = vpop.f32.mrf.mxu1 }
 0xe64   : > { %4725 = vmatmul.mubr.msk.f32.vlgmr.msra.gmra.mxu0 %vm1275_vm1, %v6275_v14 }
 0xe65   : > { %4731 = vmatprep.mubr.msk.f32.mxu0 %vm5555_vm0, %v5554_v0 }
 0xe81   : > { %v6296_v42 = vpop.f32.mrf.mxu1 }
 0xe82   : > { %4728 = vmatpush3.msra.mxu0 %v6296_v42 }
 0xe83   : > { %v6299_v43 = vpop.f32.mrf.mxu1  ;;  %4729 = vmatprep.subr.mxu0 %v5554_v0 }
 0xe84   : > { %4730 = vmatpush3.msra.mxu0 %v6299_v43 }
 0xe85   : > { %4734 = vmatprep.subr.mxu0 %v5554_v0 }
 0xf24   : > { %v2621_v32 = vpop.f32.mrf.mxu0 }
 0xf25   : > { %v2626_v33 = vsel %vm2625_vm4, -1e+09, %v2621_v32 }
 0xf26   : > { %v4726_v34 = vpop.f32.mrf.mxu0  ;;  %v2628_v35 = vsel %vm2627_vm5, %v2626_v33, -inf }
 0xf27   : > { %2629 = vmax.xlane.f32.xlu1 %v2628_v35 }
 0xf38   : > { %2717 = vrot.lane.b32.xlu1 %v6263_v55, %s5556_s23 }
 0xfb0   : > { %v2630_v37 = vpop.xlane.xlu1 %2629 }
 0xfb1   : > { %v2631_v38 = vsub.f32 %v2626_v33, %v2630_v37 }
 0xfb3   : > { %v2632_v39 = vmul.f32 1.442695, %v2631_v38 }
 0xfb4   : > { %v2718_v47 = vpop.permute.xlu1 %2717 }
 0xfb5   : > { %5016 = vpow2.f32 %v2632_v39 }
 0xfc2   : > { %v5017_v40 = vpop.eup %5016 }
 0xfc3   : > { %v2634_v41 = vsel %vm2627_vm5, %v5017_v40, 0.0 }
 0xfc4   : > { %2635 = vadd.xlane.f32.xlu1 %v2634_v41 }
 0xfd5   : > { %2713 = vrot.lane.b32.xlu1 %v6275_v14, %s5556_s23 }
0x104d   : > { %v2636_v48 = vpop.xlane.xlu1 %2635 }
0x104e   : > { %5018 = vrcp.f32 %v2636_v48  ;;  %v2318_v48 = vld [vmem:[#allocation20 + $0x58] sm:$0xff] }
0x1051   : > { %v2714_v52 = vpop.permute.xlu1 %2713 }
0x105b   : > { %v5019_v49 = vpop.eup %5018 }
0x105c   : > { %v2638_v50 = vmul.f32 %v5019_v49, %v5017_v40  ;;  %v2317_v49 = vld [vmem:[#allocation20 + $0x50] sm:$0xff] }
0x105e   : > { %2639 = vst.msk [vmem:[%s6310_s11] sm:$0xff] %vm2627_vm5, %v2638_v50  ;;  %4732 = vmatmul.mubr.msk.f32.vlgmr.msra.gmra.mxu0 %vm2627_vm5, %v2638_v50  ;;  %v2315_v50 = vld [vmem:[#allocation20 + $0x40] sm:$0xff] }
0x105f   : > { %4735 = vmatpush3.xpose.msk.msra.mxu0 %vm1275_vm1, %v2718_v47  ;;  %4738 = vmatprep.mubr.msk.f32.mxu0 %vm5555_vm0, %v5554_v0 }
0x1060   : > { %4736 = vmatprep.subr.mxu0 %v5554_v0 }
0x1063   : > { %4737 = vmatpush3.xpose.msk.msra.mxu0 %vm1275_vm1, %v2716_v51 }
0x1064   : > { %4741 = vmatprep.subr.mxu0 %v5554_v0 }
0x1066   : > { %4739 = vmatmul.mubr.msk.f32.vlgmr.msra.gmra.mxu0 %vm1275_vm1, %v2714_v52 }
0x1067   : > { %4745 = vmatprep.mubr.msk.f32.mxu0 %vm5555_vm0, %v5554_v0 }
0x111e   : > { %v2709_v54 = vpop.f32.mrf.mxu0 }
0x111f   : > { %4768 = vmatmul.mubr.msk.f32.vlgmr.msra.gmra.mxu1 %vm1275_vm1, %v2709_v54  ;;  %v2322_v54 = vld [vmem:[#allocation20 + $0x78] sm:$0xff] }
0x1120   : > { %v4733_v56 = vpop.f32.mrf.mxu0  ;;  %4781 = vmatprep.mubr.msk.f32.mxu1 %vm5555_vm0, %v5554_v0 }
0x1126   : > { %v2791_v57 = vpop.f32.mrf.mxu0 }
0x1127   : > { %v2795_v58 = vsel %vm2625_vm4, -1e+09, %v2791_v57 }
0x1128   : > { %v4740_v59 = vpop.f32.mrf.mxu0  ;;  %v2796_v60 = vsel %vm2627_vm5, %v2795_v58, -inf }
0x1129   : > { %2797 = vmax.xlane.f32.xlu1 %v2796_v60  ;;  %v2321_v60 = vld [vmem:[#allocation20 + $0x70] sm:$0xff] }
0x113a   : > { %2813 = vrot.lane.b32.xlu1 %v6296_v42, %s5556_s23 }
0x113e   : > { %3040 = vrot.lane.b32.xlu1 %v6263_v55, %s5557_s21 }
0x1142   : > { %3038 = vrot.lane.b32.xlu1 %v6267_v12, %s5557_s21 }
0x1146   : > { %3036 = vrot.lane.b32.xlu1 %v6275_v14, %s5557_s21 }
0x114a   : > { %3287 = vrot.lane.b32.xlu1 %v6267_v12, %s5558_s0  ;;  %v2313_v12 = vld [vmem:[#allocation20 + $0x30] sm:$0xff] }
0x11b2   : > { %v2798_v36 = vpop.xlane.xlu1 %2797 }
0x11b3   : > { %v2799_v61 = vsub.f32 %v2795_v58, %v2798_v36  ;;  %v2320_v36 = vld [vmem:[#allocation20 + $0x68] sm:$0xff] }
0x11b5   : > { %v2800_v62 = vmul.f32 1.442695, %v2799_v61  ;;  %v2319_v61 = vld [vmem:[#allocation20 + $0x60] sm:$0xff] }
0x11b6   : > { %v2814_v63 = vpop.permute.xlu1 %2813 }
0x11b7   : > { %5020 = vpow2.f32 %v2800_v62  ;;  %4742 = vmatpush3.msra.mxu0 %v2814_v63 }
0x11b8   : > { %4743 = vmatprep.subr.mxu0 %v5554_v0 }
0x11c4   : > { %v5021_v1 = vpop.eup %5020 }
0x11c5   : > { %v2802_v3 = vsel %vm2627_vm5, %v5021_v1, 0.0 }
0x11c6   : > { %2803 = vadd.xlane.f32.xlu0 %v2802_v3 }
0x11dc   : > { %2811 = vrot.lane.b32.xlu0 %v6299_v43, %s5556_s23  ;;  %s4206_s23 = sshll.u32 %s5704_s26, 9 }
0x11dd   : > { %s6444_s3 = scalar_lea.hbm %s6634_s27, %s4206_s23 }
0x11df   : > { %v6345_v4 = vpop.f32.mrf.mxu1 }
0x11e0   : > { %3289 = vrot.lane.b32.xlu0 %v6263_v55, %s5558_s0  ;;  %v2312_v55 = vld [vmem:[#allocation20 + $0x28] sm:$0xff] }
0x11e1   : > { %v4769_v5 = vpop.f32.mrf.mxu1 }
0x11e4   : > { %3285 = vrot.lane.b32.xlu0 %v6275_v14, %s5558_s0  ;;  %v3041_v14 = vpop.permute.xlu1 %3040 }
0x11e8   : > { %v3039_v15 = vpop.permute.xlu1 %3038 }
0x11ec   : > { %v3037_v17 = vpop.permute.xlu1 %3036 }
0x11f0   : > { %v3288_v19 = vpop.permute.xlu1 %3287 }
0x124f   : > { %v2804_v6 = vpop.xlane.xlu0 %2803 }
0x1250   : > { %5022 = vrcp.f32 %v2804_v6 }
0x1253   : > { %v2812_v7 = vpop.permute.xlu0 %2811 }
0x1254   : > { %4744 = vmatpush3.msra.mxu0 %v2812_v7 }
0x1255   : > { %4748 = vmatprep.subr.mxu0 %v5554_v0 }
0x1257   : > { %v3290_v18 = vpop.permute.xlu0 %3289 }
0x125b   : > { %v3286_v20 = vpop.permute.xlu0 %3285 }
0x125d   : > { %v5023_v8 = vpop.eup %5022 }
0x125e   : > { %v2806_v9 = vmul.f32 %v5023_v8, %v5021_v1 }
0x1260   : > { %4177 = vst.msk [vmem:[%s6310_s11 + $0x8] sm:$0xff] %vm2627_vm5, %v2806_v9  ;;  %4746 = vmatmul.mubr.msk.f32.vlgmr.msra.gmra.mxu0 %vm2627_vm5, %v2806_v9 }
0x1261   : > { %4749 = vmatpush3.msra.mxu0 %v2314_v10  ;;  %4756 = vmatprep.mubr.msk.f32.mxu0 %vm5555_vm0, %v5554_v0 }
0x1262   : > { %4750 = vmatprep.subr.mxu0 %v5554_v0 }
0x1263   : > { %4751 = vmatpush3.msra.mxu0 %v2313_v12  ;;  %v3591_v12 = vld [vmem:[#allocation22 + $0xf8] sm:$0xff] }
0x1264   : > { %4752 = vmatprep.subr.mxu0 %v5554_v0 }
0x1265   : > { %4753 = vmatpush3.msra.mxu0 %v2312_v55  ;;  %v3589_v55 = vld [vmem:[#allocation22 + $0xe8] sm:$0xff] }
0x1266   : > { %4754 = vmatprep.subr.mxu0 %v5554_v0 }
0x1267   : > { %4755 = vmatpush3.msra.mxu0 %v2311_v13  ;;  %v3588_v13 = vld [vmem:[#allocation22 + $0xe0] sm:$0xff] }
0x1268   : > { %4770 = vmatprep.subr.mxu0 %v5554_v0 }
0x1320   : > { %v2886_v2 = vpop.f32.mrf.mxu0 }
0x1321   : > { %4757 = vmatmul.mubr.msk.f32.vlgmr.msra.gmra.mxu0 %vm1275_vm1, %v2886_v2  ;;  %v3585_v2 = vld [vmem:[#allocation22 + $0xc8] sm:$0xff] }
0x1322   : > { %4771 = vmatpush3.xpose.msk.msra.mxu0 %vm1275_vm1, %v3041_v14  ;;  %v4747_v16 = vpop.f32.mrf.mxu0  ;;  %4774 = vmatprep.mubr.msk.f32.mxu0 %vm5555_vm0, %v5554_v0  ;;  %v3586_v14 = vld [vmem:[#allocation22 + $0xd0] sm:$0xff] }
0x1323   : > { %4772 = vmatprep.subr.mxu0 %v5554_v0 }
0x1326   : > { %4773 = vmatpush3.xpose.msk.msra.mxu0 %vm1275_vm1, %v3039_v15  ;;  %v3584_v15 = vld [vmem:[#allocation22 + $0xc0] sm:$0xff] }
0x1327   : > { %4795 = vmatprep.subr.mxu0 %v5554_v0 }
0x1329   : > { %4775 = vmatmul.mubr.msk.f32.vlgmr.msra.gmra.mxu0 %vm1275_vm1, %v3037_v17 }
0x132a   : > { %4796 = vmatpush3.xpose.msk.msra.mxu0 %vm1275_vm1, %v3290_v18  ;;  %4799 = vmatprep.mubr.msk.f32.mxu0 %vm5555_vm0, %v5554_v0 }
0x132b   : > { %4797 = vmatprep.subr.mxu0 %v5554_v0 }
0x132e   : > { %4798 = vmatpush3.xpose.msk.msra.mxu0 %vm1275_vm1, %v3288_v19  ;;  %v3583_v19 = vld [vmem:[#allocation22 + $0xb8] sm:$0xff] }
0x132f   : > { %4809 = vmatprep.subr.mxu0 %v5554_v0 }
0x1331   : > { %4800 = vmatmul.mubr.msk.f32.vlgmr.msra.gmra.mxu0 %vm1275_vm1, %v3286_v20  ;;  %v3582_v20 = vld [vmem:[#allocation22 + $0xb0] sm:$0xff] }
0x1332   : > { %4817 = vmatprep.mubr.msk.f32.mxu0 %vm5555_vm0, %v5554_v0  ;;  %4810 = vmatpush3.msra.mxu0 %v2322_v54  ;;  %v3703_v54 = vld [vmem:[#allocation23 + $0xd0] sm:$0xff] }
0x1333   : > { %4811 = vmatprep.subr.mxu0 %v5554_v0 }
0x1334   : > { %4812 = vmatpush3.msra.mxu0 %v2321_v60  ;;  %v3685_v60 = vld [vmem:[#allocation23 + $0x40] sm:$0xff] }
0x1335   : > { %4813 = vmatprep.subr.mxu0 %v5554_v0 }
0x1336   : > { %4814 = vmatpush3.msra.mxu0 %v2320_v36  ;;  %v3700_v36 = vld [vmem:[#allocation23 + $0xb8] sm:$0xff] }
0x1337   : > { %4815 = vmatprep.subr.mxu0 %v5554_v0 }
0x1338   : > { %4816 = vmatpush3.msra.mxu0 %v2319_v61  ;;  %v3684_v61 = vld [vmem:[#allocation23 + $0x38] sm:$0xff] }
0x13e1   : > { %v6378_v21 = vpop.f32.mrf.mxu0 }
0x13e2   : > { %v3033_v62 = vadd.f32 %v6345_v4, %v6378_v21  ;;  %v3587_v4 = vld [vmem:[#allocation22 + $0xd8] sm:$0xff]  ;;  %v3581_v21 = vld [vmem:[#allocation22 + $0xa8] sm:$0xff] }
0x13e3   : > { %v4758_v22 = vpop.f32.mrf.mxu0 }
0x13e4   : > { %v3580_v22 = vld [vmem:[#allocation22 + $0xa0] sm:$0xff] }
0x13e9   : > { %v3114_v23 = vpop.f32.mrf.mxu0 }
0x13ea   : > { %v3118_v24 = vsel %vm2625_vm4, -1e+09, %v3114_v23  ;;  %v3579_v23 = vld [vmem:[#allocation22 + $0x98] sm:$0xff] }
0x13eb   : > { %v4776_v25 = vpop.f32.mrf.mxu0  ;;  %v3119_v26 = vsel %vm2627_vm5, %v3118_v24, -inf }
0x13ec   : > { %3120 = vmax.xlane.f32.xlu1 %v3119_v26  ;;  %v3577_v25 = vld [vmem:[#allocation22 + $0x88] sm:$0xff]  ;;  %v3576_v26 = vld [vmem:[#allocation22 + $0x80] sm:$0xff] }
0x13f1   : > { %v3363_v27 = vpop.f32.mrf.mxu0 }
0x13f2   : > { %v3367_v29 = vsel %vm2625_vm4, -1e+09, %v3363_v27  ;;  %v3575_v27 = vld [vmem:[#allocation22 + $0x78] sm:$0xff] }
0x13f3   : > { %v4801_v28 = vpop.f32.mrf.mxu0  ;;  %v3368_v30 = vsel %vm2627_vm5, %v3367_v29, -inf }
0x13f4   : > { %v3574_v28 = vld [vmem:[#allocation22 + $0x70] sm:$0xff] }
0x13fd   : > { %3132 = vrot.lane.b32.xlu1 %v6299_v43, %s5557_s21 }
0x1421   : > { %3369 = vmax.xlane.f32.xlu1 %v3368_v30  ;;  %v3572_v30 = vld [vmem:[#allocation22 + $0x60] sm:$0xff] }
0x1432   : > { %3381 = vrot.lane.b32.xlu1 %v6299_v43, %s5558_s0 }
0x1475   : > { %v3121_v32 = vpop.xlane.xlu1 %3120 }
0x1476   : > { %v3122_v33 = vsub.f32 %v3118_v24, %v3121_v32  ;;  %v3578_v24 = vld [vmem:[#allocation22 + $0x90] sm:$0xff]  ;;  %v3571_v32 = vld [vmem:[#allocation22 + $0x58] sm:$0xff] }
0x1478   : > { %v3123_v34 = vmul.f32 1.442695, %v3122_v33  ;;  %v3570_v33 = vld [vmem:[#allocation22 + $0x50] sm:$0xff] }
0x1479   : > { %v3133_v38 = vpop.permute.xlu1 %3132 }
0x147a   : > { %5024 = vpow2.f32 %v3123_v34  ;;  %v3569_v34 = vld [vmem:[#allocation22 + $0x48] sm:$0xff] }
0x1487   : > { %v5025_v35 = vpop.eup %5024 }
0x1488   : > { %v3125_v37 = vsel %vm2627_vm5, %v5025_v35, 0.0 }
0x1489   : > { %3126 = vadd.xlane.f32.xlu0 %v3125_v37  ;;  %v3567_v37 = vld [vmem:[#allocation22 + $0x38] sm:$0xff] }
0x149f   : > { %3134 = vrot.lane.b32.xlu0 %v6296_v42, %s5557_s21  ;;  %s3847_s21 = sshll.u32 %s6310_s11, 4  ;;  %s6446_s21 = int_to_ptr.vmem [resolvable:$true] %s3847_s21 }
0x14a0   : > { %s5408_s22 = scalar_lea.vmem %s6446_s21, 512  ;;  %p5415_p6 = scmp.lt.s32.totalorder %s6446_s21, %s5413_s18 }
0x14a1   : > { %p5409_p9 = scmp.ne.s32.totalorder %s6446_s21, %s5408_s22 }
0x14a3   : > { %p5410_p8 = pnand %p5409_p9, %p6635_p5 }
0x14a5   : > { %p5411_p1 = pneg %p5410_p8 }
0x14aa   : > { %v3370_v31 = vpop.xlane.xlu1 %3369 }
0x14ab   : > { %v3371_v39 = vsub.f32 %v3367_v29, %v3370_v31  ;;  %v3573_v29 = vld [vmem:[#allocation22 + $0x68] sm:$0xff] }
0x14ac   : > { %v3565_v31 = vld [vmem:[#allocation22 + $0x28] sm:$0xff] }
0x14ad   : > { %v3372_v40 = vmul.f32 1.442695, %v3371_v39  ;;  %v3564_v39 = vld [vmem:[#allocation22 + $0x20] sm:$0xff] }
0x14ae   : > { %v3382_v59 = vpop.permute.xlu1 %3381 }
0x14af   : > { %5026 = vpow2.f32 %v3372_v40  ;;  %v3563_v40 = vld [vmem:[#allocation22 + $0x18] sm:$0xff] }
0x14bc   : > { %v5027_v41 = vpop.eup %5026 }
0x14bd   : > { %v3374_v43 = vsel %vm2627_vm5, %v5027_v41, 0.0 }
0x14be   : > { %3375 = vadd.xlane.f32.xlu0 %v3374_v43  ;;  %v3561_v43 = vld [vmem:[#allocation22 + $0x8] sm:$0xff] }
0x14d4   : > { %3383 = vrot.lane.b32.xlu0 %v6296_v42, %s5558_s0  ;;  %v2316_v42 = vld [vmem:[#allocation20 + $0x48] sm:$0xff] }
0x1512   : > { %v3127_v44 = vpop.xlane.xlu0 %3126 }
0x1513   : > { %5028 = vrcp.f32 %v3127_v44  ;;  %v3560_v44 = vld [vmem:[#allocation22] sm:$0xff] }
0x1516   : > { %v3135_v45 = vpop.permute.xlu0 %3134 }
0x1517   : > { %4778 = vmatpush3.msra.mxu1 %v3135_v45  ;;  %v3708_v45 = vld [vmem:[#allocation23 + $0xf8] sm:$0xff] }
0x1518   : > { %4779 = vmatprep.subr.mxu1 %v5554_v0  ;;  %4391 = vmatprep.subr.mxu0 %v3708_v45 }
0x1519   : > { %4780 = vmatpush3.msra.mxu1 %v3133_v38  ;;  %v3566_v38 = vld [vmem:[#allocation22 + $0x30] sm:$0xff] }
0x151a   : > { %4784 = vmatprep.subr.mxu1 %v5554_v0 }
0x1520   : > { %v5029_v46 = vpop.eup %5028 }
0x1521   : > { %v3129_v47 = vmul.f32 %v5029_v46, %v5025_v35  ;;  %v3568_v35 = vld [vmem:[#allocation22 + $0x40] sm:$0xff]  ;;  %v3692_v46 = vld [vmem:[#allocation23 + $0x78] sm:$0xff] }
0x1523   : > { %4184 = vst.msk [vmem:[%s6310_s11 + $0x10] sm:$0xff] %vm2627_vm5, %v3129_v47  ;;  %4782 = vmatmul.mubr.msk.f32.vlgmr.msra.gmra.mxu1 %vm2627_vm5, %v3129_v47  ;;  %v3707_v47 = vld [vmem:[#allocation23 + $0xf0] sm:$0xff] }
0x1524   : > { %4785 = vmatpush3.msra.mxu1 %v2318_v48  ;;  %4792 = vmatprep.mubr.msk.f32.mxu1 %vm5555_vm0, %v5554_v0  ;;  %v3691_v48 = vld [vmem:[#allocation23 + $0x70] sm:$0xff] }
0x1525   : > { %4786 = vmatprep.subr.mxu1 %v5554_v0 }
0x1526   : > { %4787 = vmatpush3.msra.mxu1 %v2317_v49  ;;  %v3706_v49 = vld [vmem:[#allocation23 + $0xe8] sm:$0xff] }
0x1527   : > { %4788 = vmatprep.subr.mxu1 %v5554_v0 }
0x1528   : > { %4789 = vmatpush3.msra.mxu1 %v2316_v42  ;;  %v3690_v42 = vld [vmem:[#allocation23 + $0x68] sm:$0xff] }
0x1529   : > { %4790 = vmatprep.subr.mxu1 %v5554_v0 }
0x152a   : > { %4791 = vmatpush3.msra.mxu1 %v2315_v50  ;;  %v3705_v50 = vld [vmem:[#allocation23 + $0xe0] sm:$0xff] }
0x152b   : > { %4802 = vmatprep.subr.mxu1 %v5554_v0 }
0x1547   : > { %v3376_v51 = vpop.xlane.xlu0 %3375 }
0x1548   : > { %5030 = vrcp.f32 %v3376_v51  ;;  %v3689_v51 = vld [vmem:[#allocation23 + $0x60] sm:$0xff] }
0x154b   : > { %v3384_v57 = vpop.permute.xlu0 %3383 }
0x1555   : > { %v5031_v52 = vpop.eup %5030 }
0x1556   : > { %v3378_v53 = vmul.f32 %v5031_v52, %v5027_v41  ;;  %v3562_v41 = vld [vmem:[#allocation22 + $0x10] sm:$0xff]  ;;  %v3704_v52 = vld [vmem:[#allocation23 + $0xd8] sm:$0xff] }
0x1558   : > { %4190 = vst.msk [vmem:[%s6310_s11 + $0x18] sm:$0xff] %vm2627_vm5, %v3378_v53  ;;  %s5414_s11 = scalar_lea.vmem %s5413_s18, 1024 }
0x1559   : > { %p5416_p7 = scmp.lt.s32.totalorder %s5414_s11, %s5408_s22 }
0x155b   : > { %p5417_p0 = por %p5416_p7, %p5415_p6 }
0x155d   : > { %p5418_p13 = pnand %p5417_p0, %p5411_p1 }
0x15e3   : > { %v3207_v56 = vpop.f32.mrf.mxu1 }
0x15e4   : > { %4793 = vmatmul.mubr.msk.f32.vlgmr.msra.gmra.mxu1 %vm1275_vm1, %v3207_v56  ;;  %v3687_v56 = vld [vmem:[#allocation23 + $0x50] sm:$0xff] }
0x15e5   : > { %4803 = vmatpush3.msra.mxu1 %v3384_v57  ;;  %v4783_v58 = vpop.f32.mrf.mxu1  ;;  %4806 = vmatprep.mubr.msk.f32.mxu1 %vm5555_vm0, %v5554_v0  ;;  %v3702_v57 = vld [vmem:[#allocation23 + $0xc8] sm:$0xff] }
0x15e6   : > { %4804 = vmatprep.subr.mxu1 %v5554_v0  ;;  %v3686_v58 = vld [vmem:[#allocation23 + $0x48] sm:$0xff] }
0x15e7   : > { %4805 = vmatpush3.msra.mxu1 %v3382_v59  ;;  %v3701_v59 = vld [vmem:[#allocation23 + $0xc0] sm:$0xff] }
0x15e8   : > { %4807 = vmatmul.mubr.msk.f32.vlgmr.msra.gmra.mxu1 %vm2627_vm5, %v3378_v53  ;;  %3604 = vmatprep.subr.mxu1 %v3591_v12  ;;  %v3688_v53 = vld [vmem:[#allocation23 + $0x58] sm:$0xff]  ;;  %v4193_v12 = vld [vmem:[%s6527_s14] ss:$0 sm:$0xff] }
0x15e9   : > { %3668 = vmatprep.mubr.f32.mxu1 %v5554_v0  ;;  %v3590_v0 = vld [vmem:[#allocation22 + $0xf0] sm:$0xff] }
0x15ea   : > { %3605 = vmatpush1.msra.mxu1 %v3590_v0 }
0x15eb   : > { %3606 = vmatprep.subr.mxu1 %v3589_v55  ;;  %v4194_v55 = vld [vmem:[%s6528_s15] ss:$0 sm:$0xff] }
0x15ec   : > { %3607 = vmatpush1.msra.mxu1 %v3588_v13 }
0x15ed   : > { %3608 = vmatprep.subr.mxu1 %v3587_v4 }
0x15ee   : > { %3609 = vmatpush1.msra.mxu1 %v3586_v14  ;;  %v3696_v14 = vld [vmem:[#allocation23 + $0x98] sm:$0xff] }
0x15ef   : > { %3610 = vmatprep.subr.mxu1 %v3585_v2  ;;  %v3680_v2 = vld [vmem:[#allocation23 + $0x18] sm:$0xff] }
0x15f0   : > { %3611 = vmatpush1.msra.mxu1 %v3584_v15  ;;  %v3695_v15 = vld [vmem:[#allocation23 + $0x90] sm:$0xff] }
0x15f1   : > { %3612 = vmatprep.subr.mxu1 %v3583_v19  ;;  %v3693_v19 = vld [vmem:[#allocation23 + $0x80] sm:$0xff] }
0x15f2   : > { %3613 = vmatpush1.msra.mxu1 %v3582_v20  ;;  %v3594_v20 = vlaneseq }
0x15f3   : > { %3614 = vmatprep.subr.mxu1 %v3581_v21 }
0x15f4   : > { %3615 = vmatpush1.msra.mxu1 %v3580_v22  ;;  %v3595_v21 = vshrl.u32 %v3594_v20, 7 }
0x15f5   : > { %3616 = vmatprep.subr.mxu1 %v3579_v23  ;;  %v3592_v23 = vld [vmem:[%s6530_s17] sm:$0x3] }
0x15f6   : > { %3617 = vmatpush1.msra.mxu1 %v3578_v24  ;;  %v3596_v22 = vsub.s32 0, %v3595_v21  ;;  %v3600_v24 = vsub.s32 1, %v3595_v21 }
0x15f7   : > { %3618 = vmatprep.subr.mxu1 %v3577_v25 }
0x15f8   : > { %3619 = vmatpush1.msra.mxu1 %v3576_v26  ;;  %v3597_v25 = vrot.slane %v3592_v23, %v3596_v22  ;;  %v3601_v26 = vrot.slane %v3592_v23, %v3600_v24 }
0x15f9   : > { %3620 = vmatprep.subr.mxu1 %v3575_v27 }
0x15fa   : > { %3621 = vmatpush1.msra.mxu1 %v3574_v28 }
0x15fb   : > { %3622 = vmatprep.subr.mxu1 %v3573_v29 }
0x15fc   : > { %3623 = vmatpush1.msra.mxu1 %v3572_v30 }
0x15fd   : > { %3624 = vmatprep.subr.mxu1 %v3571_v32 }
0x15fe   : > { %3625 = vmatpush1.msra.mxu1 %v3570_v33 }
0x15ff   : > { %3626 = vmatprep.subr.mxu1 %v3569_v34 }
0x1600   : > { %3627 = vmatpush1.msra.mxu1 %v3568_v35  ;;  %v4195_v35 = vld [vmem:[%s6632_s19] ss:$0 sm:$0xff] }
0x1601   : > { %3628 = vmatprep.subr.mxu1 %v3567_v37 }
0x1602   : > { %3629 = vmatpush1.msra.mxu1 %v3566_v38 }
0x1603   : > { %3630 = vmatprep.subr.mxu1 %v3565_v31 }
0x1604   : > { %3631 = vmatpush1.msra.mxu1 %v3564_v39 }
0x1605   : > { %3632 = vmatprep.subr.mxu1 %v3563_v40 }
0x1606   : > { %3633 = vmatpush1.msra.mxu1 %v3562_v41 }
0x1607   : > { %3634 = vmatprep.subr.mxu1 %v3561_v43 }
0x1608   : > { %3635 = vmatpush1.msra.mxu1 %v3560_v44 }
0x16a4   : > { %v3280_v63 = vpop.f32.mrf.mxu1 }
0x16a5   : > { %v3284_v1 = vadd.f32 %v3280_v63, %v3033_v62  ;;  %v3699_v62 = vld [vmem:[#allocation23 + $0xb0] sm:$0xff] }
0x16a6   : > { %v4794_v3 = vpop.f32.mrf.mxu1  ;;  %v3683_v63 = vld [vmem:[#allocation23 + $0x30] sm:$0xff] }
0x16a7   : > { %v3682_v3 = vld [vmem:[#allocation23 + $0x28] sm:$0xff] }
0x16a8   : > { %v3456_v5 = vpop.f32.mrf.mxu1 }
0x16a9   : > { %4818 = vmatmul.mubr.msk.f32.vlgmr.msra.gmra.mxu0 %vm1275_vm1, %v3456_v5  ;;  %v3697_v5 = vld [vmem:[#allocation23 + $0xa0] sm:$0xff] }
0x16aa   : > { %v4808_v6 = vpop.f32.mrf.mxu1  ;;  %4392 = vmatpush3.msra.mxu0 %v3692_v46 }
0x16ab   : > { %4393 = vmatprep.subr.mxu0 %v3707_v47  ;;  %v3681_v6 = vld [vmem:[#allocation23 + $0x20] sm:$0xff] }
0x16ac   : > { %4394 = vmatpush3.msra.mxu0 %v3691_v48 }
0x16ad   : > { %4395 = vmatprep.subr.mxu0 %v3706_v49 }
0x16ae   : > { %4396 = vmatpush3.msra.mxu0 %v3690_v42 }
0x16af   : > { %4397 = vmatprep.subr.mxu0 %v3705_v50 }
0x16b0   : > { %4398 = vmatpush3.msra.mxu0 %v3689_v51 }
0x16b1   : > { %4399 = vmatprep.subr.mxu0 %v3704_v52 }
0x16b2   : > { %4400 = vmatpush3.msra.mxu0 %v3688_v53 }
0x16b3   : > { %4401 = vmatprep.subr.mxu0 %v3703_v54 }
0x16b4   : > { %4402 = vmatpush3.msra.mxu0 %v3687_v56 }
0x16b5   : > { %4403 = vmatprep.subr.mxu0 %v3702_v57 }
0x16b6   : > { %4404 = vmatpush3.msra.mxu0 %v3686_v58 }
0x16b7   : > { %4405 = vmatprep.subr.mxu0 %v3701_v59 }
0x16b8   : > { %4406 = vmatpush3.msra.mxu0 %v3685_v60 }
0x16b9   : > { %4407 = vmatprep.subr.mxu0 %v3700_v36 }
0x16ba   : > { %4408 = vmatpush3.msra.mxu0 %v3684_v61 }
0x16bb   : > { %4409 = vmatprep.subr.mxu0 %v3699_v62 }
0x16bc   : > { %4410 = vmatpush3.msra.mxu0 %v3683_v63 }
0x1769   : > { %v3529_v7 = vpop.f32.mrf.mxu0 }
0x176a   : > { %v3533_v8 = vadd.f32 %v3529_v7, %v3284_v1  ;;  %v3698_v1 = vld [vmem:[#allocation23 + $0xa8] sm:$0xff] }
0x176b   : > { %v4819_v9 = vpop.f32.mrf.mxu0  ;;  %4411 = vmatprep.subr.mxu0 %v3698_v1 }
0x176c   : > { %v3534_v10 = vadd.f32 %v3533_v8, %v6260_v11  ;;  %4412 = vmatpush3.msra.mxu0 %v3682_v3 }
0x176d   : > { %4413 = vmatprep.subr.mxu0 %v3697_v5 }
0x176e   : > { %3535 = vadd.xlane.f32.xlu1 %v3534_v10  ;;  %4414 = vmatpush3.msra.mxu0 %v3681_v6 }
0x176f   : > { %4415 = vmatprep.subr.mxu0 %v3696_v14 }
0x1770   : > { %4416 = vmatpush3.msra.mxu0 %v3680_v2 }
0x1771   : > { %4417 = vmatprep.subr.mxu0 %v3695_v15 }
0x17f7   : > { %v3536_v16 = vpop.xlane.xlu1 %3535 }
0x17f8   : > { %v3537_v17 = vmul.f32 0.0078125, %v3536_v16  ;;  %v3679_v16 = vld [vmem:[#allocation23 + $0x10] sm:$0xff] }
0x17f9   : > { %4418 = vmatpush3.msra.mxu0 %v3679_v16 }
0x17fa   : > { %v6422_v11 = vsub.f32 %v3534_v10, %v3537_v17  ;;  %v3694_v17 = vld [vmem:[#allocation23 + $0x88] sm:$0xff] }
0x17fb   : > { %4419 = vmatprep.subr.mxu0 %v3694_v17 }
0x17fc   : > { %v3539_v18 = vmul.f32 %v6422_v11, %v6422_v11 }
0x17fe   : > { %3540 = vadd.xlane.f32.xlu0 %v3539_v18  ;;  %v3678_v18 = vld [vmem:[#allocation23 + $0x8] sm:$0xff] }
0x17ff   : > { %4420 = vmatpush3.msra.mxu0 %v3678_v18 }
0x1800   : > { %4421 = vmatprep.subr.mxu0 %v3693_v19 }
0x1887   : > { %v3541_v7 = vpop.xlane.xlu0 %3540 }
0x1888   : > { %v3542_v8 = vmul.f32 0.0078125, %v3541_v7 }
0x188a   : > { %v3543_v9 = vadd.f32 1e-06, %v3542_v8 }
0x188c   : > { %5032 = vrsqrt.f32 %v3543_v9 }
0x1899   : > { %v5033_v10 = vpop.eup %5032 }
0x189a   : > { %v3545_v0 = vmul.f32 %v5033_v10, %v6422_v11  ;;  %v3677_v11 = vld [vmem:[#allocation23] sm:$0xff] }
0x189b   : > { %4422 = vmatpush3.msra.mxu0 %v3677_v11 }
0x189c   : > { %v3552_v13 = vmul.f32 %v4193_v12, %v3545_v0 }
0x189e   : > { %v3559_v4 = vadd.f32 %v4194_v55, %v3552_v13 }
0x18a0   : > { %3669 = vmatmul.mubr.f32.vlgmr.msra.gmra.mxu1 %v3559_v4 }
0x1960   : > { %v3670_v27 = vpop.f32.mrf.mxu1 }
0x1961   : > { %v3671_v28 = vadd.f32 %v3670_v27, %v3597_v25 }
0x1962   : > { %v3672_v29 = vpop.f32.mrf.mxu1 }
0x1963   : > { %v3673_v30 = vadd.f32 %v3672_v29, %v3601_v26  ;;  %v3675_v33 = vmax.f32 %v3671_v28, 0.0 }
0x1965   : > { %v3676_v32 = vmax.f32 %v3673_v30, 0.0 }
0x1967   : > { %3780 = vmatprep.mubr.f32.mxu0 %v3676_v32 }
0x1968   : > { %3781 = vmatmul.mubr.f32.vlgmr.msra.gmra.mxu0 %v3675_v33 }
0x1a28   : > { %v4423_v34 = vpop.f32.mrf.mxu0 }
0x1a2a   : > { %v4424_v37 = vpop.f32.mrf.mxu0 }
0x1a2b   : > { %v4425_v38 = vadd.f32 %v4424_v37, %v4423_v34 }
0x1a2d   : > { %v3783_v31 = vadd.f32 %v4425_v38, %v4195_v35 }
0x1a2f   : > { %v3786_v39 = vadd.f32 %v3783_v31, %v3559_v4 }
0x1a31   : > { %3789 = vadd.xlane.f32.xlu0 %v3786_v39 }
0x1aba   : > { %v3790_v40 = vpop.xlane.xlu0 %3789 }
0x1abb   : > { %v3791_v41 = vmul.f32 0.0078125, %v3790_v40 }
0x1abd   : > { %v3792_v43 = vsub.f32 %v3786_v39, %v3791_v41 }
0x1abf   : > { %v3793_v44 = vmul.f32 %v3792_v43, %v3792_v43 }
0x1ac1   : > { %3794 = vadd.xlane.f32.xlu1 %v3793_v44 }
0x1ac2   : > { %5421 = shalt.err (!%p5418_p13)
}
0x1ac3   : > { %s5422_s24 = scalar_lea.hbm %s6444_s3, 512  ;;  %s5426_s4 = scalar_lea.hbm %s6634_s27, 1024 }
0x1ac4   : > { %p5423_p3 = scmp.ne.s32.totalorder %s6444_s3, %s5422_s24  ;;  %p5427_p11 = scmp.lt.s32.totalorder %s6444_s3, %s6634_s27 }
0x1ac5   : > { %p5428_p2 = scmp.lt.s32.totalorder %s5426_s4, %s5422_s24 }
0x1ac6   : > { %p5424_p10 = pnand %p5423_p3, %p6635_p5 }
0x1ac7   : > { %p5429_p4 = por %p5428_p2, %p5427_p11 }
0x1ac8   : > { %p5425_p12 = pneg %p5424_p10 }
0x1aca   : > { %p5430_p9 = pnand %p5429_p4, %p5425_p12 }
0x1acc   : > { %5433 = shalt.err (!%p5430_p9)
}
0x1acd   : > { %s5560_s19 = smov 128   ;;  %s5561_s23 = smov 8  }
0x1ace   : > { %4869 = dma.vmem_to_hbm [thread:$0]  (%p6635_p5), %s6446_s21, 512, %s6444_s3, %s3821_s13, %s5560_s19, %s5560_s19, %s5561_s23  }
0x1acf   : > { %s6636_s22 = sld [smem:[#allocation60_spill]]  ;;  %s4200_s24 = sshll.u32 %s5704_s26, 7 }
0x1ad0   : > { %s6637_s11 = sld [smem:[#allocation61_spill]]  ;;  %s985_s2 = scalar_lea.vmem [#allocation25], %s6000_s16 }
0x1ad1   : > { %s3834_s29 = sshll.u32 %s985_s2, 4  ;;  %s6638_s13 = sld [smem:[#allocation62_spill]]  ;;  %s3835_s29 = int_to_ptr.vmem [resolvable:$true] %s3834_s29 }
0x1ad2   : > { %s3816_s10 = scalar_lea.sflag [#allocation4], %s5997_s28  ;;  %s5434_s12 = scalar_lea.vmem %s3835_s29, 128 }
0x1ad3   : > { %p5435_p8 = scmp.ne.s32.totalorder %s3835_s29, %s5434_s12  ;;  %s5562_s19 = smov [#allocation25]  }
0x1ad4   : > { %s5438_s23 = sshll.u32 %s5562_s19, 4  ;;  %s5439_s23 = int_to_ptr.vmem [resolvable:$false] %s5438_s23 }
0x1ad5   : > { %v4196_v49 = vld [vmem:[%s6636_s22] ss:$0 sm:$0xff]  ;;  %p5436_p1 = pnand %p5435_p8, %p6635_p5  ;;  %s5440_s26 = scalar_lea.vmem %s5439_s23, 256 }
0x1ad6   : > { %v4197_v50 = vld [vmem:[%s6637_s11] ss:$0 sm:$0xff]  ;;  %p5441_p7 = scmp.lt.s32.totalorder %s3835_s29, %s5439_s23  ;;  %p5442_p0 = scmp.lt.s32.totalorder %s5440_s26, %s5434_s12 }
0x1ad7   : > { %s3832_s4 = scalar_lea.hbm %s6638_s13, %s4200_s24  ;;  %p5437_p6 = pneg %p5436_p1 }
0x1ad8   : > { %p5443_p13 = por %p5442_p0, %p5441_p7 }
0x1ada   : > { %p5444_p3 = pnand %p5443_p13, %p5437_p6 }
0x1b4a   : > { %v3795_v45 = vpop.xlane.xlu1 %3794 }
0x1b4b   : > { %v3796_v46 = vmul.f32 0.0078125, %v3795_v45 }
0x1b4d   : > { %v3797_v47 = vadd.f32 1e-06, %v3796_v46 }
0x1b4f   : > { %5034 = vrsqrt.f32 %v3797_v47 }
0x1b5c   : > { %v5035_v48 = vpop.eup %5034 }
0x1b5d   : > { %v3799_v42 = vmul.f32 %v5035_v48, %v3792_v43 }
0x1b5f   : > { %v3806_v51 = vmul.f32 %v4196_v49, %v3799_v42 }
0x1b61   : > { %v3813_v52 = vadd.f32 %v4197_v50, %v3806_v51 }
0x1b63   : > { %3814 = vst [vmem:[%s985_s2] sm:$0xff] %v3813_v52 }
0x1b64   : > { %5447 = shalt.err (!%p5444_p3)
}
0x1b65   : > { %s5448_s16 = scalar_lea.hbm %s3832_s4, 128  ;;  %s5452_s5 = scalar_lea.hbm %s6638_s13, 256 }
0x1b66   : > { %p5449_p10 = scmp.ne.s32.totalorder %s3832_s4, %s5448_s16  ;;  %p5453_p2 = scmp.lt.s32.totalorder %s3832_s4, %s6638_s13 }
0x1b67   : > { %p5454_p4 = scmp.lt.s32.totalorder %s5452_s5, %s5448_s16 }
0x1b68   : > { %p5450_p12 = pnand %p5449_p10, %p6635_p5 }
0x1b69   : > { %p5455_p9 = por %p5454_p4, %p5453_p2 }
0x1b6a   : > { %p5451_p11 = pneg %p5450_p12 }
0x1b6c   : > { %p5456_p8 = pnand %p5455_p9, %p5451_p11 }
0x1b6e   : > { %5459 = shalt.err (!%p5456_p8)
}
0x1b6f   : > { %4868 = dma.vmem_to_hbm [thread:$0]  (%p6635_p5), %s3835_s29, 128, %s3832_s4, %s3816_s10  }
0x1b70 PF: > { %s6639_s18 = sld [smem:[#allocation39_spill]]  ;;  %p6642_p6 = scmp.ge.s32.totalorder %s5534_s25, 2 }
0x1b71   : > { %s6640_s11 = sld [smem:[#allocation44_spill]] }
0x1b76   : > { %s3862_s24 = sand.u32 1, %s6639_s18  }
0x1b77   : > { %p6641_p1 = scmp.ne.s32.totalorder %s6640_s11, 0  ;;  %s3863_s2 = scalar_lea.sflag [#allocation4], %s3862_s24 }
0x1b79   : > { %p4917_p7 = pnand %p6642_p6, %p6641_p1 }
0x1b7b   : > { %p4918_p0 = pneg %p4917_p7 }
0x1b7d   : > { %5513 = dma.done.wait (%p4918_p0), %s3863_s2, 128  }
0x1b7e   : > { %5515 = vsyncadd (%p4918_p0), %s3863_s2, 4294967168  ;;  %s3872_s21 = scalar_lea.sflag [#allocation27], %s3862_s24 }
0x1b7f   : > { %5517 = dma.done.wait (%p4918_p0), %s3872_s21, 512  }
0x1b80   : > { %5519 = vsyncadd (%p4918_p0), %s3872_s21, 4294966784  ;;  %s6643_s25 = sld [smem:[#allocation41_spill]]  ;;  %s6646_s4 = smov %s5526_s30 }
0x1b81   : > { %s6644_s3 = sld [smem:[#allocation40_spill]] }
0x1b82   : > { %s6645_s24 = sld [smem:[#allocation42_spill]] }
0x1b86   : > { %p51_p5 = scmp.ge.s32.totalorder %s6643_s25, 4  }
0x1b87   : > { %s6647_s30 = smov %s6644_s3 }
0x1b88   :  { %53 = sbr.rel (!%p51_p5) target bundleno = 36 (0x24), region = 250 }
0x1b8d   :  { %3877 = vsyncpa [#allocation3], 1 }
0x1b8e   :  { %3879 = vsyncpa [#allocation3 + $0x1], 1 }
0x1b8f   :  { %3880 = vsyncpa [#allocation6], 1 }
0x1b90   :  { %3882 = vsyncpa [#allocation6 + $0x1], 1 }
0x1b91   :  { %3883 = vsyncpa [#allocation9], 1 }
0x1b92   :  { %3885 = vsyncpa [#allocation9 + $0x1], 1 }
0x1b93   :  { %3886 = vsyncpa [#allocation12], 1 }
0x1b94   :  { %3887 = vsyncpa [#allocation15], 1 }
0x1b95   :  { %3888 = vsyncpa [#allocation18], 1 }
0x1b96   :  { %3889 = vsyncpa [#allocation21], 1 }
0x1b97   :  { %3890 = vsyncpa [#allocation24], 1 }
0x1b98   :  { %3891 = vsyncpa [#allocation4], 1 }
0x1b99   :  { %3893 = vsyncpa [#allocation4 + $0x1], 1 }
0x1b9a   :  { %3894 = vsyncpa [#allocation27], 1 }
0x1b9b   :  { %3896 = vsyncpa [#allocation27 + $0x1], 1 }

</bundles_post_ra>
